<compile_context>
chip_gen: v7x
topology: tpu7x:2x2x1
jax: 0.10.0
libtpu: 0.0.40
codegen_flags: <defaults>
</compile_context>

<pallas_src>
import functools

import jax
import jax.numpy as jnp
import numpy as np
from jax import lax
from jax.experimental import pallas as pl
from jax.experimental.pallas import tpu as pltpu


BG = 8  # batch rows per group: one full sublane tile


# ----------------------------- Pallas kernel ------------------------------ #
def lpcnet_feature_kernel(
    xcol_ref,   # (T*BG, Kp)  im2col'd conv1 input for this batch group (t outer, b inner)
    h0_ref,     # (BG, C)     initial GRU hidden state for this group
    w1_ref,     # (Kp, C)     conv1 weight, taps fused along K (zero-padded to Kp)
    w2k0_ref,   # (C, C)      conv2 tap k=0 (input t-2)
    w2k1_ref,   # (C, C)      conv2 tap k=1 (input t-1)
    w2k2_ref,   # (C, C)      conv2 tap k=2 (input t)
    wt_ref,     # (C, 2C)     tconv weight, [even | odd] output phases
    wgi_ref,    # (2C, 6C)    block-diag GRU input weights: diag(Wi, Wi)
    wh_ref,     # (C, 3C)     GRU hidden weights [Whr | Whz | Whn]^T
    b1_ref,     # (1, C)
    b2_ref,     # (1, C)
    bt_ref,     # (1, 2C)     [bt | bt]
    bi2_ref,    # (1, 6C)     [bi | bi],  bi = [b_ir+b_hr | b_iz+b_hz | b_in]
    bhn_ref,    # (1, C)      b_hn
    out_ref,    # (T*BG, 2C)  row t*BG+b = [h(2t) | h(2t+1)] for batch row b
    c2acc_ref,  # scratch (T*BG, C)
    *, T, C,
):
    f32 = jnp.float32
    TB = T * BG

    # ---- conv1 (k=3, pad [1,1]): one matmul on im2col'd input, tanh ----
    c1 = jnp.tanh(
        jnp.dot(xcol_ref[...], w1_ref[...], preferred_element_type=f32)
        + b1_ref[...])                                            # (TB, C)

    # ---- conv2 (k=3, causal pad [2,0]): three tap matmuls, accumulated with
    # sublane-aligned shifted adds into a VMEM scratch (no concats). ----
    y2 = jnp.dot(c1, w2k2_ref[...], preferred_element_type=f32)   # tap @ t
    y1 = jnp.dot(c1, w2k1_ref[...], preferred_element_type=f32)   # tap @ t-1
    y0 = jnp.dot(c1, w2k0_ref[...], preferred_element_type=f32)   # tap @ t-2
    c2acc_ref[...] = y2 + b2_ref[...]
    c2acc_ref[BG:TB, :] = c2acc_ref[BG:TB, :] + y1[0:TB - BG, :]
    c2acc_ref[2 * BG:TB, :] = c2acc_ref[2 * BG:TB, :] + y0[0:TB - 2 * BG, :]
    c2 = jnp.tanh(c2acc_ref[...])                                 # (TB, C)

    # ---- transposed conv (kernel=stride=2): both phases in one matmul ----
    uab = jnp.tanh(
        jnp.dot(c2, wt_ref[...], preferred_element_type=f32)
        + bt_ref[...])                                            # (TB, 2C)

    # ---- hoisted GRU input-gate projections, both phases fused into one
    # block-diagonal matmul (K = 2C). ----
    gi_both = (jnp.dot(uab, wgi_ref[...], preferred_element_type=f32)
               + bi2_ref[...])                                    # (TB, 6C)
    gi_e = gi_both[:, 0:3 * C]
    gi_o = gi_both[:, 3 * C:6 * C]

    wh = wh_ref[...]
    bhn = bhn_ref[...]

    def cell(gi, h):
        gh = jnp.dot(h, wh, preferred_element_type=f32)           # (BG, 3C)
        # sigmoid(x) = 0.5*tanh(0.5x)+0.5 : one EUP op per gate
        r = 0.5 * jnp.tanh(0.5 * (gi[:, 0:C] + gh[:, 0:C])) + 0.5
        z = 0.5 * jnp.tanh(0.5 * (gi[:, C:2 * C] + gh[:, C:2 * C])) + 0.5
        n = jnp.tanh(gi[:, 2 * C:3 * C] + r * (gh[:, 2 * C:3 * C] + bhn))
        return n + z * (h - n)

    # ---- GRU recurrence: static unroll (T small); lane/sublane-dense stores.
    # (switch to lax.fori_loop(unroll=True) + pl.ds stores once T grows) ----
    h = h0_ref[...]
    for j in range(T):
        lo = j * BG
        hi = lo + BG
        h_even = cell(gi_e[lo:hi, :], h)       # output time 2j
        h = cell(gi_o[lo:hi, :], h_even)       # output time 2j + 1
        out_ref[lo:hi, 0:C] = h_even
        out_ref[lo:hi, C:2 * C] = h


# ------------------------------- wrapper ----------------------------------- #
def lpcnet_feature_net(features, params, state=None):
    """features: (B, T, F) float32. Returns (B, 2T, C) float32."""
    B, T, F = features.shape
    C = params["b1"].shape[0]

    G = -(-B // BG)               # number of 8-row batch groups
    Bp = G * BG                   # padded batch
    Kp = ((3 * F + 127) // 128) * 128   # conv1 K padded to 128-lane multiple

    if state is None:
        state = jnp.zeros((B, C), jnp.float32)
    elif state.ndim == 3:         # torch-style (1, B, C)
        state = state[0]
    state = state.astype(jnp.float32)

    # --- pad batch to a multiple of 8 rows (zero rows are independent) ---
    feat_p = jnp.pad(features.astype(jnp.float32), ((0, Bp - B), (0, 0), (0, 0)))
    h0 = jnp.pad(state, ((0, Bp - B), (0, 0)))                     # (Bp, C)

    # --- im2col for conv1 (pad [1,1]); layout rows = (group, time, batch) ---
    xp = jnp.pad(feat_p, ((0, 0), (1, 1), (0, 0)))                 # (Bp, T+2, F)
    xcol = jnp.concatenate([xp[:, 0:T], xp[:, 1:T + 1], xp[:, 2:T + 2]], axis=-1)
    xcol = (xcol.reshape(G, BG, T, 3 * F)
                .transpose(0, 2, 1, 3)
                .reshape(G * T * BG, 3 * F))
    xcol = jnp.pad(xcol, ((0, 0), (0, Kp - 3 * F)))                # (G*T*BG, Kp)

    # --- reshape PyTorch-layout parameters into fused matmul stacks ---
    w1c = jnp.transpose(params["w1"], (2, 1, 0)).reshape(3 * F, C)
    w1c = jnp.pad(w1c, ((0, Kp - 3 * F), (0, 0)))                  # (Kp, C)
    w2k0 = params["w2"][:, :, 0].T                                 # (C, C)
    w2k1 = params["w2"][:, :, 1].T
    w2k2 = params["w2"][:, :, 2].T
    wtc = jnp.concatenate([params["wt"][:, :, 0],
                           params["wt"][:, :, 1]], axis=-1)        # (C, 2C)
    wi = params["wih"].T                                           # (C, 3C)
    z3 = jnp.zeros((C, 3 * C), jnp.float32)
    wgi = jnp.concatenate(
        [jnp.concatenate([wi, z3], axis=1),
         jnp.concatenate([z3, wi], axis=1)], axis=0)               # (2C, 6C)
    whc = params["whh"].T                                          # (C, 3C)

    b1 = params["b1"].reshape(1, C)
    b2 = params["b2"].reshape(1, C)
    bt2 = jnp.concatenate([params["bt"], params["bt"]]).reshape(1, 2 * C)
    bih, bhh = params["bih"], params["bhh"]
    bi = jnp.concatenate([bih[0:C] + bhh[0:C],
                          bih[C:2 * C] + bhh[C:2 * C],
                          bih[2 * C:3 * C]])
    bi2 = jnp.concatenate([bi, bi]).reshape(1, 6 * C)
    bhn = bhh[2 * C:3 * C].reshape(1, C)

    def rep(shape):
        nd = len(shape)
        return pl.BlockSpec(shape, lambda g, _n=nd: (0,) * _n)

    def per_group(shape):
        return pl.BlockSpec(shape, lambda g: (g, 0))

    kernel = functools.partial(lpcnet_feature_kernel, T=T, C=C)

    grid_spec = pltpu.PrefetchScalarGridSpec(
        num_scalar_prefetch=0,
        grid=(G,),
        in_specs=[
            per_group((T * BG, Kp)),     # xcol
            per_group((BG, C)),          # h0
            rep((Kp, C)),                # w1
            rep((C, C)),                 # w2 tap 0
            rep((C, C)),                 # w2 tap 1
            rep((C, C)),                 # w2 tap 2
            rep((C, 2 * C)),             # wt
            rep((2 * C, 6 * C)),         # wgi (block-diag)
            rep((C, 3 * C)),             # wh
            rep((1, C)),                 # b1
            rep((1, C)),                 # b2
            rep((1, 2 * C)),             # bt
            rep((1, 6 * C)),             # bi2
            rep((1, C)),                 # bhn
        ],
        out_specs=per_group((T * BG, 2 * C)),
        scratch_shapes=[pltpu.VMEM((T * BG, C), jnp.float32)],
    )

    out_flat = pl.pallas_call(
        kernel,
        out_shape=jax.ShapeDtypeStruct((G * T * BG, 2 * C), jnp.float32),
        grid_spec=grid_spec,
        compiler_params=pltpu.CompilerParams(
            dimension_semantics=("parallel",)),
    )(xcol, h0, w1c, w2k0, w2k1, w2k2, wtc, wgi, whc, b1, b2, bt2, bi2, bhn)

    # de-interleave: row g*T*BG + t*BG + b holds [h(2t) | h(2t+1)] -> (B, 2T, C)
    out = (out_flat.reshape(G, T, BG, 2, C)
                   .transpose(0, 2, 1, 3, 4)
                   .reshape(G * BG, 2 * T, C))
    return out[:B]


# ------------------------ pure-JAX reference (check) ----------------------- #
def reference_forward(features, params):
    B, T, F = features.shape
    C = params["b1"].shape[0]
    w1, b1 = params["w1"], params["b1"]
    w2, b2 = params["w2"], params["b2"]
    wt, btc = params["wt"], params["bt"]
    wih, whh = params["wih"], params["whh"]
    bih, bhh = params["bih"], params["bhh"]

    x = jnp.transpose(features, (0, 2, 1))                       # (B, F, T)
    xp = jnp.pad(x, ((0, 0), (0, 0), (1, 1)))
    win1 = jnp.stack([xp[:, :, k:k + T] for k in range(3)], axis=-1)
    c1 = jnp.tanh(jnp.einsum("bitk,oik->bot", win1, w1) + b1[None, :, None])
    cp = jnp.pad(c1, ((0, 0), (0, 0), (2, 0)))
    win2 = jnp.stack([cp[:, :, k:k + T] for k in range(3)], axis=-1)
    c2 = jnp.tanh(jnp.einsum("bitk,oik->bot", win2, w2) + b2[None, :, None])
    u = jnp.einsum("bit,iok->botk", c2, wt).reshape(B, C, 2 * T)
    u = jnp.tanh(u + btc[None, :, None])
    u = jnp.transpose(u, (0, 2, 1))                              # (B, 2T, C)

    def step(h, x_t):
        gi = x_t @ wih.T + bih
        gh = h @ whh.T + bhh
        r = jax.nn.sigmoid(gi[:, :C] + gh[:, :C])
        z = jax.nn.sigmoid(gi[:, C:2 * C] + gh[:, C:2 * C])
        n = jnp.tanh(gi[:, 2 * C:] + r * gh[:, 2 * C:])
        h = (1.0 - z) * n + z * h
        return h, h

    h0 = jnp.zeros((B, C), jnp.float32)
    _, ys = lax.scan(step, h0, jnp.transpose(u, (1, 0, 2)))
    return jnp.transpose(ys, (1, 0, 2))


# --------------------------------- main ------------------------------------ #
if __name__ == "__main__":
    # Small, module-consistent shapes: batch=2, num_frames=8,
    # feature_dim=32, num_channels=128, upsamp_factor=2, lookahead=True.
    B, T, F, C = 2, 8, 32, 128

    key = jax.random.PRNGKey(0)
    ks = jax.random.split(key, 12)

    def rnd(k, shape, scale):
        return jax.random.normal(k, shape, jnp.float32) * scale

    params = {
        "w1": rnd(ks[0], (C, F, 3), 0.2 / np.sqrt(3 * F)),
        "b1": rnd(ks[1], (C,), 0.1),
        "w2": rnd(ks[2], (C, C, 3), 0.2 / np.sqrt(3 * C)),
        "b2": rnd(ks[3], (C,), 0.1),
        "wt": rnd(ks[4], (C, C, 2), 0.2 / np.sqrt(C)),   # ConvTranspose1d: (in, out, k)
        "bt": rnd(ks[5], (C,), 0.1),
        "wih": rnd(ks[6], (3 * C, C), 0.2 / np.sqrt(C)),
        "whh": rnd(ks[7], (3 * C, C), 0.2 / np.sqrt(C)),
        "bih": rnd(ks[8], (3 * C,), 0.1),
        "bhh": rnd(ks[9], (3 * C,), 0.1),
    }

    features = jax.random.normal(ks[10], (B, T, F), jnp.float32)

    out = jax.jit(functools.partial(lpcnet_feature_net, params=params))(features)
    out = jax.block_until_ready(out)

    ref = reference_forward(features, params)
    np.testing.assert_allclose(np.asarray(out), np.asarray(ref),
                               rtol=1e-3, atol=1e-3)
    assert out.shape == (B, 2 * T, C)
    print("KERNEL_OK")
</pallas_src>

<mosaic_0001>
module attributes {stable_mosaic.version = 11 : i64} {
  func.func @lpcnet_feature_kernel(%arg0: i32, %arg1: memref<64x128xf32, #tpu.memory_space<vmem>>, %arg2: memref<8x128xf32, #tpu.memory_space<vmem>>, %arg3: memref<128x128xf32, #tpu.memory_space<vmem>>, %arg4: memref<128x128xf32, #tpu.memory_space<vmem>>, %arg5: memref<128x128xf32, #tpu.memory_space<vmem>>, %arg6: memref<128x128xf32, #tpu.memory_space<vmem>>, %arg7: memref<128x256xf32, #tpu.memory_space<vmem>>, %arg8: memref<256x768xf32, #tpu.memory_space<vmem>>, %arg9: memref<128x384xf32, #tpu.memory_space<vmem>>, %arg10: memref<1x128xf32, #tpu.memory_space<vmem>>, %arg11: memref<1x128xf32, #tpu.memory_space<vmem>>, %arg12: memref<1x256xf32, #tpu.memory_space<vmem>>, %arg13: memref<1x768xf32, #tpu.memory_space<vmem>>, %arg14: memref<1x128xf32, #tpu.memory_space<vmem>>, %arg15: memref<64x256xf32, #tpu.memory_space<vmem>>, %arg16: memref<64x128xf32, #tpu.memory_space<vmem>>) attributes {dimension_semantics = [#tpu.dimension_semantics<parallel>], iteration_bounds = array<i64: 1>, scalar_prefetch = 0 : i64, scratch_operands = 1 : i64, tpu.core_type = #tpu.core_type<tc>, window_params = [{transform_indices = @transform_0, window_bounds = array<i64: 64, 128>}, {transform_indices = @transform_1, window_bounds = array<i64: 8, 128>}, {pipeline_mode = #tpu.pipeline_mode<synchronous>, transform_indices = @transform_2, window_bounds = array<i64: 128, 128>}, {pipeline_mode = #tpu.pipeline_mode<synchronous>, transform_indices = @transform_3, window_bounds = array<i64: 128, 128>}, {pipeline_mode = #tpu.pipeline_mode<synchronous>, transform_indices = @transform_4, window_bounds = array<i64: 128, 128>}, {pipeline_mode = #tpu.pipeline_mode<synchronous>, transform_indices = @transform_5, window_bounds = array<i64: 128, 128>}, {pipeline_mode = #tpu.pipeline_mode<synchronous>, transform_indices = @transform_6, window_bounds = array<i64: 128, 256>}, {pipeline_mode = #tpu.pipeline_mode<synchronous>, transform_indices = @transform_7, window_bounds = array<i64: 256, 768>}, {pipeline_mode = #tpu.pipeline_mode<synchronous>, transform_indices = @transform_8, window_bounds = array<i64: 128, 384>}, {pipeline_mode = #tpu.pipeline_mode<synchronous>, transform_indices = @transform_9, window_bounds = array<i64: 1, 128>}, {pipeline_mode = #tpu.pipeline_mode<synchronous>, transform_indices = @transform_10, window_bounds = array<i64: 1, 128>}, {pipeline_mode = #tpu.pipeline_mode<synchronous>, transform_indices = @transform_11, window_bounds = array<i64: 1, 256>}, {pipeline_mode = #tpu.pipeline_mode<synchronous>, transform_indices = @transform_12, window_bounds = array<i64: 1, 768>}, {pipeline_mode = #tpu.pipeline_mode<synchronous>, transform_indices = @transform_13, window_bounds = array<i64: 1, 128>}, {transform_indices = @transform_14, window_bounds = array<i64: 64, 256>}]} {
    %c0 = arith.constant 0 : index
    %c0_0 = arith.constant 0 : index
    %0 = vector.load %arg1[%c0, %c0_0] : memref<64x128xf32, #tpu.memory_space<vmem>>, vector<64x128xf32>
    %c0_1 = arith.constant 0 : index
    %c0_2 = arith.constant 0 : index
    %1 = vector.load %arg3[%c0_1, %c0_2] : memref<128x128xf32, #tpu.memory_space<vmem>>, vector<128x128xf32>
    %cst = arith.constant dense<0.000000e+00> : vector<64x128xf32>
    %2 = tpu.matmul %0, %1, %cst {dimension_numbers = #tpu.dot_dimension_numbers<[1], [0], [0], [1], [0, 0, 1, 1], [], []>} : vector<64x128xf32>, vector<128x128xf32>, vector<64x128xf32> -> vector<64x128xf32>
    %c0_3 = arith.constant 0 : index
    %c0_4 = arith.constant 0 : index
    %3 = vector.load %arg10[%c0_3, %c0_4] : memref<1x128xf32, #tpu.memory_space<vmem>>, vector<1x128xf32>
    %4 = vector.broadcast %3 : vector<1x128xf32> to vector<64x128xf32>
    %5 = arith.addf %2, %4 : vector<64x128xf32>
    %6 = math.tanh %5 : vector<64x128xf32>
    %c0_5 = arith.constant 0 : index
    %c0_6 = arith.constant 0 : index
    %7 = vector.load %arg6[%c0_5, %c0_6] : memref<128x128xf32, #tpu.memory_space<vmem>>, vector<128x128xf32>
    %cst_7 = arith.constant dense<0.000000e+00> : vector<64x128xf32>
    %8 = tpu.matmul %6, %7, %cst_7 {dimension_numbers = #tpu.dot_dimension_numbers<[1], [0], [0], [1], [0, 0, 1, 1], [], []>} : vector<64x128xf32>, vector<128x128xf32>, vector<64x128xf32> -> vector<64x128xf32>
    %c0_8 = arith.constant 0 : index
    %c0_9 = arith.constant 0 : index
    %9 = vector.load %arg5[%c0_8, %c0_9] : memref<128x128xf32, #tpu.memory_space<vmem>>, vector<128x128xf32>
    %cst_10 = arith.constant dense<0.000000e+00> : vector<64x128xf32>
    %10 = tpu.matmul %6, %9, %cst_10 {dimension_numbers = #tpu.dot_dimension_numbers<[1], [0], [0], [1], [0, 0, 1, 1], [], []>} : vector<64x128xf32>, vector<128x128xf32>, vector<64x128xf32> -> vector<64x128xf32>
    %c0_11 = arith.constant 0 : index
    %c0_12 = arith.constant 0 : index
    %11 = vector.load %arg4[%c0_11, %c0_12] : memref<128x128xf32, #tpu.memory_space<vmem>>, vector<128x128xf32>
    %cst_13 = arith.constant dense<0.000000e+00> : vector<64x128xf32>
    %12 = tpu.matmul %6, %11, %cst_13 {dimension_numbers = #tpu.dot_dimension_numbers<[1], [0], [0], [1], [0, 0, 1, 1], [], []>} : vector<64x128xf32>, vector<128x128xf32>, vector<64x128xf32> -> vector<64x128xf32>
    %c0_14 = arith.constant 0 : index
    %c0_15 = arith.constant 0 : index
    %13 = vector.load %arg11[%c0_14, %c0_15] : memref<1x128xf32, #tpu.memory_space<vmem>>, vector<1x128xf32>
    %14 = vector.broadcast %13 : vector<1x128xf32> to vector<64x128xf32>
    %15 = arith.addf %8, %14 : vector<64x128xf32>
    %c0_16 = arith.constant 0 : index
    %c0_17 = arith.constant 0 : index
    %16 = vector.load %arg16[%c0_16, %c0_17] : memref<64x128xf32, #tpu.memory_space<vmem>>, vector<64x128xf32>
    tpu.vector_store %arg16[%c0_16, %c0_17], %15 {strides = array<i32>} : memref<64x128xf32, #tpu.memory_space<vmem>>, vector<64x128xf32>,
    %c8 = arith.constant 8 : index
    %c0_18 = arith.constant 0 : index
    %17 = vector.load %arg16[%c8, %c0_18] : memref<64x128xf32, #tpu.memory_space<vmem>>, vector<56x128xf32>
    %18 = vector.extract_strided_slice %10 {offsets = [0, 0], sizes = [56, 128], strides = [1, 1]} : vector<64x128xf32> to vector<56x128xf32>
    %19 = arith.addf %17, %18 : vector<56x128xf32>
    %c8_19 = arith.constant 8 : index
    %c0_20 = arith.constant 0 : index
    %20 = vector.load %arg16[%c8_19, %c0_20] : memref<64x128xf32, #tpu.memory_space<vmem>>, vector<56x128xf32>
    tpu.vector_store %arg16[%c8_19, %c0_20], %19 {strides = array<i32>} : memref<64x128xf32, #tpu.memory_space<vmem>>, vector<56x128xf32>,
    %c16 = arith.constant 16 : index
    %c0_21 = arith.constant 0 : index
    %21 = vector.load %arg16[%c16, %c0_21] : memref<64x128xf32, #tpu.memory_space<vmem>>, vector<48x128xf32>
    %22 = vector.extract_strided_slice %12 {offsets = [0, 0], sizes = [48, 128], strides = [1, 1]} : vector<64x128xf32> to vector<48x128xf32>
    %23 = arith.addf %21, %22 : vector<48x128xf32>
    %c16_22 = arith.constant 16 : index
    %c0_23 = arith.constant 0 : index
    %24 = vector.load %arg16[%c16_22, %c0_23] : memref<64x128xf32, #tpu.memory_space<vmem>>, vector<48x128xf32>
    tpu.vector_store %arg16[%c16_22, %c0_23], %23 {strides = array<i32>} : memref<64x128xf32, #tpu.memory_space<vmem>>, vector<48x128xf32>,
    %c0_24 = arith.constant 0 : index
    %c0_25 = arith.constant 0 : index
    %25 = vector.load %arg16[%c0_24, %c0_25] : memref<64x128xf32, #tpu.memory_space<vmem>>, vector<64x128xf32>
    %26 = math.tanh %25 : vector<64x128xf32>
    %c0_26 = arith.constant 0 : index
    %c0_27 = arith.constant 0 : index
    %27 = vector.load %arg7[%c0_26, %c0_27] : memref<128x256xf32, #tpu.memory_space<vmem>>, vector<128x256xf32>
    %cst_28 = arith.constant dense<0.000000e+00> : vector<64x256xf32>
    %28 = tpu.matmul %26, %27, %cst_28 {dimension_numbers = #tpu.dot_dimension_numbers<[1], [0], [0], [1], [0, 0, 1, 1], [], []>} : vector<64x128xf32>, vector<128x256xf32>, vector<64x256xf32> -> vector<64x256xf32>
    %c0_29 = arith.constant 0 : index
    %c0_30 = arith.constant 0 : index
    %29 = vector.load %arg12[%c0_29, %c0_30] : memref<1x256xf32, #tpu.memory_space<vmem>>, vector<1x256xf32>
    %30 = vector.broadcast %29 : vector<1x256xf32> to vector<64x256xf32>
    %31 = arith.addf %28, %30 : vector<64x256xf32>
    %32 = math.tanh %31 : vector<64x256xf32>
    %c0_31 = arith.constant 0 : index
    %c0_32 = arith.constant 0 : index
    %33 = vector.load %arg8[%c0_31, %c0_32] : memref<256x768xf32, #tpu.memory_space<vmem>>, vector<256x768xf32>
    %cst_33 = arith.constant dense<0.000000e+00> : vector<64x768xf32>
    %34 = tpu.matmul %32, %33, %cst_33 {dimension_numbers = #tpu.dot_dimension_numbers<[1], [0], [0], [1], [0, 0, 1, 1], [], []>} : vector<64x256xf32>, vector<256x768xf32>, vector<64x768xf32> -> vector<64x768xf32>
    %c0_34 = arith.constant 0 : index
    %c0_35 = arith.constant 0 : index
    %35 = vector.load %arg13[%c0_34, %c0_35] : memref<1x768xf32, #tpu.memory_space<vmem>>, vector<1x768xf32>
    %36 = vector.broadcast %35 : vector<1x768xf32> to vector<64x768xf32>
    %37 = arith.addf %34, %36 : vector<64x768xf32>
    %38 = vector.extract_strided_slice %37 {offsets = [0, 0], sizes = [64, 384], strides = [1, 1]} : vector<64x768xf32> to vector<64x384xf32>
    %39 = vector.extract_strided_slice %37 {offsets = [0, 384], sizes = [64, 384], strides = [1, 1]} : vector<64x768xf32> to vector<64x384xf32>
    %c0_36 = arith.constant 0 : index
    %c0_37 = arith.constant 0 : index
    %40 = vector.load %arg9[%c0_36, %c0_37] : memref<128x384xf32, #tpu.memory_space<vmem>>, vector<128x384xf32>
    %c0_38 = arith.constant 0 : index
    %c0_39 = arith.constant 0 : index
    %41 = vector.load %arg14[%c0_38, %c0_39] : memref<1x128xf32, #tpu.memory_space<vmem>>, vector<1x128xf32>
    %c0_40 = arith.constant 0 : index
    %c0_41 = arith.constant 0 : index
    %42 = vector.load %arg2[%c0_40, %c0_41] : memref<8x128xf32, #tpu.memory_space<vmem>>, vector<8x128xf32>
    %43 = vector.extract_strided_slice %38 {offsets = [0, 0], sizes = [8, 384], strides = [1, 1]} : vector<64x384xf32> to vector<8x384xf32>
    %cst_42 = arith.constant dense<0.000000e+00> : vector<8x384xf32>
    %44 = tpu.matmul %42, %40, %cst_42 {dimension_numbers = #tpu.dot_dimension_numbers<[1], [0], [0], [1], [0, 0, 1, 1], [], []>} : vector<8x128xf32>, vector<128x384xf32>, vector<8x384xf32> -> vector<8x384xf32>
    %45 = vector.extract_strided_slice %43 {offsets = [0, 0], sizes = [8, 128], strides = [1, 1]} : vector<8x384xf32> to vector<8x128xf32>
    %46 = vector.extract_strided_slice %44 {offsets = [0, 0], sizes = [8, 128], strides = [1, 1]} : vector<8x384xf32> to vector<8x128xf32>
    %47 = arith.addf %45, %46 : vector<8x128xf32>
    %cst_43 = arith.constant 5.000000e-01 : f32
    %48 = vector.broadcast %cst_43 : f32 to vector<8x128xf32>
    %49 = arith.mulf %48, %47 : vector<8x128xf32>
    %50 = math.tanh %49 : vector<8x128xf32>
    %cst_44 = arith.constant 5.000000e-01 : f32
    %51 = vector.broadcast %cst_44 : f32 to vector<8x128xf32>
    %52 = arith.mulf %51, %50 : vector<8x128xf32>
    %cst_45 = arith.constant 5.000000e-01 : f32
    %53 = vector.broadcast %cst_45 : f32 to vector<8x128xf32>
    %54 = arith.addf %52, %53 : vector<8x128xf32>
    %55 = vector.extract_strided_slice %43 {offsets = [0, 128], sizes = [8, 128], strides = [1, 1]} : vector<8x384xf32> to vector<8x128xf32>
    %56 = vector.extract_strided_slice %44 {offsets = [0, 128], sizes = [8, 128], strides = [1, 1]} : vector<8x384xf32> to vector<8x128xf32>
    %57 = arith.addf %55, %56 : vector<8x128xf32>
    %cst_46 = arith.constant 5.000000e-01 : f32
    %58 = vector.broadcast %cst_46 : f32 to vector<8x128xf32>
    %59 = arith.mulf %58, %57 : vector<8x128xf32>
    %60 = math.tanh %59 : vector<8x128xf32>
    %cst_47 = arith.constant 5.000000e-01 : f32
    %61 = vector.broadcast %cst_47 : f32 to vector<8x128xf32>
    %62 = arith.mulf %61, %60 : vector<8x128xf32>
    %cst_48 = arith.constant 5.000000e-01 : f32
    %63 = vector.broadcast %cst_48 : f32 to vector<8x128xf32>
    %64 = arith.addf %62, %63 : vector<8x128xf32>
    %65 = vector.extract_strided_slice %43 {offsets = [0, 256], sizes = [8, 128], strides = [1, 1]} : vector<8x384xf32> to vector<8x128xf32>
    %66 = vector.extract_strided_slice %44 {offsets = [0, 256], sizes = [8, 128], strides = [1, 1]} : vector<8x384xf32> to vector<8x128xf32>
    %67 = vector.broadcast %41 : vector<1x128xf32> to vector<8x128xf32>
    %68 = arith.addf %66, %67 : vector<8x128xf32>
    %69 = arith.mulf %54, %68 : vector<8x128xf32>
    %70 = arith.addf %65, %69 : vector<8x128xf32>
    %71 = math.tanh %70 : vector<8x128xf32>
    %72 = arith.subf %42, %71 : vector<8x128xf32>
    %73 = arith.mulf %64, %72 : vector<8x128xf32>
    %74 = arith.addf %71, %73 : vector<8x128xf32>
    %75 = vector.extract_strided_slice %39 {offsets = [0, 0], sizes = [8, 384], strides = [1, 1]} : vector<64x384xf32> to vector<8x384xf32>
    %cst_49 = arith.constant dense<0.000000e+00> : vector<8x384xf32>
    %76 = tpu.matmul %74, %40, %cst_49 {dimension_numbers = #tpu.dot_dimension_numbers<[1], [0], [0], [1], [0, 0, 1, 1], [], []>} : vector<8x128xf32>, vector<128x384xf32>, vector<8x384xf32> -> vector<8x384xf32>
    %77 = vector.extract_strided_slice %75 {offsets = [0, 0], sizes = [8, 128], strides = [1, 1]} : vector<8x384xf32> to vector<8x128xf32>
    %78 = vector.extract_strided_slice %76 {offsets = [0, 0], sizes = [8, 128], strides = [1, 1]} : vector<8x384xf32> to vector<8x128xf32>
    %79 = arith.addf %77, %78 : vector<8x128xf32>
    %cst_50 = arith.constant 5.000000e-01 : f32
    %80 = vector.broadcast %cst_50 : f32 to vector<8x128xf32>
    %81 = arith.mulf %80, %79 : vector<8x128xf32>
    %82 = math.tanh %81 : vector<8x128xf32>
    %cst_51 = arith.constant 5.000000e-01 : f32
    %83 = vector.broadcast %cst_51 : f32 to vector<8x128xf32>
    %84 = arith.mulf %83, %82 : vector<8x128xf32>
    %cst_52 = arith.constant 5.000000e-01 : f32
    %85 = vector.broadcast %cst_52 : f32 to vector<8x128xf32>
    %86 = arith.addf %84, %85 : vector<8x128xf32>
    %87 = vector.extract_strided_slice %75 {offsets = [0, 128], sizes = [8, 128], strides = [1, 1]} : vector<8x384xf32> to vector<8x128xf32>
    %88 = vector.extract_strided_slice %76 {offsets = [0, 128], sizes = [8, 128], strides = [1, 1]} : vector<8x384xf32> to vector<8x128xf32>
    %89 = arith.addf %87, %88 : vector<8x128xf32>
    %cst_53 = arith.constant 5.000000e-01 : f32
    %90 = vector.broadcast %cst_53 : f32 to vector<8x128xf32>
    %91 = arith.mulf %90, %89 : vector<8x128xf32>
    %92 = math.tanh %91 : vector<8x128xf32>
    %cst_54 = arith.constant 5.000000e-01 : f32
    %93 = vector.broadcast %cst_54 : f32 to vector<8x128xf32>
    %94 = arith.mulf %93, %92 : vector<8x128xf32>
    %cst_55 = arith.constant 5.000000e-01 : f32
    %95 = vector.broadcast %cst_55 : f32 to vector<8x128xf32>
    %96 = arith.addf %94, %95 : vector<8x128xf32>
    %97 = vector.extract_strided_slice %75 {offsets = [0, 256], sizes = [8, 128], strides = [1, 1]} : vector<8x384xf32> to vector<8x128xf32>
    %98 = vector.extract_strided_slice %76 {offsets = [0, 256], sizes = [8, 128], strides = [1, 1]} : vector<8x384xf32> to vector<8x128xf32>
    %99 = vector.broadcast %41 : vector<1x128xf32> to vector<8x128xf32>
    %100 = arith.addf %98, %99 : vector<8x128xf32>
    %101 = arith.mulf %86, %100 : vector<8x128xf32>
    %102 = arith.addf %97, %101 : vector<8x128xf32>
    %103 = math.tanh %102 : vector<8x128xf32>
    %104 = arith.subf %74, %103 : vector<8x128xf32>
    %105 = arith.mulf %96, %104 : vector<8x128xf32>
    %106 = arith.addf %103, %105 : vector<8x128xf32>
    %c0_56 = arith.constant 0 : index
    %c0_57 = arith.constant 0 : index
    %107 = vector.load %arg15[%c0_56, %c0_57] : memref<64x256xf32, #tpu.memory_space<vmem>>, vector<8x128xf32>
    tpu.vector_store %arg15[%c0_56, %c0_57], %74 {strides = array<i32>} : memref<64x256xf32, #tpu.memory_space<vmem>>, vector<8x128xf32>,
    %c0_58 = arith.constant 0 : index
    %c128 = arith.constant 128 : index
    %108 = vector.load %arg15[%c0_58, %c128] : memref<64x256xf32, #tpu.memory_space<vmem>>, vector<8x128xf32>
    tpu.vector_store %arg15[%c0_58, %c128], %106 {strides = array<i32>} : memref<64x256xf32, #tpu.memory_space<vmem>>, vector<8x128xf32>,
    %109 = vector.extract_strided_slice %38 {offsets = [8, 0], sizes = [8, 384], strides = [1, 1]} : vector<64x384xf32> to vector<8x384xf32>
    %cst_59 = arith.constant dense<0.000000e+00> : vector<8x384xf32>
    %110 = tpu.matmul %106, %40, %cst_59 {dimension_numbers = #tpu.dot_dimension_numbers<[1], [0], [0], [1], [0, 0, 1, 1], [], []>} : vector<8x128xf32>, vector<128x384xf32>, vector<8x384xf32> -> vector<8x384xf32>
    %111 = vector.extract_strided_slice %109 {offsets = [0, 0], sizes = [8, 128], strides = [1, 1]} : vector<8x384xf32> to vector<8x128xf32>
    %112 = vector.extract_strided_slice %110 {offsets = [0, 0], sizes = [8, 128], strides = [1, 1]} : vector<8x384xf32> to vector<8x128xf32>
    %113 = arith.addf %111, %112 : vector<8x128xf32>
    %cst_60 = arith.constant 5.000000e-01 : f32
    %114 = vector.broadcast %cst_60 : f32 to vector<8x128xf32>
    %115 = arith.mulf %114, %113 : vector<8x128xf32>
    %116 = math.tanh %115 : vector<8x128xf32>
    %cst_61 = arith.constant 5.000000e-01 : f32
    %117 = vector.broadcast %cst_61 : f32 to vector<8x128xf32>
    %118 = arith.mulf %117, %116 : vector<8x128xf32>
    %cst_62 = arith.constant 5.000000e-01 : f32
    %119 = vector.broadcast %cst_62 : f32 to vector<8x128xf32>
    %120 = arith.addf %118, %119 : vector<8x128xf32>
    %121 = vector.extract_strided_slice %109 {offsets = [0, 128], sizes = [8, 128], strides = [1, 1]} : vector<8x384xf32> to vector<8x128xf32>
    %122 = vector.extract_strided_slice %110 {offsets = [0, 128], sizes = [8, 128], strides = [1, 1]} : vector<8x384xf32> to vector<8x128xf32>
    %123 = arith.addf %121, %122 : vector<8x128xf32>
    %cst_63 = arith.constant 5.000000e-01 : f32
    %124 = vector.broadcast %cst_63 : f32 to vector<8x128xf32>
    %125 = arith.mulf %124, %123 : vector<8x128xf32>
    %126 = math.tanh %125 : vector<8x128xf32>
    %cst_64 = arith.constant 5.000000e-01 : f32
    %127 = vector.broadcast %cst_64 : f32 to vector<8x128xf32>
    %128 = arith.mulf %127, %126 : vector<8x128xf32>
    %cst_65 = arith.constant 5.000000e-01 : f32
    %129 = vector.broadcast %cst_65 : f32 to vector<8x128xf32>
    %130 = arith.addf %128, %129 : vector<8x128xf32>
    %131 = vector.extract_strided_slice %109 {offsets = [0, 256], sizes = [8, 128], strides = [1, 1]} : vector<8x384xf32> to vector<8x128xf32>
    %132 = vector.extract_strided_slice %110 {offsets = [0, 256], sizes = [8, 128], strides = [1, 1]} : vector<8x384xf32> to vector<8x128xf32>
    %133 = vector.broadcast %41 : vector<1x128xf32> to vector<8x128xf32>
    %134 = arith.addf %132, %133 : vector<8x128xf32>
    %135 = arith.mulf %120, %134 : vector<8x128xf32>
    %136 = arith.addf %131, %135 : vector<8x128xf32>
    %137 = math.tanh %136 : vector<8x128xf32>
    %138 = arith.subf %106, %137 : vector<8x128xf32>
    %139 = arith.mulf %130, %138 : vector<8x128xf32>
    %140 = arith.addf %137, %139 : vector<8x128xf32>
    %141 = vector.extract_strided_slice %39 {offsets = [8, 0], sizes = [8, 384], strides = [1, 1]} : vector<64x384xf32> to vector<8x384xf32>
    %cst_66 = arith.constant dense<0.000000e+00> : vector<8x384xf32>
    %142 = tpu.matmul %140, %40, %cst_66 {dimension_numbers = #tpu.dot_dimension_numbers<[1], [0], [0], [1], [0, 0, 1, 1], [], []>} : vector<8x128xf32>, vector<128x384xf32>, vector<8x384xf32> -> vector<8x384xf32>
    %143 = vector.extract_strided_slice %141 {offsets = [0, 0], sizes = [8, 128], strides = [1, 1]} : vector<8x384xf32> to vector<8x128xf32>
    %144 = vector.extract_strided_slice %142 {offsets = [0, 0], sizes = [8, 128], strides = [1, 1]} : vector<8x384xf32> to vector<8x128xf32>
    %145 = arith.addf %143, %144 : vector<8x128xf32>
    %cst_67 = arith.constant 5.000000e-01 : f32
    %146 = vector.broadcast %cst_67 : f32 to vector<8x128xf32>
    %147 = arith.mulf %146, %145 : vector<8x128xf32>
    %148 = math.tanh %147 : vector<8x128xf32>
    %cst_68 = arith.constant 5.000000e-01 : f32
    %149 = vector.broadcast %cst_68 : f32 to vector<8x128xf32>
    %150 = arith.mulf %149, %148 : vector<8x128xf32>
    %cst_69 = arith.constant 5.000000e-01 : f32
    %151 = vector.broadcast %cst_69 : f32 to vector<8x128xf32>
    %152 = arith.addf %150, %151 : vector<8x128xf32>
    %153 = vector.extract_strided_slice %141 {offsets = [0, 128], sizes = [8, 128], strides = [1, 1]} : vector<8x384xf32> to vector<8x128xf32>
    %154 = vector.extract_strided_slice %142 {offsets = [0, 128], sizes = [8, 128], strides = [1, 1]} : vector<8x384xf32> to vector<8x128xf32>
    %155 = arith.addf %153, %154 : vector<8x128xf32>
    %cst_70 = arith.constant 5.000000e-01 : f32
    %156 = vector.broadcast %cst_70 : f32 to vector<8x128xf32>
    %157 = arith.mulf %156, %155 : vector<8x128xf32>
    %158 = math.tanh %157 : vector<8x128xf32>
    %cst_71 = arith.constant 5.000000e-01 : f32
    %159 = vector.broadcast %cst_71 : f32 to vector<8x128xf32>
    %160 = arith.mulf %159, %158 : vector<8x128xf32>
    %cst_72 = arith.constant 5.000000e-01 : f32
    %161 = vector.broadcast %cst_72 : f32 to vector<8x128xf32>
    %162 = arith.addf %160, %161 : vector<8x128xf32>
    %163 = vector.extract_strided_slice %141 {offsets = [0, 256], sizes = [8, 128], strides = [1, 1]} : vector<8x384xf32> to vector<8x128xf32>
    %164 = vector.extract_strided_slice %142 {offsets = [0, 256], sizes = [8, 128], strides = [1, 1]} : vector<8x384xf32> to vector<8x128xf32>
    %165 = vector.broadcast %41 : vector<1x128xf32> to vector<8x128xf32>
    %166 = arith.addf %164, %165 : vector<8x128xf32>
    %167 = arith.mulf %152, %166 : vector<8x128xf32>
    %168 = arith.addf %163, %167 : vector<8x128xf32>
    %169 = math.tanh %168 : vector<8x128xf32>
    %170 = arith.subf %140, %169 : vector<8x128xf32>
    %171 = arith.mulf %162, %170 : vector<8x128xf32>
    %172 = arith.addf %169, %171 : vector<8x128xf32>
    %c8_73 = arith.constant 8 : index
    %c0_74 = arith.constant 0 : index
    %173 = vector.load %arg15[%c8_73, %c0_74] : memref<64x256xf32, #tpu.memory_space<vmem>>, vector<8x128xf32>
    tpu.vector_store %arg15[%c8_73, %c0_74], %140 {strides = array<i32>} : memref<64x256xf32, #tpu.memory_space<vmem>>, vector<8x128xf32>,
    %c8_75 = arith.constant 8 : index
    %c128_76 = arith.constant 128 : index
    %174 = vector.load %arg15[%c8_75, %c128_76] : memref<64x256xf32, #tpu.memory_space<vmem>>, vector<8x128xf32>
    tpu.vector_store %arg15[%c8_75, %c128_76], %172 {strides = array<i32>} : memref<64x256xf32, #tpu.memory_space<vmem>>, vector<8x128xf32>,
    %175 = vector.extract_strided_slice %38 {offsets = [16, 0], sizes = [8, 384], strides = [1, 1]} : vector<64x384xf32> to vector<8x384xf32>
    %cst_77 = arith.constant dense<0.000000e+00> : vector<8x384xf32>
    %176 = tpu.matmul %172, %40, %cst_77 {dimension_numbers = #tpu.dot_dimension_numbers<[1], [0], [0], [1], [0, 0, 1, 1], [], []>} : vector<8x128xf32>, vector<128x384xf32>, vector<8x384xf32> -> vector<8x384xf32>
    %177 = vector.extract_strided_slice %175 {offsets = [0, 0], sizes = [8, 128], strides = [1, 1]} : vector<8x384xf32> to vector<8x128xf32>
    %178 = vector.extract_strided_slice %176 {offsets = [0, 0], sizes = [8, 128], strides = [1, 1]} : vector<8x384xf32> to vector<8x128xf32>
    %179 = arith.addf %177, %178 : vector<8x128xf32>
    %cst_78 = arith.constant 5.000000e-01 : f32
    %180 = vector.broadcast %cst_78 : f32 to vector<8x128xf32>
    %181 = arith.mulf %180, %179 : vector<8x128xf32>
    %182 = math.tanh %181 : vector<8x128xf32>
    %cst_79 = arith.constant 5.000000e-01 : f32
    %183 = vector.broadcast %cst_79 : f32 to vector<8x128xf32>
    %184 = arith.mulf %183, %182 : vector<8x128xf32>
    %cst_80 = arith.constant 5.000000e-01 : f32
    %185 = vector.broadcast %cst_80 : f32 to vector<8x128xf32>
    %186 = arith.addf %184, %185 : vector<8x128xf32>
    %187 = vector.extract_strided_slice %175 {offsets = [0, 128], sizes = [8, 128], strides = [1, 1]} : vector<8x384xf32> to vector<8x128xf32>
    %188 = vector.extract_strided_slice %176 {offsets = [0, 128], sizes = [8, 128], strides = [1, 1]} : vector<8x384xf32> to vector<8x128xf32>
    %189 = arith.addf %187, %188 : vector<8x128xf32>
    %cst_81 = arith.constant 5.000000e-01 : f32
    %190 = vector.broadcast %cst_81 : f32 to vector<8x128xf32>
    %191 = arith.mulf %190, %189 : vector<8x128xf32>
    %192 = math.tanh %191 : vector<8x128xf32>
    %cst_82 = arith.constant 5.000000e-01 : f32
    %193 = vector.broadcast %cst_82 : f32 to vector<8x128xf32>
    %194 = arith.mulf %193, %192 : vector<8x128xf32>
    %cst_83 = arith.constant 5.000000e-01 : f32
    %195 = vector.broadcast %cst_83 : f32 to vector<8x128xf32>
    %196 = arith.addf %194, %195 : vector<8x128xf32>
    %197 = vector.extract_strided_slice %175 {offsets = [0, 256], sizes = [8, 128], strides = [1, 1]} : vector<8x384xf32> to vector<8x128xf32>
    %198 = vector.extract_strided_slice %176 {offsets = [0, 256], sizes = [8, 128], strides = [1, 1]} : vector<8x384xf32> to vector<8x128xf32>
    %199 = vector.broadcast %41 : vector<1x128xf32> to vector<8x128xf32>
    %200 = arith.addf %198, %199 : vector<8x128xf32>
    %201 = arith.mulf %186, %200 : vector<8x128xf32>
    %202 = arith.addf %197, %201 : vector<8x128xf32>
    %203 = math.tanh %202 : vector<8x128xf32>
    %204 = arith.subf %172, %203 : vector<8x128xf32>
    %205 = arith.mulf %196, %204 : vector<8x128xf32>
    %206 = arith.addf %203, %205 : vector<8x128xf32>
    %207 = vector.extract_strided_slice %39 {offsets = [16, 0], sizes = [8, 384], strides = [1, 1]} : vector<64x384xf32> to vector<8x384xf32>
    %cst_84 = arith.constant dense<0.000000e+00> : vector<8x384xf32>
    %208 = tpu.matmul %206, %40, %cst_84 {dimension_numbers = #tpu.dot_dimension_numbers<[1], [0], [0], [1], [0, 0, 1, 1], [], []>} : vector<8x128xf32>, vector<128x384xf32>, vector<8x384xf32> -> vector<8x384xf32>
    %209 = vector.extract_strided_slice %207 {offsets = [0, 0], sizes = [8, 128], strides = [1, 1]} : vector<8x384xf32> to vector<8x128xf32>
    %210 = vector.extract_strided_slice %208 {offsets = [0, 0], sizes = [8, 128], strides = [1, 1]} : vector<8x384xf32> to vector<8x128xf32>
    %211 = arith.addf %209, %210 : vector<8x128xf32>
    %cst_85 = arith.constant 5.000000e-01 : f32
    %212 = vector.broadcast %cst_85 : f32 to vector<8x128xf32>
    %213 = arith.mulf %212, %211 : vector<8x128xf32>
    %214 = math.tanh %213 : vector<8x128xf32>
    %cst_86 = arith.constant 5.000000e-01 : f32
    %215 = vector.broadcast %cst_86 : f32 to vector<8x128xf32>
    %216 = arith.mulf %215, %214 : vector<8x128xf32>
    %cst_87 = arith.constant 5.000000e-01 : f32
    %217 = vector.broadcast %cst_87 : f32 to vector<8x128xf32>
    %218 = arith.addf %216, %217 : vector<8x128xf32>
    %219 = vector.extract_strided_slice %207 {offsets = [0, 128], sizes = [8, 128], strides = [1, 1]} : vector<8x384xf32> to vector<8x128xf32>
    %220 = vector.extract_strided_slice %208 {offsets = [0, 128], sizes = [8, 128], strides = [1, 1]} : vector<8x384xf32> to vector<8x128xf32>
    %221 = arith.addf %219, %220 : vector<8x128xf32>
    %cst_88 = arith.constant 5.000000e-01 : f32
    %222 = vector.broadcast %cst_88 : f32 to vector<8x128xf32>
    %223 = arith.mulf %222, %221 : vector<8x128xf32>
    %224 = math.tanh %223 : vector<8x128xf32>
    %cst_89 = arith.constant 5.000000e-01 : f32
    %225 = vector.broadcast %cst_89 : f32 to vector<8x128xf32>
    %226 = arith.mulf %225, %224 : vector<8x128xf32>
    %cst_90 = arith.constant 5.000000e-01 : f32
    %227 = vector.broadcast %cst_90 : f32 to vector<8x128xf32>
    %228 = arith.addf %226, %227 : vector<8x128xf32>
    %229 = vector.extract_strided_slice %207 {offsets = [0, 256], sizes = [8, 128], strides = [1, 1]} : vector<8x384xf32> to vector<8x128xf32>
    %230 = vector.extract_strided_slice %208 {offsets = [0, 256], sizes = [8, 128], strides = [1, 1]} : vector<8x384xf32> to vector<8x128xf32>
    %231 = vector.broadcast %41 : vector<1x128xf32> to vector<8x128xf32>
    %232 = arith.addf %230, %231 : vector<8x128xf32>
    %233 = arith.mulf %218, %232 : vector<8x128xf32>
    %234 = arith.addf %229, %233 : vector<8x128xf32>
    %235 = math.tanh %234 : vector<8x128xf32>
    %236 = arith.subf %206, %235 : vector<8x128xf32>
    %237 = arith.mulf %228, %236 : vector<8x128xf32>
    %238 = arith.addf %235, %237 : vector<8x128xf32>
    %c16_91 = arith.constant 16 : index
    %c0_92 = arith.constant 0 : index
    %239 = vector.load %arg15[%c16_91, %c0_92] : memref<64x256xf32, #tpu.memory_space<vmem>>, vector<8x128xf32>
    tpu.vector_store %arg15[%c16_91, %c0_92], %206 {strides = array<i32>} : memref<64x256xf32, #tpu.memory_space<vmem>>, vector<8x128xf32>,
    %c16_93 = arith.constant 16 : index
    %c128_94 = arith.constant 128 : index
    %240 = vector.load %arg15[%c16_93, %c128_94] : memref<64x256xf32, #tpu.memory_space<vmem>>, vector<8x128xf32>
    tpu.vector_store %arg15[%c16_93, %c128_94], %238 {strides = array<i32>} : memref<64x256xf32, #tpu.memory_space<vmem>>, vector<8x128xf32>,
    %241 = vector.extract_strided_slice %38 {offsets = [24, 0], sizes = [8, 384], strides = [1, 1]} : vector<64x384xf32> to vector<8x384xf32>
    %cst_95 = arith.constant dense<0.000000e+00> : vector<8x384xf32>
    %242 = tpu.matmul %238, %40, %cst_95 {dimension_numbers = #tpu.dot_dimension_numbers<[1], [0], [0], [1], [0, 0, 1, 1], [], []>} : vector<8x128xf32>, vector<128x384xf32>, vector<8x384xf32> -> vector<8x384xf32>
    %243 = vector.extract_strided_slice %241 {offsets = [0, 0], sizes = [8, 128], strides = [1, 1]} : vector<8x384xf32> to vector<8x128xf32>
    %244 = vector.extract_strided_slice %242 {offsets = [0, 0], sizes = [8, 128], strides = [1, 1]} : vector<8x384xf32> to vector<8x128xf32>
    %245 = arith.addf %243, %244 : vector<8x128xf32>
    %cst_96 = arith.constant 5.000000e-01 : f32
    %246 = vector.broadcast %cst_96 : f32 to vector<8x128xf32>
    %247 = arith.mulf %246, %245 : vector<8x128xf32>
    %248 = math.tanh %247 : vector<8x128xf32>
    %cst_97 = arith.constant 5.000000e-01 : f32
    %249 = vector.broadcast %cst_97 : f32 to vector<8x128xf32>
    %250 = arith.mulf %249, %248 : vector<8x128xf32>
    %cst_98 = arith.constant 5.000000e-01 : f32
    %251 = vector.broadcast %cst_98 : f32 to vector<8x128xf32>
    %252 = arith.addf %250, %251 : vector<8x128xf32>
    %253 = vector.extract_strided_slice %241 {offsets = [0, 128], sizes = [8, 128], strides = [1, 1]} : vector<8x384xf32> to vector<8x128xf32>
    %254 = vector.extract_strided_slice %242 {offsets = [0, 128], sizes = [8, 128], strides = [1, 1]} : vector<8x384xf32> to vector<8x128xf32>
    %255 = arith.addf %253, %254 : vector<8x128xf32>
    %cst_99 = arith.constant 5.000000e-01 : f32
    %256 = vector.broadcast %cst_99 : f32 to vector<8x128xf32>
    %257 = arith.mulf %256, %255 : vector<8x128xf32>
    %258 = math.tanh %257 : vector<8x128xf32>
    %cst_100 = arith.constant 5.000000e-01 : f32
    %259 = vector.broadcast %cst_100 : f32 to vector<8x128xf32>
    %260 = arith.mulf %259, %258 : vector<8x128xf32>
    %cst_101 = arith.constant 5.000000e-01 : f32
    %261 = vector.broadcast %cst_101 : f32 to vector<8x128xf32>
    %262 = arith.addf %260, %261 : vector<8x128xf32>
    %263 = vector.extract_strided_slice %241 {offsets = [0, 256], sizes = [8, 128], strides = [1, 1]} : vector<8x384xf32> to vector<8x128xf32>
    %264 = vector.extract_strided_slice %242 {offsets = [0, 256], sizes = [8, 128], strides = [1, 1]} : vector<8x384xf32> to vector<8x128xf32>
    %265 = vector.broadcast %41 : vector<1x128xf32> to vector<8x128xf32>
    %266 = arith.addf %264, %265 : vector<8x128xf32>
    %267 = arith.mulf %252, %266 : vector<8x128xf32>
    %268 = arith.addf %263, %267 : vector<8x128xf32>
    %269 = math.tanh %268 : vector<8x128xf32>
    %270 = arith.subf %238, %269 : vector<8x128xf32>
    %271 = arith.mulf %262, %270 : vector<8x128xf32>
    %272 = arith.addf %269, %271 : vector<8x128xf32>
    %273 = vector.extract_strided_slice %39 {offsets = [24, 0], sizes = [8, 384], strides = [1, 1]} : vector<64x384xf32> to vector<8x384xf32>
    %cst_102 = arith.constant dense<0.000000e+00> : vector<8x384xf32>
    %274 = tpu.matmul %272, %40, %cst_102 {dimension_numbers = #tpu.dot_dimension_numbers<[1], [0], [0], [1], [0, 0, 1, 1], [], []>} : vector<8x128xf32>, vector<128x384xf32>, vector<8x384xf32> -> vector<8x384xf32>
    %275 = vector.extract_strided_slice %273 {offsets = [0, 0], sizes = [8, 128], strides = [1, 1]} : vector<8x384xf32> to vector<8x128xf32>
    %276 = vector.extract_strided_slice %274 {offsets = [0, 0], sizes = [8, 128], strides = [1, 1]} : vector<8x384xf32> to vector<8x128xf32>
    %277 = arith.addf %275, %276 : vector<8x128xf32>
    %cst_103 = arith.constant 5.000000e-01 : f32
    %278 = vector.broadcast %cst_103 : f32 to vector<8x128xf32>
    %279 = arith.mulf %278, %277 : vector<8x128xf32>
    %280 = math.tanh %279 : vector<8x128xf32>
    %cst_104 = arith.constant 5.000000e-01 : f32
    %281 = vector.broadcast %cst_104 : f32 to vector<8x128xf32>
    %282 = arith.mulf %281, %280 : vector<8x128xf32>
    %cst_105 = arith.constant 5.000000e-01 : f32
    %283 = vector.broadcast %cst_105 : f32 to vector<8x128xf32>
    %284 = arith.addf %282, %283 : vector<8x128xf32>
    %285 = vector.extract_strided_slice %273 {offsets = [0, 128], sizes = [8, 128], strides = [1, 1]} : vector<8x384xf32> to vector<8x128xf32>
    %286 = vector.extract_strided_slice %274 {offsets = [0, 128], sizes = [8, 128], strides = [1, 1]} : vector<8x384xf32> to vector<8x128xf32>
    %287 = arith.addf %285, %286 : vector<8x128xf32>
    %cst_106 = arith.constant 5.000000e-01 : f32
    %288 = vector.broadcast %cst_106 : f32 to vector<8x128xf32>
    %289 = arith.mulf %288, %287 : vector<8x128xf32>
    %290 = math.tanh %289 : vector<8x128xf32>
    %cst_107 = arith.constant 5.000000e-01 : f32
    %291 = vector.broadcast %cst_107 : f32 to vector<8x128xf32>
    %292 = arith.mulf %291, %290 : vector<8x128xf32>
    %cst_108 = arith.constant 5.000000e-01 : f32
    %293 = vector.broadcast %cst_108 : f32 to vector<8x128xf32>
    %294 = arith.addf %292, %293 : vector<8x128xf32>
    %295 = vector.extract_strided_slice %273 {offsets = [0, 256], sizes = [8, 128], strides = [1, 1]} : vector<8x384xf32> to vector<8x128xf32>
    %296 = vector.extract_strided_slice %274 {offsets = [0, 256], sizes = [8, 128], strides = [1, 1]} : vector<8x384xf32> to vector<8x128xf32>
    %297 = vector.broadcast %41 : vector<1x128xf32> to vector<8x128xf32>
    %298 = arith.addf %296, %297 : vector<8x128xf32>
    %299 = arith.mulf %284, %298 : vector<8x128xf32>
    %300 = arith.addf %295, %299 : vector<8x128xf32>
    %301 = math.tanh %300 : vector<8x128xf32>
    %302 = arith.subf %272, %301 : vector<8x128xf32>
    %303 = arith.mulf %294, %302 : vector<8x128xf32>
    %304 = arith.addf %301, %303 : vector<8x128xf32>
    %c24 = arith.constant 24 : index
    %c0_109 = arith.constant 0 : index
    %305 = vector.load %arg15[%c24, %c0_109] : memref<64x256xf32, #tpu.memory_space<vmem>>, vector<8x128xf32>
    tpu.vector_store %arg15[%c24, %c0_109], %272 {strides = array<i32>} : memref<64x256xf32, #tpu.memory_space<vmem>>, vector<8x128xf32>,
    %c24_110 = arith.constant 24 : index
    %c128_111 = arith.constant 128 : index
    %306 = vector.load %arg15[%c24_110, %c128_111] : memref<64x256xf32, #tpu.memory_space<vmem>>, vector<8x128xf32>
    tpu.vector_store %arg15[%c24_110, %c128_111], %304 {strides = array<i32>} : memref<64x256xf32, #tpu.memory_space<vmem>>, vector<8x128xf32>,
    %307 = vector.extract_strided_slice %38 {offsets = [32, 0], sizes = [8, 384], strides = [1, 1]} : vector<64x384xf32> to vector<8x384xf32>
    %cst_112 = arith.constant dense<0.000000e+00> : vector<8x384xf32>
    %308 = tpu.matmul %304, %40, %cst_112 {dimension_numbers = #tpu.dot_dimension_numbers<[1], [0], [0], [1], [0, 0, 1, 1], [], []>} : vector<8x128xf32>, vector<128x384xf32>, vector<8x384xf32> -> vector<8x384xf32>
    %309 = vector.extract_strided_slice %307 {offsets = [0, 0], sizes = [8, 128], strides = [1, 1]} : vector<8x384xf32> to vector<8x128xf32>
    %310 = vector.extract_strided_slice %308 {offsets = [0, 0], sizes = [8, 128], strides = [1, 1]} : vector<8x384xf32> to vector<8x128xf32>
    %311 = arith.addf %309, %310 : vector<8x128xf32>
    %cst_113 = arith.constant 5.000000e-01 : f32
    %312 = vector.broadcast %cst_113 : f32 to vector<8x128xf32>
    %313 = arith.mulf %312, %311 : vector<8x128xf32>
    %314 = math.tanh %313 : vector<8x128xf32>
    %cst_114 = arith.constant 5.000000e-01 : f32
    %315 = vector.broadcast %cst_114 : f32 to vector<8x128xf32>
    %316 = arith.mulf %315, %314 : vector<8x128xf32>
    %cst_115 = arith.constant 5.000000e-01 : f32
    %317 = vector.broadcast %cst_115 : f32 to vector<8x128xf32>
    %318 = arith.addf %316, %317 : vector<8x128xf32>
    %319 = vector.extract_strided_slice %307 {offsets = [0, 128], sizes = [8, 128], strides = [1, 1]} : vector<8x384xf32> to vector<8x128xf32>
    %320 = vector.extract_strided_slice %308 {offsets = [0, 128], sizes = [8, 128], strides = [1, 1]} : vector<8x384xf32> to vector<8x128xf32>
    %321 = arith.addf %319, %320 : vector<8x128xf32>
    %cst_116 = arith.constant 5.000000e-01 : f32
    %322 = vector.broadcast %cst_116 : f32 to vector<8x128xf32>
    %323 = arith.mulf %322, %321 : vector<8x128xf32>
    %324 = math.tanh %323 : vector<8x128xf32>
    %cst_117 = arith.constant 5.000000e-01 : f32
    %325 = vector.broadcast %cst_117 : f32 to vector<8x128xf32>
    %326 = arith.mulf %325, %324 : vector<8x128xf32>
    %cst_118 = arith.constant 5.000000e-01 : f32
    %327 = vector.broadcast %cst_118 : f32 to vector<8x128xf32>
    %328 = arith.addf %326, %327 : vector<8x128xf32>
    %329 = vector.extract_strided_slice %307 {offsets = [0, 256], sizes = [8, 128], strides = [1, 1]} : vector<8x384xf32> to vector<8x128xf32>
    %330 = vector.extract_strided_slice %308 {offsets = [0, 256], sizes = [8, 128], strides = [1, 1]} : vector<8x384xf32> to vector<8x128xf32>
    %331 = vector.broadcast %41 : vector<1x128xf32> to vector<8x128xf32>
    %332 = arith.addf %330, %331 : vector<8x128xf32>
    %333 = arith.mulf %318, %332 : vector<8x128xf32>
    %334 = arith.addf %329, %333 : vector<8x128xf32>
    %335 = math.tanh %334 : vector<8x128xf32>
    %336 = arith.subf %304, %335 : vector<8x128xf32>
    %337 = arith.mulf %328, %336 : vector<8x128xf32>
    %338 = arith.addf %335, %337 : vector<8x128xf32>
    %339 = vector.extract_strided_slice %39 {offsets = [32, 0], sizes = [8, 384], strides = [1, 1]} : vector<64x384xf32> to vector<8x384xf32>
    %cst_119 = arith.constant dense<0.000000e+00> : vector<8x384xf32>
    %340 = tpu.matmul %338, %40, %cst_119 {dimension_numbers = #tpu.dot_dimension_numbers<[1], [0], [0], [1], [0, 0, 1, 1], [], []>} : vector<8x128xf32>, vector<128x384xf32>, vector<8x384xf32> -> vector<8x384xf32>
    %341 = vector.extract_strided_slice %339 {offsets = [0, 0], sizes = [8, 128], strides = [1, 1]} : vector<8x384xf32> to vector<8x128xf32>
    %342 = vector.extract_strided_slice %340 {offsets = [0, 0], sizes = [8, 128], strides = [1, 1]} : vector<8x384xf32> to vector<8x128xf32>
    %343 = arith.addf %341, %342 : vector<8x128xf32>
    %cst_120 = arith.constant 5.000000e-01 : f32
    %344 = vector.broadcast %cst_120 : f32 to vector<8x128xf32>
    %345 = arith.mulf %344, %343 : vector<8x128xf32>
    %346 = math.tanh %345 : vector<8x128xf32>
    %cst_121 = arith.constant 5.000000e-01 : f32
    %347 = vector.broadcast %cst_121 : f32 to vector<8x128xf32>
    %348 = arith.mulf %347, %346 : vector<8x128xf32>
    %cst_122 = arith.constant 5.000000e-01 : f32
    %349 = vector.broadcast %cst_122 : f32 to vector<8x128xf32>
    %350 = arith.addf %348, %349 : vector<8x128xf32>
    %351 = vector.extract_strided_slice %339 {offsets = [0, 128], sizes = [8, 128], strides = [1, 1]} : vector<8x384xf32> to vector<8x128xf32>
    %352 = vector.extract_strided_slice %340 {offsets = [0, 128], sizes = [8, 128], strides = [1, 1]} : vector<8x384xf32> to vector<8x128xf32>
    %353 = arith.addf %351, %352 : vector<8x128xf32>
    %cst_123 = arith.constant 5.000000e-01 : f32
    %354 = vector.broadcast %cst_123 : f32 to vector<8x128xf32>
    %355 = arith.mulf %354, %353 : vector<8x128xf32>
    %356 = math.tanh %355 : vector<8x128xf32>
    %cst_124 = arith.constant 5.000000e-01 : f32
    %357 = vector.broadcast %cst_124 : f32 to vector<8x128xf32>
    %358 = arith.mulf %357, %356 : vector<8x128xf32>
    %cst_125 = arith.constant 5.000000e-01 : f32
    %359 = vector.broadcast %cst_125 : f32 to vector<8x128xf32>
    %360 = arith.addf %358, %359 : vector<8x128xf32>
    %361 = vector.extract_strided_slice %339 {offsets = [0, 256], sizes = [8, 128], strides = [1, 1]} : vector<8x384xf32> to vector<8x128xf32>
    %362 = vector.extract_strided_slice %340 {offsets = [0, 256], sizes = [8, 128], strides = [1, 1]} : vector<8x384xf32> to vector<8x128xf32>
    %363 = vector.broadcast %41 : vector<1x128xf32> to vector<8x128xf32>
    %364 = arith.addf %362, %363 : vector<8x128xf32>
    %365 = arith.mulf %350, %364 : vector<8x128xf32>
    %366 = arith.addf %361, %365 : vector<8x128xf32>
    %367 = math.tanh %366 : vector<8x128xf32>
    %368 = arith.subf %338, %367 : vector<8x128xf32>
    %369 = arith.mulf %360, %368 : vector<8x128xf32>
    %370 = arith.addf %367, %369 : vector<8x128xf32>
    %c32 = arith.constant 32 : index
    %c0_126 = arith.constant 0 : index
    %371 = vector.load %arg15[%c32, %c0_126] : memref<64x256xf32, #tpu.memory_space<vmem>>, vector<8x128xf32>
    tpu.vector_store %arg15[%c32, %c0_126], %338 {strides = array<i32>} : memref<64x256xf32, #tpu.memory_space<vmem>>, vector<8x128xf32>,
    %c32_127 = arith.constant 32 : index
    %c128_128 = arith.constant 128 : index
    %372 = vector.load %arg15[%c32_127, %c128_128] : memref<64x256xf32, #tpu.memory_space<vmem>>, vector<8x128xf32>
    tpu.vector_store %arg15[%c32_127, %c128_128], %370 {strides = array<i32>} : memref<64x256xf32, #tpu.memory_space<vmem>>, vector<8x128xf32>,
    %373 = vector.extract_strided_slice %38 {offsets = [40, 0], sizes = [8, 384], strides = [1, 1]} : vector<64x384xf32> to vector<8x384xf32>
    %cst_129 = arith.constant dense<0.000000e+00> : vector<8x384xf32>
    %374 = tpu.matmul %370, %40, %cst_129 {dimension_numbers = #tpu.dot_dimension_numbers<[1], [0], [0], [1], [0, 0, 1, 1], [], []>} : vector<8x128xf32>, vector<128x384xf32>, vector<8x384xf32> -> vector<8x384xf32>
    %375 = vector.extract_strided_slice %373 {offsets = [0, 0], sizes = [8, 128], strides = [1, 1]} : vector<8x384xf32> to vector<8x128xf32>
    %376 = vector.extract_strided_slice %374 {offsets = [0, 0], sizes = [8, 128], strides = [1, 1]} : vector<8x384xf32> to vector<8x128xf32>
    %377 = arith.addf %375, %376 : vector<8x128xf32>
    %cst_130 = arith.constant 5.000000e-01 : f32
    %378 = vector.broadcast %cst_130 : f32 to vector<8x128xf32>
    %379 = arith.mulf %378, %377 : vector<8x128xf32>
    %380 = math.tanh %379 : vector<8x128xf32>
    %cst_131 = arith.constant 5.000000e-01 : f32
    %381 = vector.broadcast %cst_131 : f32 to vector<8x128xf32>
    %382 = arith.mulf %381, %380 : vector<8x128xf32>
    %cst_132 = arith.constant 5.000000e-01 : f32
    %383 = vector.broadcast %cst_132 : f32 to vector<8x128xf32>
    %384 = arith.addf %382, %383 : vector<8x128xf32>
    %385 = vector.extract_strided_slice %373 {offsets = [0, 128], sizes = [8, 128], strides = [1, 1]} : vector<8x384xf32> to vector<8x128xf32>
    %386 = vector.extract_strided_slice %374 {offsets = [0, 128], sizes = [8, 128], strides = [1, 1]} : vector<8x384xf32> to vector<8x128xf32>
    %387 = arith.addf %385, %386 : vector<8x128xf32>
    %cst_133 = arith.constant 5.000000e-01 : f32
    %388 = vector.broadcast %cst_133 : f32 to vector<8x128xf32>
    %389 = arith.mulf %388, %387 : vector<8x128xf32>
    %390 = math.tanh %389 : vector<8x128xf32>
    %cst_134 = arith.constant 5.000000e-01 : f32
    %391 = vector.broadcast %cst_134 : f32 to vector<8x128xf32>
    %392 = arith.mulf %391, %390 : vector<8x128xf32>
    %cst_135 = arith.constant 5.000000e-01 : f32
    %393 = vector.broadcast %cst_135 : f32 to vector<8x128xf32>
    %394 = arith.addf %392, %393 : vector<8x128xf32>
    %395 = vector.extract_strided_slice %373 {offsets = [0, 256], sizes = [8, 128], strides = [1, 1]} : vector<8x384xf32> to vector<8x128xf32>
    %396 = vector.extract_strided_slice %374 {offsets = [0, 256], sizes = [8, 128], strides = [1, 1]} : vector<8x384xf32> to vector<8x128xf32>
    %397 = vector.broadcast %41 : vector<1x128xf32> to vector<8x128xf32>
    %398 = arith.addf %396, %397 : vector<8x128xf32>
    %399 = arith.mulf %384, %398 : vector<8x128xf32>
    %400 = arith.addf %395, %399 : vector<8x128xf32>
    %401 = math.tanh %400 : vector<8x128xf32>
    %402 = arith.subf %370, %401 : vector<8x128xf32>
    %403 = arith.mulf %394, %402 : vector<8x128xf32>
    %404 = arith.addf %401, %403 : vector<8x128xf32>
    %405 = vector.extract_strided_slice %39 {offsets = [40, 0], sizes = [8, 384], strides = [1, 1]} : vector<64x384xf32> to vector<8x384xf32>
    %cst_136 = arith.constant dense<0.000000e+00> : vector<8x384xf32>
    %406 = tpu.matmul %404, %40, %cst_136 {dimension_numbers = #tpu.dot_dimension_numbers<[1], [0], [0], [1], [0, 0, 1, 1], [], []>} : vector<8x128xf32>, vector<128x384xf32>, vector<8x384xf32> -> vector<8x384xf32>
    %407 = vector.extract_strided_slice %405 {offsets = [0, 0], sizes = [8, 128], strides = [1, 1]} : vector<8x384xf32> to vector<8x128xf32>
    %408 = vector.extract_strided_slice %406 {offsets = [0, 0], sizes = [8, 128], strides = [1, 1]} : vector<8x384xf32> to vector<8x128xf32>
    %409 = arith.addf %407, %408 : vector<8x128xf32>
    %cst_137 = arith.constant 5.000000e-01 : f32
    %410 = vector.broadcast %cst_137 : f32 to vector<8x128xf32>
    %411 = arith.mulf %410, %409 : vector<8x128xf32>
    %412 = math.tanh %411 : vector<8x128xf32>
    %cst_138 = arith.constant 5.000000e-01 : f32
    %413 = vector.broadcast %cst_138 : f32 to vector<8x128xf32>
    %414 = arith.mulf %413, %412 : vector<8x128xf32>
    %cst_139 = arith.constant 5.000000e-01 : f32
    %415 = vector.broadcast %cst_139 : f32 to vector<8x128xf32>
    %416 = arith.addf %414, %415 : vector<8x128xf32>
    %417 = vector.extract_strided_slice %405 {offsets = [0, 128], sizes = [8, 128], strides = [1, 1]} : vector<8x384xf32> to vector<8x128xf32>
    %418 = vector.extract_strided_slice %406 {offsets = [0, 128], sizes = [8, 128], strides = [1, 1]} : vector<8x384xf32> to vector<8x128xf32>
    %419 = arith.addf %417, %418 : vector<8x128xf32>
    %cst_140 = arith.constant 5.000000e-01 : f32
    %420 = vector.broadcast %cst_140 : f32 to vector<8x128xf32>
    %421 = arith.mulf %420, %419 : vector<8x128xf32>
    %422 = math.tanh %421 : vector<8x128xf32>
    %cst_141 = arith.constant 5.000000e-01 : f32
    %423 = vector.broadcast %cst_141 : f32 to vector<8x128xf32>
    %424 = arith.mulf %423, %422 : vector<8x128xf32>
    %cst_142 = arith.constant 5.000000e-01 : f32
    %425 = vector.broadcast %cst_142 : f32 to vector<8x128xf32>
    %426 = arith.addf %424, %425 : vector<8x128xf32>
    %427 = vector.extract_strided_slice %405 {offsets = [0, 256], sizes = [8, 128], strides = [1, 1]} : vector<8x384xf32> to vector<8x128xf32>
    %428 = vector.extract_strided_slice %406 {offsets = [0, 256], sizes = [8, 128], strides = [1, 1]} : vector<8x384xf32> to vector<8x128xf32>
    %429 = vector.broadcast %41 : vector<1x128xf32> to vector<8x128xf32>
    %430 = arith.addf %428, %429 : vector<8x128xf32>
    %431 = arith.mulf %416, %430 : vector<8x128xf32>
    %432 = arith.addf %427, %431 : vector<8x128xf32>
    %433 = math.tanh %432 : vector<8x128xf32>
    %434 = arith.subf %404, %433 : vector<8x128xf32>
    %435 = arith.mulf %426, %434 : vector<8x128xf32>
    %436 = arith.addf %433, %435 : vector<8x128xf32>
    %c40 = arith.constant 40 : index
    %c0_143 = arith.constant 0 : index
    %437 = vector.load %arg15[%c40, %c0_143] : memref<64x256xf32, #tpu.memory_space<vmem>>, vector<8x128xf32>
    tpu.vector_store %arg15[%c40, %c0_143], %404 {strides = array<i32>} : memref<64x256xf32, #tpu.memory_space<vmem>>, vector<8x128xf32>,
    %c40_144 = arith.constant 40 : index
    %c128_145 = arith.constant 128 : index
    %438 = vector.load %arg15[%c40_144, %c128_145] : memref<64x256xf32, #tpu.memory_space<vmem>>, vector<8x128xf32>
    tpu.vector_store %arg15[%c40_144, %c128_145], %436 {strides = array<i32>} : memref<64x256xf32, #tpu.memory_space<vmem>>, vector<8x128xf32>,
    %439 = vector.extract_strided_slice %38 {offsets = [48, 0], sizes = [8, 384], strides = [1, 1]} : vector<64x384xf32> to vector<8x384xf32>
    %cst_146 = arith.constant dense<0.000000e+00> : vector<8x384xf32>
    %440 = tpu.matmul %436, %40, %cst_146 {dimension_numbers = #tpu.dot_dimension_numbers<[1], [0], [0], [1], [0, 0, 1, 1], [], []>} : vector<8x128xf32>, vector<128x384xf32>, vector<8x384xf32> -> vector<8x384xf32>
    %441 = vector.extract_strided_slice %439 {offsets = [0, 0], sizes = [8, 128], strides = [1, 1]} : vector<8x384xf32> to vector<8x128xf32>
    %442 = vector.extract_strided_slice %440 {offsets = [0, 0], sizes = [8, 128], strides = [1, 1]} : vector<8x384xf32> to vector<8x128xf32>
    %443 = arith.addf %441, %442 : vector<8x128xf32>
    %cst_147 = arith.constant 5.000000e-01 : f32
    %444 = vector.broadcast %cst_147 : f32 to vector<8x128xf32>
    %445 = arith.mulf %444, %443 : vector<8x128xf32>
    %446 = math.tanh %445 : vector<8x128xf32>
    %cst_148 = arith.constant 5.000000e-01 : f32
    %447 = vector.broadcast %cst_148 : f32 to vector<8x128xf32>
    %448 = arith.mulf %447, %446 : vector<8x128xf32>
    %cst_149 = arith.constant 5.000000e-01 : f32
    %449 = vector.broadcast %cst_149 : f32 to vector<8x128xf32>
    %450 = arith.addf %448, %449 : vector<8x128xf32>
    %451 = vector.extract_strided_slice %439 {offsets = [0, 128], sizes = [8, 128], strides = [1, 1]} : vector<8x384xf32> to vector<8x128xf32>
    %452 = vector.extract_strided_slice %440 {offsets = [0, 128], sizes = [8, 128], strides = [1, 1]} : vector<8x384xf32> to vector<8x128xf32>
    %453 = arith.addf %451, %452 : vector<8x128xf32>
    %cst_150 = arith.constant 5.000000e-01 : f32
    %454 = vector.broadcast %cst_150 : f32 to vector<8x128xf32>
    %455 = arith.mulf %454, %453 : vector<8x128xf32>
    %456 = math.tanh %455 : vector<8x128xf32>
    %cst_151 = arith.constant 5.000000e-01 : f32
    %457 = vector.broadcast %cst_151 : f32 to vector<8x128xf32>
    %458 = arith.mulf %457, %456 : vector<8x128xf32>
    %cst_152 = arith.constant 5.000000e-01 : f32
    %459 = vector.broadcast %cst_152 : f32 to vector<8x128xf32>
    %460 = arith.addf %458, %459 : vector<8x128xf32>
    %461 = vector.extract_strided_slice %439 {offsets = [0, 256], sizes = [8, 128], strides = [1, 1]} : vector<8x384xf32> to vector<8x128xf32>
    %462 = vector.extract_strided_slice %440 {offsets = [0, 256], sizes = [8, 128], strides = [1, 1]} : vector<8x384xf32> to vector<8x128xf32>
    %463 = vector.broadcast %41 : vector<1x128xf32> to vector<8x128xf32>
    %464 = arith.addf %462, %463 : vector<8x128xf32>
    %465 = arith.mulf %450, %464 : vector<8x128xf32>
    %466 = arith.addf %461, %465 : vector<8x128xf32>
    %467 = math.tanh %466 : vector<8x128xf32>
    %468 = arith.subf %436, %467 : vector<8x128xf32>
    %469 = arith.mulf %460, %468 : vector<8x128xf32>
    %470 = arith.addf %467, %469 : vector<8x128xf32>
    %471 = vector.extract_strided_slice %39 {offsets = [48, 0], sizes = [8, 384], strides = [1, 1]} : vector<64x384xf32> to vector<8x384xf32>
    %cst_153 = arith.constant dense<0.000000e+00> : vector<8x384xf32>
    %472 = tpu.matmul %470, %40, %cst_153 {dimension_numbers = #tpu.dot_dimension_numbers<[1], [0], [0], [1], [0, 0, 1, 1], [], []>} : vector<8x128xf32>, vector<128x384xf32>, vector<8x384xf32> -> vector<8x384xf32>
    %473 = vector.extract_strided_slice %471 {offsets = [0, 0], sizes = [8, 128], strides = [1, 1]} : vector<8x384xf32> to vector<8x128xf32>
    %474 = vector.extract_strided_slice %472 {offsets = [0, 0], sizes = [8, 128], strides = [1, 1]} : vector<8x384xf32> to vector<8x128xf32>
    %475 = arith.addf %473, %474 : vector<8x128xf32>
    %cst_154 = arith.constant 5.000000e-01 : f32
    %476 = vector.broadcast %cst_154 : f32 to vector<8x128xf32>
    %477 = arith.mulf %476, %475 : vector<8x128xf32>
    %478 = math.tanh %477 : vector<8x128xf32>
    %cst_155 = arith.constant 5.000000e-01 : f32
    %479 = vector.broadcast %cst_155 : f32 to vector<8x128xf32>
    %480 = arith.mulf %479, %478 : vector<8x128xf32>
    %cst_156 = arith.constant 5.000000e-01 : f32
    %481 = vector.broadcast %cst_156 : f32 to vector<8x128xf32>
    %482 = arith.addf %480, %481 : vector<8x128xf32>
    %483 = vector.extract_strided_slice %471 {offsets = [0, 128], sizes = [8, 128], strides = [1, 1]} : vector<8x384xf32> to vector<8x128xf32>
    %484 = vector.extract_strided_slice %472 {offsets = [0, 128], sizes = [8, 128], strides = [1, 1]} : vector<8x384xf32> to vector<8x128xf32>
    %485 = arith.addf %483, %484 : vector<8x128xf32>
    %cst_157 = arith.constant 5.000000e-01 : f32
    %486 = vector.broadcast %cst_157 : f32 to vector<8x128xf32>
    %487 = arith.mulf %486, %485 : vector<8x128xf32>
    %488 = math.tanh %487 : vector<8x128xf32>
    %cst_158 = arith.constant 5.000000e-01 : f32
    %489 = vector.broadcast %cst_158 : f32 to vector<8x128xf32>
    %490 = arith.mulf %489, %488 : vector<8x128xf32>
    %cst_159 = arith.constant 5.000000e-01 : f32
    %491 = vector.broadcast %cst_159 : f32 to vector<8x128xf32>
    %492 = arith.addf %490, %491 : vector<8x128xf32>
    %493 = vector.extract_strided_slice %471 {offsets = [0, 256], sizes = [8, 128], strides = [1, 1]} : vector<8x384xf32> to vector<8x128xf32>
    %494 = vector.extract_strided_slice %472 {offsets = [0, 256], sizes = [8, 128], strides = [1, 1]} : vector<8x384xf32> to vector<8x128xf32>
    %495 = vector.broadcast %41 : vector<1x128xf32> to vector<8x128xf32>
    %496 = arith.addf %494, %495 : vector<8x128xf32>
    %497 = arith.mulf %482, %496 : vector<8x128xf32>
    %498 = arith.addf %493, %497 : vector<8x128xf32>
    %499 = math.tanh %498 : vector<8x128xf32>
    %500 = arith.subf %470, %499 : vector<8x128xf32>
    %501 = arith.mulf %492, %500 : vector<8x128xf32>
    %502 = arith.addf %499, %501 : vector<8x128xf32>
    %c48 = arith.constant 48 : index
    %c0_160 = arith.constant 0 : index
    %503 = vector.load %arg15[%c48, %c0_160] : memref<64x256xf32, #tpu.memory_space<vmem>>, vector<8x128xf32>
    tpu.vector_store %arg15[%c48, %c0_160], %470 {strides = array<i32>} : memref<64x256xf32, #tpu.memory_space<vmem>>, vector<8x128xf32>,
    %c48_161 = arith.constant 48 : index
    %c128_162 = arith.constant 128 : index
    %504 = vector.load %arg15[%c48_161, %c128_162] : memref<64x256xf32, #tpu.memory_space<vmem>>, vector<8x128xf32>
    tpu.vector_store %arg15[%c48_161, %c128_162], %502 {strides = array<i32>} : memref<64x256xf32, #tpu.memory_space<vmem>>, vector<8x128xf32>,
    %505 = vector.extract_strided_slice %38 {offsets = [56, 0], sizes = [8, 384], strides = [1, 1]} : vector<64x384xf32> to vector<8x384xf32>
    %cst_163 = arith.constant dense<0.000000e+00> : vector<8x384xf32>
    %506 = tpu.matmul %502, %40, %cst_163 {dimension_numbers = #tpu.dot_dimension_numbers<[1], [0], [0], [1], [0, 0, 1, 1], [], []>} : vector<8x128xf32>, vector<128x384xf32>, vector<8x384xf32> -> vector<8x384xf32>
    %507 = vector.extract_strided_slice %505 {offsets = [0, 0], sizes = [8, 128], strides = [1, 1]} : vector<8x384xf32> to vector<8x128xf32>
    %508 = vector.extract_strided_slice %506 {offsets = [0, 0], sizes = [8, 128], strides = [1, 1]} : vector<8x384xf32> to vector<8x128xf32>
    %509 = arith.addf %507, %508 : vector<8x128xf32>
    %cst_164 = arith.constant 5.000000e-01 : f32
    %510 = vector.broadcast %cst_164 : f32 to vector<8x128xf32>
    %511 = arith.mulf %510, %509 : vector<8x128xf32>
    %512 = math.tanh %511 : vector<8x128xf32>
    %cst_165 = arith.constant 5.000000e-01 : f32
    %513 = vector.broadcast %cst_165 : f32 to vector<8x128xf32>
    %514 = arith.mulf %513, %512 : vector<8x128xf32>
    %cst_166 = arith.constant 5.000000e-01 : f32
    %515 = vector.broadcast %cst_166 : f32 to vector<8x128xf32>
    %516 = arith.addf %514, %515 : vector<8x128xf32>
    %517 = vector.extract_strided_slice %505 {offsets = [0, 128], sizes = [8, 128], strides = [1, 1]} : vector<8x384xf32> to vector<8x128xf32>
    %518 = vector.extract_strided_slice %506 {offsets = [0, 128], sizes = [8, 128], strides = [1, 1]} : vector<8x384xf32> to vector<8x128xf32>
    %519 = arith.addf %517, %518 : vector<8x128xf32>
    %cst_167 = arith.constant 5.000000e-01 : f32
    %520 = vector.broadcast %cst_167 : f32 to vector<8x128xf32>
    %521 = arith.mulf %520, %519 : vector<8x128xf32>
    %522 = math.tanh %521 : vector<8x128xf32>
    %cst_168 = arith.constant 5.000000e-01 : f32
    %523 = vector.broadcast %cst_168 : f32 to vector<8x128xf32>
    %524 = arith.mulf %523, %522 : vector<8x128xf32>
    %cst_169 = arith.constant 5.000000e-01 : f32
    %525 = vector.broadcast %cst_169 : f32 to vector<8x128xf32>
    %526 = arith.addf %524, %525 : vector<8x128xf32>
    %527 = vector.extract_strided_slice %505 {offsets = [0, 256], sizes = [8, 128], strides = [1, 1]} : vector<8x384xf32> to vector<8x128xf32>
    %528 = vector.extract_strided_slice %506 {offsets = [0, 256], sizes = [8, 128], strides = [1, 1]} : vector<8x384xf32> to vector<8x128xf32>
    %529 = vector.broadcast %41 : vector<1x128xf32> to vector<8x128xf32>
    %530 = arith.addf %528, %529 : vector<8x128xf32>
    %531 = arith.mulf %516, %530 : vector<8x128xf32>
    %532 = arith.addf %527, %531 : vector<8x128xf32>
    %533 = math.tanh %532 : vector<8x128xf32>
    %534 = arith.subf %502, %533 : vector<8x128xf32>
    %535 = arith.mulf %526, %534 : vector<8x128xf32>
    %536 = arith.addf %533, %535 : vector<8x128xf32>
    %537 = vector.extract_strided_slice %39 {offsets = [56, 0], sizes = [8, 384], strides = [1, 1]} : vector<64x384xf32> to vector<8x384xf32>
    %cst_170 = arith.constant dense<0.000000e+00> : vector<8x384xf32>
    %538 = tpu.matmul %536, %40, %cst_170 {dimension_numbers = #tpu.dot_dimension_numbers<[1], [0], [0], [1], [0, 0, 1, 1], [], []>} : vector<8x128xf32>, vector<128x384xf32>, vector<8x384xf32> -> vector<8x384xf32>
    %539 = vector.extract_strided_slice %537 {offsets = [0, 0], sizes = [8, 128], strides = [1, 1]} : vector<8x384xf32> to vector<8x128xf32>
    %540 = vector.extract_strided_slice %538 {offsets = [0, 0], sizes = [8, 128], strides = [1, 1]} : vector<8x384xf32> to vector<8x128xf32>
    %541 = arith.addf %539, %540 : vector<8x128xf32>
    %cst_171 = arith.constant 5.000000e-01 : f32
    %542 = vector.broadcast %cst_171 : f32 to vector<8x128xf32>
    %543 = arith.mulf %542, %541 : vector<8x128xf32>
    %544 = math.tanh %543 : vector<8x128xf32>
    %cst_172 = arith.constant 5.000000e-01 : f32
    %545 = vector.broadcast %cst_172 : f32 to vector<8x128xf32>
    %546 = arith.mulf %545, %544 : vector<8x128xf32>
    %cst_173 = arith.constant 5.000000e-01 : f32
    %547 = vector.broadcast %cst_173 : f32 to vector<8x128xf32>
    %548 = arith.addf %546, %547 : vector<8x128xf32>
    %549 = vector.extract_strided_slice %537 {offsets = [0, 128], sizes = [8, 128], strides = [1, 1]} : vector<8x384xf32> to vector<8x128xf32>
    %550 = vector.extract_strided_slice %538 {offsets = [0, 128], sizes = [8, 128], strides = [1, 1]} : vector<8x384xf32> to vector<8x128xf32>
    %551 = arith.addf %549, %550 : vector<8x128xf32>
    %cst_174 = arith.constant 5.000000e-01 : f32
    %552 = vector.broadcast %cst_174 : f32 to vector<8x128xf32>
    %553 = arith.mulf %552, %551 : vector<8x128xf32>
    %554 = math.tanh %553 : vector<8x128xf32>
    %cst_175 = arith.constant 5.000000e-01 : f32
    %555 = vector.broadcast %cst_175 : f32 to vector<8x128xf32>
    %556 = arith.mulf %555, %554 : vector<8x128xf32>
    %cst_176 = arith.constant 5.000000e-01 : f32
    %557 = vector.broadcast %cst_176 : f32 to vector<8x128xf32>
    %558 = arith.addf %556, %557 : vector<8x128xf32>
    %559 = vector.extract_strided_slice %537 {offsets = [0, 256], sizes = [8, 128], strides = [1, 1]} : vector<8x384xf32> to vector<8x128xf32>
    %560 = vector.extract_strided_slice %538 {offsets = [0, 256], sizes = [8, 128], strides = [1, 1]} : vector<8x384xf32> to vector<8x128xf32>
    %561 = vector.broadcast %41 : vector<1x128xf32> to vector<8x128xf32>
    %562 = arith.addf %560, %561 : vector<8x128xf32>
    %563 = arith.mulf %548, %562 : vector<8x128xf32>
    %564 = arith.addf %559, %563 : vector<8x128xf32>
    %565 = math.tanh %564 : vector<8x128xf32>
    %566 = arith.subf %536, %565 : vector<8x128xf32>
    %567 = arith.mulf %558, %566 : vector<8x128xf32>
    %568 = arith.addf %565, %567 : vector<8x128xf32>
    %c56 = arith.constant 56 : index
    %c0_177 = arith.constant 0 : index
    %569 = vector.load %arg15[%c56, %c0_177] : memref<64x256xf32, #tpu.memory_space<vmem>>, vector<8x128xf32>
    tpu.vector_store %arg15[%c56, %c0_177], %536 {strides = array<i32>} : memref<64x256xf32, #tpu.memory_space<vmem>>, vector<8x128xf32>,
    %c56_178 = arith.constant 56 : index
    %c128_179 = arith.constant 128 : index
    %570 = vector.load %arg15[%c56_178, %c128_179] : memref<64x256xf32, #tpu.memory_space<vmem>>, vector<8x128xf32>
    tpu.vector_store %arg15[%c56_178, %c128_179], %568 {strides = array<i32>} : memref<64x256xf32, #tpu.memory_space<vmem>>, vector<8x128xf32>,
    return
  }
  func.func @transform_0(%arg0: i32) -> (i32, i32) {
    %c0_i32 = arith.constant 0 : i32
    %c0_i32_0 = arith.constant 0 : i32
    return %arg0, %c0_i32 : i32, i32
  }
  func.func @transform_1(%arg0: i32) -> (i32, i32) {
    %c0_i32 = arith.constant 0 : i32
    %c0_i32_0 = arith.constant 0 : i32
    return %arg0, %c0_i32 : i32, i32
  }
  func.func @transform_2(%arg0: i32) -> (i32, i32) {
    %c0_i32 = arith.constant 0 : i32
    %c0_i32_0 = arith.constant 0 : i32
    %c0_i32_1 = arith.constant 0 : i32
    return %c0_i32, %c0_i32_0 : i32, i32
  }
  func.func @transform_3(%arg0: i32) -> (i32, i32) {
    %c0_i32 = arith.constant 0 : i32
    %c0_i32_0 = arith.constant 0 : i32
    %c0_i32_1 = arith.constant 0 : i32
    return %c0_i32, %c0_i32_0 : i32, i32
  }
  func.func @transform_4(%arg0: i32) -> (i32, i32) {
    %c0_i32 = arith.constant 0 : i32
    %c0_i32_0 = arith.constant 0 : i32
    %c0_i32_1 = arith.constant 0 : i32
    return %c0_i32, %c0_i32_0 : i32, i32
  }
  func.func @transform_5(%arg0: i32) -> (i32, i32) {
    %c0_i32 = arith.constant 0 : i32
    %c0_i32_0 = arith.constant 0 : i32
    %c0_i32_1 = arith.constant 0 : i32
    return %c0_i32, %c0_i32_0 : i32, i32
  }
  func.func @transform_6(%arg0: i32) -> (i32, i32) {
    %c0_i32 = arith.constant 0 : i32
    %c0_i32_0 = arith.constant 0 : i32
    %c0_i32_1 = arith.constant 0 : i32
    return %c0_i32, %c0_i32_0 : i32, i32
  }
  func.func @transform_7(%arg0: i32) -> (i32, i32) {
    %c0_i32 = arith.constant 0 : i32
    %c0_i32_0 = arith.constant 0 : i32
    %c0_i32_1 = arith.constant 0 : i32
    return %c0_i32, %c0_i32_0 : i32, i32
  }
  func.func @transform_8(%arg0: i32) -> (i32, i32) {
    %c0_i32 = arith.constant 0 : i32
    %c0_i32_0 = arith.constant 0 : i32
    %c0_i32_1 = arith.constant 0 : i32
    return %c0_i32, %c0_i32_0 : i32, i32
  }
  func.func @transform_9(%arg0: i32) -> (i32, i32) {
    %c0_i32 = arith.constant 0 : i32
    %c0_i32_0 = arith.constant 0 : i32
    %c0_i32_1 = arith.constant 0 : i32
    return %c0_i32, %c0_i32_0 : i32, i32
  }
  func.func @transform_10(%arg0: i32) -> (i32, i32) {
    %c0_i32 = arith.constant 0 : i32
    %c0_i32_0 = arith.constant 0 : i32
    %c0_i32_1 = arith.constant 0 : i32
    return %c0_i32, %c0_i32_0 : i32, i32
  }
  func.func @transform_11(%arg0: i32) -> (i32, i32) {
    %c0_i32 = arith.constant 0 : i32
    %c0_i32_0 = arith.constant 0 : i32
    %c0_i32_1 = arith.constant 0 : i32
    return %c0_i32, %c0_i32_0 : i32, i32
  }
  func.func @transform_12(%arg0: i32) -> (i32, i32) {
    %c0_i32 = arith.constant 0 : i32
    %c0_i32_0 = arith.constant 0 : i32
    %c0_i32_1 = arith.constant 0 : i32
    return %c0_i32, %c0_i32_0 : i32, i32
  }
  func.func @transform_13(%arg0: i32) -> (i32, i32) {
    %c0_i32 = arith.constant 0 : i32
    %c0_i32_0 = arith.constant 0 : i32
    %c0_i32_1 = arith.constant 0 : i32
    return %c0_i32, %c0_i32_0 : i32, i32
  }
  func.func @transform_14(%arg0: i32) -> (i32, i32) {
    %c0_i32 = arith.constant 0 : i32
    %c0_i32_0 = arith.constant 0 : i32
    return %arg0, %c0_i32 : i32, i32
  }
}

</mosaic_0001>

<bundles_post_ra>
// kernel: lpcnet_feature_net.1
= control target key start
LH: loop header
LB: loop body
LE: loop exit
PB: predicated region body
PF: predicated region fallthrough
CT: control target
= control target key end

     0   :  { %19 = vsyncpa [#allocation4], 0  ;;  %s8137_s0 = inlined_call_operand.vmem [shape: f32[64,128], index: 0, kind: input, shape index: {}]   ;;  %s8138_s1 = inlined_call_operand.vmem [shape: f32[8,128], index: 1, kind: input, shape index: {}]   ;;  %s8139_s2 = inlined_call_operand.vmem [shape: f32[128,128], index: 2, kind: input, shape index: {}]   ;;  %s8140_s3 = inlined_call_operand.hbm [shape: f32[128,128], index: 3, kind: input, shape index: {}]   ;;  %s8141_s4 = inlined_call_operand.hbm [shape: f32[128,128], index: 4, kind: input, shape index: {}]   ;;  %s8142_s5 = inlined_call_operand.hbm [shape: f32[128,128], index: 5, kind: input, shape index: {}]   ;;  %s8143_s6 = inlined_call_operand.vmem [shape: f32[128,256], index: 6, kind: input, shape index: {}]   ;;  %s8144_s7 = inlined_call_operand.hbm [shape: f32[256,768], index: 7, kind: input, shape index: {}]   ;;  %s8145_s8 = inlined_call_operand.vmem [shape: f32[128,384], index: 8, kind: input, shape index: {}]   ;;  %s8146_s9 = inlined_call_operand.vmem [shape: f32[1,128], index: 9, kind: input, shape index: {}]   ;;  %s8147_s10 = inlined_call_operand.vmem [shape: f32[1,128], index: 10, kind: input, shape index: {}]   ;;  %s8148_s11 = inlined_call_operand.vmem [shape: f32[1,256], index: 11, kind: input, shape index: {}]   ;;  %s8149_s12 = inlined_call_operand.vmem [shape: f32[1,768], index: 12, kind: input, shape index: {}]   ;;  %s8150_s13 = inlined_call_operand.vmem [shape: f32[1,128], index: 13, kind: input, shape index: {}]   ;;  %s8151_s14 = inlined_call_operand.vmem [shape: f32[64,256], index: 14, kind: output, shape index: {}]  }
   0x1   :  { %20 = vsyncpa [#allocation6], 0 }
   0x2   :  { %21 = vsyncpa [#allocation9], 0  ;;  %s6672_s29 = smov [#allocation5]   ;;  %s6673_s15 = smov [#allocation3]  }
   0x3   :  { %s45_s30 = sshll.u32 %s6672_s29, 4  ;;  %s33_s16 = sshll.u32 %s6673_s15, 4  ;;  %s46_s30 = int_to_ptr.vmem [resolvable:$true] %s45_s30  ;;  %s6758_s16 = int_to_ptr.vmem [resolvable:$true] %s33_s16 }
   0x4   :  { %s6578_s19 = scalar_lea.hbm %s8141_s4, 2048 }
   0x5   :  { %p6579_p0 = scmp.ne.s32.totalorder %s8141_s4, %s6578_s19  ;;  %p6582_p1 = scmp.lt.u32.totalorder %s6578_s19, %s8141_s4 }
   0x7   :  { %p6584_p2 = pnand %p6582_p1, %p6579_p0 }
   0x9   :  { %6587 = shalt.err (!%p6584_p2)
}
   0xa   :  { %s6588_s24 = scalar_lea.vmem %s46_s30, 2048  ;;  %p6593_p4 = scmp.lt.s32.totalorder %s46_s30, %s46_s30 }
   0xb   :  { %p6589_p3 = scmp.ne.s32.totalorder %s46_s30, %s6588_s24  ;;  %p6594_p5 = scmp.lt.s32.totalorder %s6588_s24, %s6588_s24 }
   0xd   :  { %p6595_p6 = por %p6594_p5, %p6593_p4 }
   0xf   :  { %p6596_p7 = pnand %p6595_p6, %p6589_p3 }
  0x11   :  { %6599 = shalt.err (!%p6596_p7)
}
  0x12   :  { %s6674_s25 = smov 128   ;;  %s6675_s26 = smov 8  }
  0x13   :  { %51 = dma.hbm_to_vmem [thread:$0]  %s8141_s4, 2048, %s46_s30, [#allocation6], %s6674_s25, %s6674_s25, %s6675_s26  }
  0x14   :  { %s6600_s17 = scalar_lea.hbm %s8140_s3, 2048 }
  0x15   :  { %p6601_p8 = scmp.ne.s32.totalorder %s8140_s3, %s6600_s17  ;;  %p6604_p9 = scmp.lt.u32.totalorder %s6600_s17, %s8140_s3 }
  0x17   :  { %p6606_p10 = pnand %p6604_p9, %p6601_p8 }
  0x19   :  { %6609 = shalt.err (!%p6606_p10)
}
  0x1a   :  { %s6610_s22 = scalar_lea.vmem %s6758_s16, 2048  ;;  %p6615_p12 = scmp.lt.s32.totalorder %s6758_s16, %s6758_s16 }
  0x1b   :  { %p6611_p11 = scmp.ne.s32.totalorder %s6758_s16, %s6610_s22  ;;  %p6616_p13 = scmp.lt.s32.totalorder %s6610_s22, %s6610_s22 }
  0x1d   :  { %p6617_p0 = por %p6616_p13, %p6615_p12 }
  0x1f   :  { %p6618_p1 = pnand %p6617_p0, %p6611_p11 }
  0x21   :  { %6621 = shalt.err (!%p6618_p1)
}
  0x22   :  { %39 = dma.hbm_to_vmem [thread:$0]  %s8140_s3, 2048, %s6758_s16, [#allocation4], %s6674_s25, %s6674_s25, %s6675_s26  }
  0x23   :  { %s6676_s23 = smov [#allocation7]   ;;  %s6677_s27 = smov [#allocation8]  }
  0x24   :  { %s57_s24 = sshll.u32 %s6676_s23, 4  ;;  %s71_s28 = sshll.u32 %s6677_s27, 4  ;;  %s58_s24 = int_to_ptr.vmem [resolvable:$true] %s57_s24  ;;  %s6795_s28 = int_to_ptr.vmem [resolvable:$true] %s71_s28 }
  0x25   :  { %s6622_s17 = scalar_lea.hbm %s8142_s5, 2048 }
  0x26   :  { %p6623_p2 = scmp.ne.s32.totalorder %s8142_s5, %s6622_s17  ;;  %p6626_p3 = scmp.lt.u32.totalorder %s6622_s17, %s8142_s5 }
  0x28   :  { %p6628_p4 = pnand %p6626_p3, %p6623_p2 }
  0x2a   :  { %6631 = shalt.err (!%p6628_p4)
}
  0x2b   :  { %s6632_s3 = scalar_lea.vmem %s58_s24, 2048  ;;  %p6637_p6 = scmp.lt.s32.totalorder %s58_s24, %s58_s24 }
  0x2c   :  { %p6633_p5 = scmp.ne.s32.totalorder %s58_s24, %s6632_s3  ;;  %p6638_p7 = scmp.lt.s32.totalorder %s6632_s3, %s6632_s3 }
  0x2e   :  { %p6639_p8 = por %p6638_p7, %p6637_p6 }
  0x30   :  { %p6640_p9 = pnand %p6639_p8, %p6633_p5 }
  0x32   :  { %6643 = shalt.err (!%p6640_p9)
}
  0x33   :  { %63 = dma.hbm_to_vmem [thread:$0]  %s8142_s5, 2048, %s58_s24, [#allocation6], %s6674_s25, %s6674_s25, %s6675_s26  }
  0x34   :  { %s6644_s23 = scalar_lea.hbm %s8144_s7, 24576 }
  0x35   :  { %p6645_p10 = scmp.ne.s32.totalorder %s8144_s7, %s6644_s23  ;;  %p6648_p11 = scmp.lt.u32.totalorder %s6644_s23, %s8144_s7 }
  0x37   :  { %p6650_p12 = pnand %p6648_p11, %p6645_p10 }
  0x39   :  { %6653 = shalt.err (!%p6650_p12)
}
  0x3a   :  { %s6654_s18 = scalar_lea.vmem %s6795_s28, 24576  ;;  %p6659_p0 = scmp.lt.s32.totalorder %s6795_s28, %s6795_s28 }
  0x3b   :  { %p6655_p13 = scmp.ne.s32.totalorder %s6795_s28, %s6654_s18  ;;  %p6660_p1 = scmp.lt.s32.totalorder %s6654_s18, %s6654_s18 }
  0x3d   :  { %p6661_p2 = por %p6660_p1, %p6659_p0 }
  0x3f   :  { %p6662_p3 = pnand %p6661_p2, %p6655_p13 }
  0x41   :  { %6665 = shalt.err (!%p6662_p3)
}
  0x42   :  { %s6678_s5 = smov 768   ;;  %s6679_s25 = smov 48  }
  0x43   :  { %77 = dma.hbm_to_vmem [thread:$0]  %s8144_s7, 24576, %s6795_s28, [#allocation9], %s6678_s5, %s6678_s5, %s6679_s25  }
  0x44   :  { %6666 = dma.done.wait [#allocation4], 2048  }
  0x45   :  { %6667 = vsyncadd [#allocation4], 4294965248 }
  0x46   :  { %6668 = dma.done.wait [#allocation6], 4096  }
  0x47   :  { %6669 = vsyncadd [#allocation6], 4294963200 }
  0x48   :  { %6670 = dma.done.wait [#allocation9], 24576  }
  0x49   :  { %6671 = vsyncadd [#allocation9], 4294942720  ;;  %v110_v0 = vld [vmem:[%s8139_s2] sm:$0xff]  ;;  %v111_v1 = vld [vmem:[%s8139_s2 + $0x8] sm:$0xff]  ;;  %vm6682_vm0 = vmmov 0  }
  0x4a   :  { %v112_v2 = vld [vmem:[%s8139_s2 + $0x10] sm:$0xff]  ;;  %v5126_v3 = vpack.c.bf16 %v111_v1, %v110_v0  ;;  %v113_v4 = vld [vmem:[%s8139_s2 + $0x18] sm:$0xff]  ;;  %v114_v6 = vld [vmem:[%s8139_s2 + $0x20] sm:$0xff] }
  0x4b   :  { %v5130_v5 = vpack.c.bf16 %v113_v4, %v112_v2  ;;  %v115_v7 = vld [vmem:[%s8139_s2 + $0x28] sm:$0xff]  ;;  %v102_v9 = vld [vmem:[%s8137_s0] sm:$0xff]  ;;  %v116_v10 = vld [vmem:[%s8139_s2 + $0x30] sm:$0xff] }
  0x4c   :  { %5127 = vmatprep.subr.bf16.mxu0 %v5126_v3  ;;  %v5134_v8 = vpack.c.bf16 %v115_v7, %v114_v6  ;;  %v117_v11 = vld [vmem:[%s8139_s2 + $0x38] sm:$0xff]  ;;  %4422 = vmatprep.mubr.f32.mxu0 %v102_v9  ;;  %v262_v12 = vld [vmem:[#allocation5] sm:$0xff]  ;;  %v263_v13 = vld [vmem:[#allocation5 + $0x8] sm:$0xff] }
  0x4d   :  { %5129 = vmatpush3.bf16.msra.mxu0 %v5126_v3  ;;  %v5138_v14 = vpack.c.bf16 %v117_v11, %v116_v10  ;;  %v5158_v15 = vpack.c.bf16 %v263_v13, %v262_v12  ;;  %v264_v16 = vld [vmem:[#allocation5 + $0x10] sm:$0xff]  ;;  %v265_v17 = vld [vmem:[#allocation5 + $0x18] sm:$0xff]  ;;  %v118_v18 = vld [vmem:[%s8139_s2 + $0x40] sm:$0xff] }
  0x4e   :  { %5131 = vmatprep.subr.bf16.mxu0 %v5130_v5  ;;  %v119_v19 = vld [vmem:[%s8139_s2 + $0x48] sm:$0xff]  ;;  %v5162_v20 = vpack.c.bf16 %v265_v17, %v264_v16  ;;  %v266_v21 = vld [vmem:[#allocation5 + $0x20] sm:$0xff]  ;;  %v120_v24 = vld [vmem:[%s8139_s2 + $0x50] sm:$0xff] }
  0x4f   :  { %5159 = vmatprep.subr.bf16.mxu1 %v5158_v15  ;;  %v267_v22 = vld [vmem:[#allocation5 + $0x28] sm:$0xff]  ;;  %v5142_v23 = vpack.c.bf16 %v119_v19, %v118_v18  ;;  %v121_v26 = vld [vmem:[%s8139_s2 + $0x58] sm:$0xff]  ;;  %v268_v27 = vld [vmem:[#allocation5 + $0x30] sm:$0xff] }
  0x50   :  { %5161 = vmatpush3.bf16.msra.mxu1 %v5158_v15  ;;  %v5166_v25 = vpack.c.bf16 %v267_v22, %v266_v21  ;;  %v269_v28 = vld [vmem:[#allocation5 + $0x38] sm:$0xff]  ;;  %v5146_v29 = vpack.c.bf16 %v121_v26, %v120_v24  ;;  %v122_v30 = vld [vmem:[%s8139_s2 + $0x60] sm:$0xff]  ;;  %v123_v32 = vld [vmem:[%s8139_s2 + $0x68] sm:$0xff] }
  0x51   :  { %5133 = vmatpush3.bf16.msra.mxu0 %v5130_v5  ;;  %5163 = vmatprep.subr.bf16.mxu1 %v5162_v20  ;;  %v5170_v31 = vpack.c.bf16 %v269_v28, %v268_v27  ;;  %v270_v33 = vld [vmem:[#allocation5 + $0x40] sm:$0xff]  ;;  %v271_v34 = vld [vmem:[#allocation5 + $0x48] sm:$0xff]  ;;  %v5150_v35 = vpack.c.bf16 %v123_v32, %v122_v30  ;;  %v124_v37 = vld [vmem:[%s8139_s2 + $0x70] sm:$0xff] }
  0x52   :  { %5135 = vmatprep.subr.bf16.mxu0 %v5134_v8  ;;  %v5174_v36 = vpack.c.bf16 %v271_v34, %v270_v33  ;;  %v125_v38 = vld [vmem:[%s8139_s2 + $0x78] sm:$0xff]  ;;  %v382_v40 = vld [vmem:[#allocation3] sm:$0xff]  ;;  %v383_v41 = vld [vmem:[#allocation3 + $0x8] sm:$0xff] }
  0x53   :  { %v5154_v39 = vpack.c.bf16 %v125_v38, %v124_v37  ;;  %v5190_v42 = vpack.c.bf16 %v383_v41, %v382_v40  ;;  %v384_v43 = vld [vmem:[#allocation3 + $0x10] sm:$0xff]  ;;  %v385_v44 = vld [vmem:[#allocation3 + $0x18] sm:$0xff]  ;;  %v103_v45 = vld [vmem:[%s8137_s0 + $0x8] sm:$0xff] }
  0x54   :  { %5165 = vmatpush3.bf16.msra.mxu1 %v5162_v20  ;;  %v104_v46 = vld [vmem:[%s8137_s0 + $0x10] sm:$0xff]  ;;  %v5194_v47 = vpack.c.bf16 %v385_v44, %v384_v43  ;;  %v386_v48 = vld [vmem:[#allocation3 + $0x20] sm:$0xff]  ;;  %v387_v49 = vld [vmem:[#allocation3 + $0x28] sm:$0xff] }
  0x55   :  { %5137 = vmatpush3.bf16.msra.mxu0 %v5134_v8  ;;  %5167 = vmatprep.subr.bf16.mxu1 %v5166_v25  ;;  %v105_v50 = vld [vmem:[%s8137_s0 + $0x18] sm:$0xff]  ;;  %v106_v51 = vld [vmem:[%s8137_s0 + $0x20] sm:$0xff]  ;;  %v5198_v52 = vpack.c.bf16 %v387_v49, %v386_v48  ;;  %v388_v53 = vld [vmem:[#allocation3 + $0x30] sm:$0xff] }
  0x56   :  { %5139 = vmatprep.subr.bf16.mxu0 %v5138_v14  ;;  %v389_v54 = vld [vmem:[#allocation3 + $0x38] sm:$0xff]  ;;  %v107_v55 = vld [vmem:[%s8137_s0 + $0x28] sm:$0xff]  ;;  %v108_v56 = vld [vmem:[%s8137_s0 + $0x30] sm:$0xff] }
  0x57   :  { %v5202_v57 = vpack.c.bf16 %v389_v54, %v388_v53  ;;  %v109_v58 = vld [vmem:[%s8137_s0 + $0x38] sm:$0xff]  ;;  %v390_v59 = vld [vmem:[#allocation3 + $0x40] sm:$0xff]  ;;  %v391_v60 = vld [vmem:[#allocation3 + $0x48] sm:$0xff] }
  0x58   :  { %5169 = vmatpush3.bf16.msra.mxu1 %v5166_v25  ;;  %v5206_v61 = vpack.c.bf16 %v391_v60, %v390_v59  ;;  %v272_v62 = vld [vmem:[#allocation5 + $0x50] sm:$0xff]  ;;  %v273_v63 = vld [vmem:[#allocation5 + $0x58] sm:$0xff]  ;;  %v274_v4 = vld [vmem:[#allocation5 + $0x60] sm:$0xff] }
  0x59   :  { %5141 = vmatpush3.bf16.msra.mxu0 %v5138_v14  ;;  %5171 = vmatprep.subr.bf16.mxu1 %v5170_v31  ;;  %v5178_v0 = vpack.c.bf16 %v273_v63, %v272_v62  ;;  %v392_v1 = vld [vmem:[#allocation3 + $0x50] sm:$0xff]  ;;  %v393_v2 = vld [vmem:[#allocation3 + $0x58] sm:$0xff]  ;;  %v275_v5 = vld [vmem:[#allocation5 + $0x68] sm:$0xff] }
  0x5a   :  { %5143 = vmatprep.subr.bf16.mxu0 %v5142_v23  ;;  %v5210_v3 = vpack.c.bf16 %v393_v2, %v392_v1  ;;  %v5182_v6 = vpack.c.bf16 %v275_v5, %v274_v4  ;;  %v394_v7 = vld [vmem:[#allocation3 + $0x60] sm:$0xff]  ;;  %v395_v8 = vld [vmem:[#allocation3 + $0x68] sm:$0xff]  ;;  %v276_v10 = vld [vmem:[#allocation5 + $0x70] sm:$0xff] }
  0x5b   :  { %v5214_v9 = vpack.c.bf16 %v395_v8, %v394_v7  ;;  %v277_v11 = vld [vmem:[#allocation5 + $0x78] sm:$0xff]  ;;  %v396_v13 = vld [vmem:[#allocation3 + $0x70] sm:$0xff]  ;;  %v246_v16 = vld [vmem:[#allocation7] sm:$0xff] }
  0x5c   :  { %5173 = vmatpush3.bf16.msra.mxu1 %v5170_v31  ;;  %v5186_v12 = vpack.c.bf16 %v277_v11, %v276_v10  ;;  %v397_v14 = vld [vmem:[#allocation3 + $0x78] sm:$0xff]  ;;  %v247_v17 = vld [vmem:[#allocation7 + $0x8] sm:$0xff]  ;;  %v4019_v19 = vld [vmem:[%s8146_s9] ss:$0 sm:$0xff] }
  0x5d   :  { %5145 = vmatpush3.bf16.msra.mxu0 %v5142_v23  ;;  %5175 = vmatprep.subr.bf16.mxu1 %v5174_v36  ;;  %v5218_v15 = vpack.c.bf16 %v397_v14, %v396_v13  ;;  %v5222_v18 = vpack.c.bf16 %v247_v17, %v246_v16  ;;  %v248_v32 = vld [vmem:[#allocation7 + $0x10] sm:$0xff]  ;;  %v249_v33 = vld [vmem:[#allocation7 + $0x18] sm:$0xff]  ;;  %v250_v41 = vld [vmem:[#allocation7 + $0x20] sm:$0xff] }
  0x5e   :  { %5147 = vmatprep.subr.bf16.mxu0 %v5146_v29  ;;  %v258_v59 = vld [vmem:[#allocation7 + $0x60] sm:$0xff]  ;;  %v259_v60 = vld [vmem:[#allocation7 + $0x68] sm:$0xff]  ;;  %v260_v62 = vld [vmem:[#allocation7 + $0x70] sm:$0xff] }
  0x5f   :  { %v261_v63 = vld [vmem:[#allocation7 + $0x78] sm:$0xff]  ;;  %v677_v1 = vld [vmem:[%s8143_s6 + $0x8] sm:$0xff]  ;;  %v678_v5 = vld [vmem:[%s8143_s6 + $0x10] sm:$0xff] }
  0x60   :  { %5177 = vmatpush3.bf16.msra.mxu1 %v5174_v36  ;;  %v679_v2 = vld [vmem:[%s8143_s6 + $0x18] sm:$0xff]  ;;  %v681_v7 = vld [vmem:[%s8143_s6 + $0x28] sm:$0xff]  ;;  %v682_v11 = vld [vmem:[%s8143_s6 + $0x30] sm:$0xff] }
  0x61   :  { %5149 = vmatpush3.bf16.msra.mxu0 %v5146_v29  ;;  %5179 = vmatprep.subr.bf16.mxu1 %v5178_v0  ;;  %v5254_v4 = vpack.c.bf16 %v679_v2, %v677_v1  ;;  %v683_v8 = vld [vmem:[%s8143_s6 + $0x38] sm:$0xff]  ;;  %v685_v13 = vld [vmem:[%s8143_s6 + $0x48] sm:$0xff]  ;;  %v686_v17 = vld [vmem:[%s8143_s6 + $0x50] sm:$0xff] }
  0x62   :  { %5151 = vmatprep.subr.bf16.mxu0 %v5150_v35  ;;  %v5258_v10 = vpack.c.bf16 %v683_v8, %v681_v7  ;;  %v687_v14 = vld [vmem:[%s8143_s6 + $0x58] sm:$0xff]  ;;  %v874_v1 = vld [vmem:[#allocation8 + $0xc8] sm:$0xff] }
  0x63   :  { %v5262_v16 = vpack.c.bf16 %v687_v14, %v685_v13  ;;  %v880_v2 = vld [vmem:[#allocation8 + $0xf8] sm:$0xff]  ;;  %v886_v7 = vld [vmem:[#allocation8 + $0x128] sm:$0xff] }
  0x64   :  { %5181 = vmatpush3.bf16.msra.mxu1 %v5178_v0  ;;  %v5250_v0 = vpack.c.bf16 %v261_v63, %v260_v62  ;;  %v867_v62 = vld [vmem:[#allocation8 + $0x90] sm:$0xff]  ;;  %v892_v8 = vld [vmem:[#allocation8 + $0x158] sm:$0xff] }
  0x65   :  { %5153 = vmatpush3.bf16.msra.mxu0 %v5150_v35  ;;  %5183 = vmatprep.subr.bf16.mxu1 %v5182_v6  ;;  %v904_v13 = vld [vmem:[#allocation8 + $0x1b8] sm:$0xff] }
  0x66   :  { %5155 = vmatprep.subr.bf16.mxu0 %v5154_v39 }
  0x68   :  { %5185 = vmatpush3.bf16.msra.mxu1 %v5182_v6 }
  0x69   :  { %5157 = vmatpush3.bf16.msra.mxu0 %v5154_v39  ;;  %5187 = vmatprep.subr.bf16.mxu1 %v5186_v12  ;;  %v5226_v39 = vpack.c.bf16 %v249_v33, %v248_v32  ;;  %v699_v32 = vld [vmem:[%s8143_s6 + $0xb8] sm:$0xff] }
  0x6a   :  { %5191 = vmatprep.subr.bf16.mxu0 %v5190_v42 }
  0x6c   :  { %4423 = vmatmul.mubr.f32.vlgmr.msra.gmra.mrb[0].mxu0 %v103_v45  ;;  %5189 = vmatpush3.bf16.msra.mxu1 %v5186_v12 }
  0x6d   :  { %4425 = vmatprep.mubr.f32.mxu0 %v104_v46  ;;  %5193 = vmatpush3.bf16.msra.mxu0 %v5190_v42  ;;  %v251_v42 = vld [vmem:[#allocation7 + $0x28] sm:$0xff]  ;;  %v252_v46 = vld [vmem:[#allocation7 + $0x30] sm:$0xff] }
  0x6e   :  { %5195 = vmatprep.subr.bf16.mxu0 %v5194_v47  ;;  %5223 = vmatprep.subr.bf16.mxu1 %v5222_v18  ;;  %v5230_v45 = vpack.c.bf16 %v251_v42, %v250_v41  ;;  %v702_v41 = vld [vmem:[%s8143_s6 + $0xd0] sm:$0xff] }
  0x70   :  { %4426 = vmatmul.mubr.f32.gmra.mrb[2].mxu0 %v105_v50 }
  0x71   :  { %4428 = vmatprep.mubr.f32.mxu0 %v106_v51  ;;  %5197 = vmatpush3.bf16.msra.mxu0 %v5194_v47  ;;  %v253_v47 = vld [vmem:[#allocation7 + $0x38] sm:$0xff]  ;;  %v254_v51 = vld [vmem:[#allocation7 + $0x40] sm:$0xff] }
  0x72   :  { %5199 = vmatprep.subr.bf16.mxu0 %v5198_v52  ;;  %v5234_v50 = vpack.c.bf16 %v253_v47, %v252_v46  ;;  %v704_v46 = vld [vmem:[%s8143_s6 + $0xe0] sm:$0xff]  ;;  %v706_v47 = vld [vmem:[%s8143_s6 + $0xf0] sm:$0xff] }
  0x74   :  { %4429 = vmatmul.mubr.f32.gmra.mrb[4].mxu0 %v107_v55 }
  0x75   :  { %4431 = vmatprep.mubr.f32.mxu0 %v108_v56  ;;  %5201 = vmatpush3.bf16.msra.mxu0 %v5198_v52  ;;  %v255_v52 = vld [vmem:[#allocation7 + $0x48] sm:$0xff]  ;;  %v256_v56 = vld [vmem:[#allocation7 + $0x50] sm:$0xff] }
  0x76   :  { %5203 = vmatprep.subr.bf16.mxu0 %v5202_v57  ;;  %v5238_v55 = vpack.c.bf16 %v255_v52, %v254_v51  ;;  %v856_v51 = vld [vmem:[#allocation8 + $0x38] sm:$0xff]  ;;  %v849_v52 = vld [vmem:[#allocation8] sm:$0xff] }
  0x78   :  { %4432 = vmatmul.mubr.f32.gmra.mrb[6].mxu0 %v109_v58 }
  0x79   :  { %5205 = vmatpush3.bf16.msra.mxu0 %v5202_v57  ;;  %v257_v57 = vld [vmem:[#allocation7 + $0x58] sm:$0xff] }
  0x7a   :  { %5207 = vmatprep.subr.bf16.mxu0 %v5206_v61  ;;  %v5242_v58 = vpack.c.bf16 %v257_v57, %v256_v56  ;;  %v858_v56 = vld [vmem:[#allocation8 + $0x48] sm:$0xff] }
  0x7d   :  { %5209 = vmatpush3.bf16.msra.mxu0 %v5206_v61  ;;  %v5246_v61 = vpack.c.bf16 %v259_v60, %v258_v59  ;;  %v862_v59 = vld [vmem:[#allocation8 + $0x68] sm:$0xff]  ;;  %v868_v60 = vld [vmem:[#allocation8 + $0x98] sm:$0xff] }
  0x7e   :  { %5211 = vmatprep.subr.bf16.mxu0 %v5210_v3  ;;  %v5290_v63 = vpack.c.bf16 %v868_v60, %v862_v59  ;;  %v981_v59 = vld [vmem:[#allocation8 + $0x420] sm:$0xff]  ;;  %v987_v60 = vld [vmem:[#allocation8 + $0x450] sm:$0xff] }
  0x81   :  { %5213 = vmatpush3.bf16.msra.mxu0 %v5210_v3  ;;  %v676_v3 = vld [vmem:[%s8143_s6] sm:$0xff] }
  0x82   :  { %5215 = vmatprep.subr.bf16.mxu0 %v5214_v9  ;;  %v5256_v6 = vpack.c.bf16 %v678_v5, %v676_v3  ;;  %v5294_v3 = vpack.c.bf16 %v880_v2, %v874_v1  ;;  %v879_v5 = vld [vmem:[#allocation8 + $0xf0] sm:$0xff] }
  0x85   :  { %5217 = vmatpush3.bf16.msra.mxu0 %v5214_v9  ;;  %v680_v9 = vld [vmem:[%s8143_s6 + $0x20] sm:$0xff] }
  0x86   :  { %5219 = vmatprep.subr.bf16.mxu0 %v5218_v15  ;;  %v5260_v12 = vpack.c.bf16 %v682_v11, %v680_v9  ;;  %v5298_v9 = vpack.c.bf16 %v892_v8, %v886_v7  ;;  %v891_v11 = vld [vmem:[#allocation8 + $0x150] sm:$0xff] }
  0x89   :  { %5221 = vmatpush3.bf16.msra.mxu0 %v5218_v15  ;;  %v684_v15 = vld [vmem:[%s8143_s6 + $0x40] sm:$0xff] }
  0x8a   :  { %5255 = vmatprep.subr.bf16.mxu0 %v5254_v4  ;;  %v873_v4 = vld [vmem:[#allocation8 + $0xc0] sm:$0xff] }
 0x13f   :  { %v4424_v20 = vpop.f32.mrb[0].mxu0 }
 0x140   :  { %v205_v21 = vadd.f32 %v4424_v20, %v4019_v19  ;;  %v199_v22 = vpop.f32.mrb[1].mxu0  ;;  %v691_v20 = vld [vmem:[%s8143_s6 + $0x78] sm:$0xff] }
 0x141   :  { %v200_v23 = vadd.f32 %v4019_v19, %v199_v22 }
 0x143   :  { %6417 = vtanh.f32 %v200_v23  ;;  %v4427_v24 = vpop.f32.mrb[2].mxu0  ;;  %v690_v23 = vld [vmem:[%s8143_s6 + $0x70] sm:$0xff] }
 0x144   :  { %6419 = vtanh.f32 %v205_v21  ;;  %v215_v25 = vadd.f32 %v4427_v24, %v4019_v19  ;;  %v209_v26 = vpop.f32.mrb[3].mxu0  ;;  %v688_v21 = vld [vmem:[%s8143_s6 + $0x60] sm:$0xff]  ;;  %v693_v24 = vld [vmem:[%s8143_s6 + $0x88] sm:$0xff] }
 0x145   :  { %v210_v27 = vadd.f32 %v4019_v19, %v209_v26  ;;  %v5268_v26 = vpack.c.bf16 %v690_v23, %v688_v21  ;;  %v915_v23 = vld [vmem:[#allocation8 + $0x210] sm:$0xff] }
 0x146   :  { %6421 = vtanh.f32 %v215_v25  ;;  %v695_v25 = vld [vmem:[%s8143_s6 + $0x98] sm:$0xff] }
 0x147   :  { %6423 = vtanh.f32 %v210_v27  ;;  %v4430_v28 = vpop.f32.mrb[4].mxu0  ;;  %v5270_v27 = vpack.c.bf16 %v695_v25, %v693_v24  ;;  %v922_v24 = vld [vmem:[#allocation8 + $0x248] sm:$0xff]  ;;  %v928_v25 = vld [vmem:[#allocation8 + $0x278] sm:$0xff] }
 0x148   :  { %v225_v29 = vadd.f32 %v4430_v28, %v4019_v19  ;;  %v219_v30 = vpop.f32.mrb[5].mxu0  ;;  %v692_v28 = vld [vmem:[%s8143_s6 + $0x80] sm:$0xff] }
 0x149   :  { %v220_v31 = vadd.f32 %v4019_v19, %v219_v30 }
 0x14a   :  { %6425 = vtanh.f32 %v225_v29  ;;  %v694_v29 = vld [vmem:[%s8143_s6 + $0x90] sm:$0xff] }
 0x14b   :  { %6427 = vtanh.f32 %v220_v31  ;;  %v4433_v34 = vpop.f32.mrb[6].mxu0  ;;  %v5272_v30 = vpack.c.bf16 %v694_v29, %v692_v28  ;;  %v697_v31 = vld [vmem:[%s8143_s6 + $0xa8] sm:$0xff]  ;;  %v921_v28 = vld [vmem:[#allocation8 + $0x240] sm:$0xff]  ;;  %v927_v29 = vld [vmem:[#allocation8 + $0x270] sm:$0xff] }
 0x14c   :  { %v235_v35 = vadd.f32 %v4433_v34, %v4019_v19  ;;  %v229_v36 = vpop.f32.mrb[7].mxu0  ;;  %v5274_v33 = vpack.c.bf16 %v699_v32, %v697_v31  ;;  %v696_v34 = vld [vmem:[%s8143_s6 + $0xa0] sm:$0xff]  ;;  %v940_v31 = vld [vmem:[#allocation8 + $0x2d8] sm:$0xff]  ;;  %v5312_v32 = vpack.c.bf16 %v927_v29, %v921_v28 }
 0x14d   :  { %v6418_v37 = vpop.eup %6417  ;;  %v230_v38 = vadd.f32 %v4019_v19, %v229_v36  ;;  %v689_v19 = vld [vmem:[%s8143_s6 + $0x68] sm:$0xff] }
 0x14e   :  { %v6420_v40 = vpop.eup %6419  ;;  %6429 = vtanh.f32 %v235_v35  ;;  %4466 = vmatprep.mubr.f32.mxu1 %v6418_v37  ;;  %4510 = vmatprep.mubr.f32.mxu0 %v6418_v37  ;;  %v5266_v22 = vpack.c.bf16 %v691_v20, %v689_v19  ;;  %v698_v35 = vld [vmem:[%s8143_s6 + $0xb0] sm:$0xff]  ;;  %v916_v19 = vld [vmem:[#allocation8 + $0x218] sm:$0xff] }
 0x14f   :  { %6431 = vtanh.f32 %v230_v38  ;;  %4467 = vmatmul.mubr.f32.vlgmr.msra.gmra.mrb[0].mxu1 %v6420_v40  ;;  %4511 = vmatmul.mubr.f32.vlgmr.msra.gmra.mrb[8].mxu0 %v6420_v40  ;;  %v5276_v36 = vpack.c.bf16 %v698_v35, %v696_v34  ;;  %v703_v38 = vld [vmem:[%s8143_s6 + $0xd8] sm:$0xff]  ;;  %v933_v34 = vld [vmem:[#allocation8 + $0x2a0] sm:$0xff]  ;;  %v939_v35 = vld [vmem:[#allocation8 + $0x2d0] sm:$0xff] }
 0x150   :  { %v6422_v43 = vpop.eup %6421  ;;  %5225 = vmatpush3.bf16.msra.mxu1 %v5222_v18  ;;  %5257 = vmatpush1.bf16.msra.mxu0 %v5256_v6  ;;  %v5264_v18 = vpack.c.bf16 %v686_v17, %v684_v15  ;;  %v5296_v6 = vpack.c.bf16 %v879_v5, %v873_v4  ;;  %v903_v17 = vld [vmem:[#allocation8 + $0x1b0] sm:$0xff] }
 0x151   :  { %v6424_v44 = vpop.eup %6423  ;;  %5227 = vmatprep.subr.bf16.mxu1 %v5226_v39  ;;  %5259 = vmatprep.subr.bf16.mxu0 %v5258_v10  ;;  %v885_v10 = vld [vmem:[#allocation8 + $0x120] sm:$0xff] }
 0x152   :  { %4469 = vmatprep.mubr.f32.mxu1 %v6424_v44  ;;  %4513 = vmatprep.mubr.f32.mxu0 %v6424_v44  ;;  %v5300_v14 = vpack.c.bf16 %v891_v11, %v885_v10 }
 0x153   :  { %4470 = vmatmul.mubr.f32.gmra.mrb[2].mxu1 %v6422_v43  ;;  %4514 = vmatmul.mubr.f32.gmra.mrb[10].mxu0 %v6422_v43 }
 0x154   :  { %v6426_v48 = vpop.eup %6425  ;;  %5229 = vmatpush3.bf16.msra.mxu1 %v5226_v39  ;;  %5261 = vmatpush1.bf16.msra.mxu0 %v5260_v12  ;;  %v898_v12 = vld [vmem:[#allocation8 + $0x188] sm:$0xff] }
 0x155   :  { %v6428_v49 = vpop.eup %6427  ;;  %5231 = vmatprep.subr.bf16.mxu1 %v5230_v45  ;;  %5263 = vmatprep.subr.bf16.mxu0 %v5262_v16  ;;  %v5302_v15 = vpack.c.bf16 %v904_v13, %v898_v12  ;;  %v897_v16 = vld [vmem:[#allocation8 + $0x180] sm:$0xff] }
 0x156   :  { %4472 = vmatprep.mubr.f32.mxu1 %v6428_v49  ;;  %4516 = vmatprep.mubr.f32.mxu0 %v6428_v49  ;;  %v5304_v20 = vpack.c.bf16 %v903_v17, %v897_v16  ;;  %v4020_v17 = vld [vmem:[%s8147_s10] ss:$0 sm:$0xff] }
 0x157   :  { %4473 = vmatmul.mubr.f32.gmra.mrb[4].mxu1 %v6426_v48  ;;  %4517 = vmatmul.mubr.f32.gmra.mrb[12].mxu0 %v6426_v48 }
 0x158   :  { %v6430_v53 = vpop.eup %6429  ;;  %5233 = vmatpush3.bf16.msra.mxu1 %v5230_v45  ;;  %5265 = vmatpush1.bf16.msra.mxu0 %v5264_v18  ;;  %v910_v18 = vld [vmem:[#allocation8 + $0x1e8] sm:$0xff] }
 0x159   :  { %v6432_v54 = vpop.eup %6431  ;;  %5235 = vmatprep.subr.bf16.mxu1 %v5234_v50  ;;  %5267 = vmatprep.subr.bf16.mxu0 %v5266_v22  ;;  %v5306_v21 = vpack.c.bf16 %v916_v19, %v910_v18  ;;  %v909_v22 = vld [vmem:[#allocation8 + $0x1e0] sm:$0xff] }
 0x15a   :  { %4475 = vmatprep.mubr.f32.mxu1 %v6432_v54  ;;  %4519 = vmatprep.mubr.f32.mxu0 %v6432_v54 }
 0x15b   :  { %4476 = vmatmul.mubr.f32.gmra.mrb[6].mxu1 %v6430_v53  ;;  %4520 = vmatmul.mubr.f32.gmra.mrb[14].mxu0 %v6430_v53 }
 0x15c   :  { %5237 = vmatpush3.bf16.msra.mxu1 %v5234_v50  ;;  %4554 = vmatprep.mubr.f32.mxu1 %v6418_v37  ;;  %v701_v37 = vld [vmem:[%s8143_s6 + $0xc8] sm:$0xff] }
 0x15d   :  { %5239 = vmatprep.subr.bf16.mxu1 %v5238_v55  ;;  %5269 = vmatpush1.bf16.msra.mxu0 %v5268_v26  ;;  %v5278_v39 = vpack.c.bf16 %v703_v38, %v701_v37  ;;  %v850_v50 = vld [vmem:[#allocation8 + $0x8] sm:$0xff]  ;;  %v5308_v26 = vpack.c.bf16 %v915_v23, %v909_v22  ;;  %v952_v37 = vld [vmem:[#allocation8 + $0x338] sm:$0xff]  ;;  %v5316_v38 = vpack.c.bf16 %v939_v35, %v933_v34  ;;  %v857_v34 = vld [vmem:[#allocation8 + $0x40] sm:$0xff] }
 0x15e   :  { %5271 = vmatprep.subr.bf16.mxu0 %v5270_v27  ;;  %v5310_v27 = vpack.c.bf16 %v928_v25, %v922_v24 }
 0x160   :  { %5241 = vmatpush3.bf16.msra.mxu1 %v5238_v55  ;;  %v852_v55 = vld [vmem:[#allocation8 + $0x18] sm:$0xff] }
 0x161   :  { %5243 = vmatprep.subr.bf16.mxu1 %v5242_v58  ;;  %5273 = vmatpush1.bf16.msra.mxu0 %v5272_v30  ;;  %v934_v30 = vld [vmem:[#allocation8 + $0x2a8] sm:$0xff] }
 0x162   :  { %5275 = vmatprep.subr.bf16.mxu0 %v5274_v33  ;;  %v5314_v33 = vpack.c.bf16 %v940_v31, %v934_v30 }
 0x164   :  { %5245 = vmatpush3.bf16.msra.mxu1 %v5242_v58  ;;  %v5350_v58 = vpack.c.bf16 %v858_v56, %v852_v55  ;;  %v982_v55 = vld [vmem:[#allocation8 + $0x428] sm:$0xff]  ;;  %v988_v56 = vld [vmem:[#allocation8 + $0x458] sm:$0xff] }
 0x165   :  { %5247 = vmatprep.subr.bf16.mxu1 %v5246_v61  ;;  %5277 = vmatpush1.bf16.msra.mxu0 %v5276_v36  ;;  %v946_v36 = vld [vmem:[#allocation8 + $0x308] sm:$0xff] }
 0x166   :  { %5279 = vmatprep.subr.bf16.mxu0 %v5278_v39  ;;  %v5318_v39 = vpack.c.bf16 %v952_v37, %v946_v36  ;;  %v864_v37 = vld [vmem:[#allocation8 + $0x78] sm:$0xff] }
 0x168   :  { %5249 = vmatpush3.bf16.msra.mxu1 %v5246_v61  ;;  %v861_v61 = vld [vmem:[#allocation8 + $0x60] sm:$0xff] }
 0x169   :  { %5251 = vmatprep.subr.bf16.mxu1 %v5250_v0 }
 0x16c   :  { %5253 = vmatpush3.bf16.msra.mxu1 %v5250_v0  ;;  %v5292_v0 = vpack.c.bf16 %v867_v62, %v861_v61  ;;  %v994_v61 = vld [vmem:[#allocation8 + $0x488] sm:$0xff]  ;;  %v1000_v62 = vld [vmem:[#allocation8 + $0x4b8] sm:$0xff] }
 0x16f   :  { %4555 = vmatmul.mubr.f32.vlgmr.msra.gmra.mrb[8].mxu1 %v6420_v40  ;;  %v700_v40 = vld [vmem:[%s8143_s6 + $0xc0] sm:$0xff] }
 0x170   :  { %4557 = vmatprep.mubr.f32.mxu1 %v6424_v44  ;;  %v5280_v42 = vpack.c.bf16 %v702_v41, %v700_v40  ;;  %v707_v44 = vld [vmem:[%s8143_s6 + $0xf8] sm:$0xff]  ;;  %v945_v40 = vld [vmem:[#allocation8 + $0x300] sm:$0xff]  ;;  %v951_v41 = vld [vmem:[#allocation8 + $0x330] sm:$0xff] }
 0x172   :  { %5281 = vmatpush1.bf16.msra.mxu0 %v5280_v42  ;;  %v958_v42 = vld [vmem:[#allocation8 + $0x368] sm:$0xff] }
 0x173   :  { %4558 = vmatmul.mubr.f32.gmra.mrb[10].mxu1 %v6422_v43  ;;  %v705_v43 = vld [vmem:[%s8143_s6 + $0xe8] sm:$0xff] }
 0x174   :  { %4560 = vmatprep.mubr.f32.mxu1 %v6428_v49  ;;  %v5282_v45 = vpack.c.bf16 %v707_v44, %v705_v43  ;;  %v8154_v49 = vmov 0.0   ;;  %v964_v43 = vld [vmem:[#allocation8 + $0x398] sm:$0xff]  ;;  %v5320_v44 = vpack.c.bf16 %v951_v41, %v945_v40 }
 0x175   :  { %784 = vmatprep.mubr.f32.mxu0 %v8154_v49 }
 0x176   :  { %5283 = vmatprep.subr.bf16.mxu0 %v5282_v45  ;;  %v5322_v45 = vpack.c.bf16 %v964_v43, %v958_v42 }
 0x177   :  { %4561 = vmatmul.mubr.f32.gmra.mrb[12].mxu1 %v6426_v48  ;;  %v5284_v48 = vpack.c.bf16 %v706_v47, %v704_v46  ;;  %v957_v46 = vld [vmem:[#allocation8 + $0x360] sm:$0xff]  ;;  %v963_v47 = vld [vmem:[#allocation8 + $0x390] sm:$0xff] }
 0x178   :  { %4563 = vmatprep.mubr.f32.mxu1 %v6432_v54  ;;  %v855_v54 = vld [vmem:[#allocation8 + $0x30] sm:$0xff] }
 0x179   :  { %5285 = vmatpush1.bf16.msra.mxu0 %v5284_v48  ;;  %v5288_v57 = vpack.c.bf16 %v855_v54, %v849_v52  ;;  %v970_v48 = vld [vmem:[#allocation8 + $0x3c8] sm:$0xff]  ;;  %v975_v54 = vld [vmem:[#allocation8 + $0x3f0] sm:$0xff] }
 0x17a   :  { %5351 = vmatprep.subr.bf16.mxu0 %v5350_v58  ;;  %v5330_v58 = vpack.c.bf16 %v988_v56, %v982_v55 }
 0x17b   :  { %4564 = vmatmul.mubr.f32.gmra.mrb[14].mxu1 %v6430_v53  ;;  %v5286_v53 = vpack.c.bf16 %v856_v51, %v850_v50  ;;  %v976_v50 = vld [vmem:[#allocation8 + $0x3f8] sm:$0xff]  ;;  %v5324_v51 = vpack.c.bf16 %v963_v47, %v957_v46  ;;  %v863_v47 = vld [vmem:[#allocation8 + $0x70] sm:$0xff] }
 0x17c   :  { %v5326_v52 = vpack.c.bf16 %v976_v50, %v970_v48  ;;  %v869_v48 = vld [vmem:[#allocation8 + $0xa0] sm:$0xff] }
 0x17d   :  { %5287 = vmatprep.subr.bf16.mxu1 %v5286_v53  ;;  %v969_v53 = vld [vmem:[#allocation8 + $0x3c0] sm:$0xff] }
 0x17e   :  { %5289 = vmatpush1.bf16.msra.mxu1 %v5288_v57  ;;  %v5328_v57 = vpack.c.bf16 %v975_v54, %v969_v53  ;;  %v876_v53 = vld [vmem:[#allocation8 + $0xd8] sm:$0xff]  ;;  %v882_v54 = vld [vmem:[#allocation8 + $0x108] sm:$0xff] }
 0x17f   :  { %5291 = vmatprep.subr.bf16.mxu1 %v5290_v63  ;;  %v5332_v63 = vpack.c.bf16 %v987_v60, %v981_v59  ;;  %v5358_v59 = vpack.c.bf16 %v882_v54, %v876_v53  ;;  %v875_v60 = vld [vmem:[#allocation8 + $0xd0] sm:$0xff]  ;;  %v977_v54 = vld [vmem:[#allocation8 + $0x400] sm:$0xff] }
 0x180   :  { %v971_v53 = vld [vmem:[#allocation8 + $0x3d0] sm:$0xff] }
 0x182   :  { %5293 = vmatpush1.bf16.msra.mxu1 %v5292_v0  ;;  %v5334_v0 = vpack.c.bf16 %v1000_v62, %v994_v61  ;;  %v881_v61 = vld [vmem:[#allocation8 + $0x100] sm:$0xff] }
 0x183   :  { %5295 = vmatprep.subr.bf16.mxu1 %v5294_v3 }
 0x186   :  { %5297 = vmatpush1.bf16.msra.mxu1 %v5296_v6 }
 0x187   :  { %5299 = vmatprep.subr.bf16.mxu1 %v5298_v9 }
 0x18a   :  { %5301 = vmatpush1.bf16.msra.mxu1 %v5300_v14 }
 0x18b   :  { %5303 = vmatprep.subr.bf16.mxu1 %v5302_v15 }
 0x18e   :  { %5305 = vmatpush1.bf16.msra.mxu1 %v5304_v20 }
 0x18f   :  { %5307 = vmatprep.subr.bf16.mxu1 %v5306_v21 }
 0x192   :  { %5309 = vmatpush1.bf16.msra.mxu1 %v5308_v26 }
 0x193   :  { %5311 = vmatprep.subr.bf16.mxu1 %v5310_v27 }
 0x196   :  { %5313 = vmatpush1.bf16.msra.mxu1 %v5312_v32 }
 0x197   :  { %5315 = vmatprep.subr.bf16.mxu1 %v5314_v33  ;;  %v851_v33 = vld [vmem:[#allocation8 + $0x10] sm:$0xff] }
 0x198   :  { %v5352_v42 = vpack.c.bf16 %v857_v34, %v851_v33  ;;  %v941_v33 = vld [vmem:[#allocation8 + $0x2e0] sm:$0xff] }
 0x19a   :  { %5317 = vmatpush1.bf16.msra.mxu1 %v5316_v38  ;;  %v870_v38 = vld [vmem:[#allocation8 + $0xa8] sm:$0xff] }
 0x19b   :  { %5319 = vmatprep.subr.bf16.mxu1 %v5318_v39  ;;  %v5354_v46 = vpack.c.bf16 %v870_v38, %v864_v37 }
 0x19e   :  { %5321 = vmatpush1.bf16.msra.mxu1 %v5320_v44 }
 0x19f   :  { %5323 = vmatprep.subr.bf16.mxu1 %v5322_v45 }
 0x1a2   :  { %5325 = vmatpush1.bf16.msra.mxu1 %v5324_v51 }
 0x1a3   :  { %5327 = vmatprep.subr.bf16.mxu1 %v5326_v52 }
 0x1a6   :  { %5329 = vmatpush1.bf16.msra.mxu1 %v5328_v57  ;;  %v5356_v57 = vpack.c.bf16 %v869_v48, %v863_v47  ;;  %v965_v47 = vld [vmem:[#allocation8 + $0x3a0] sm:$0xff]  ;;  %v972_v48 = vld [vmem:[#allocation8 + $0x3d8] sm:$0xff] }
 0x1a7   :  { %5331 = vmatprep.subr.bf16.mxu1 %v5330_v58 }
 0x1aa   :  { %5333 = vmatpush1.bf16.msra.mxu1 %v5332_v63 }
 0x1ab   :  { %5335 = vmatprep.subr.bf16.mxu1 %v5334_v0  ;;  %v888_v0 = vld [vmem:[#allocation8 + $0x138] sm:$0xff] }
 0x222   :  { %v4468_v1 = vpop.f32.mrb[0].mxu1  ;;  %v4512_v2 = vpop.f32.mrb[8].mxu0 }
 0x223   :  { %v344_v3 = vpop.f32.mrb[1].mxu1  ;;  %v464_v4 = vpop.f32.mrb[9].mxu0 }
 0x226   :  { %v4471_v5 = vpop.f32.mrb[2].mxu1  ;;  %v4515_v6 = vpop.f32.mrb[10].mxu0 }
 0x227   :  { %v354_v7 = vpop.f32.mrb[3].mxu1  ;;  %v474_v8 = vpop.f32.mrb[11].mxu0 }
 0x22a   :  { %v4474_v9 = vpop.f32.mrb[4].mxu1  ;;  %v4518_v10 = vpop.f32.mrb[12].mxu0 }
 0x22b   :  { %v364_v11 = vpop.f32.mrb[5].mxu1  ;;  %v484_v12 = vpop.f32.mrb[13].mxu0 }
 0x22e   :  { %v4477_v13 = vpop.f32.mrb[6].mxu1  ;;  %v4521_v14 = vpop.f32.mrb[14].mxu0 }
 0x22f   :  { %v374_v15 = vpop.f32.mrb[7].mxu1  ;;  %v494_v16 = vpop.f32.mrb[15].mxu0  ;;  %v912_v14 = vld [vmem:[#allocation8 + $0x1f8] sm:$0xff] }
 0x242   :  { %v4556_v18 = vpop.f32.mrb[8].mxu1 }
 0x243   :  { %v580_v19 = vadd.f32 %v4556_v18, %v4020_v17  ;;  %v574_v20 = vpop.f32.mrb[9].mxu1  ;;  %v911_v18 = vld [vmem:[#allocation8 + $0x1f0] sm:$0xff] }
 0x244   :  { %v575_v21 = vadd.f32 %v4020_v17, %v574_v20 }
 0x245   :  { %v628_v22 = vadd.f32 %v580_v19, %v344_v3  ;;  %v917_v19 = vld [vmem:[#allocation8 + $0x220] sm:$0xff] }
 0x246   :  { %6433 = vtanh.f32 %v575_v21  ;;  %v4559_v23 = vpop.f32.mrb[10].mxu1  ;;  %v924_v21 = vld [vmem:[#allocation8 + $0x258] sm:$0xff] }
 0x247   :  { %v590_v24 = vadd.f32 %v4559_v23, %v4020_v17  ;;  %v584_v25 = vpop.f32.mrb[11].mxu1  ;;  %6435 = vtanh.f32 %v628_v22  ;;  %v930_v22 = vld [vmem:[#allocation8 + $0x288] sm:$0xff]  ;;  %v5372_v23 = vpack.c.bf16 %v917_v19, %v911_v18 }
 0x248   :  { %v585_v26 = vadd.f32 %v4020_v17, %v584_v25  ;;  %v923_v25 = vld [vmem:[#allocation8 + $0x250] sm:$0xff]  ;;  %v1018_v19 = vld [vmem:[#allocation8 + $0x548] sm:$0xff] }
 0x249   :  { %v630_v27 = vadd.f32 %v590_v24, %v354_v7  ;;  %v900_v7 = vld [vmem:[#allocation8 + $0x198] sm:$0xff]  ;;  %v5374_v24 = vpack.c.bf16 %v930_v22, %v924_v21  ;;  %v1017_v22 = vld [vmem:[#allocation8 + $0x540] sm:$0xff] }
 0x24a   :  { %v629_v28 = vadd.f32 %v4468_v1, %v585_v26  ;;  %v4562_v29 = vpop.f32.mrb[12].mxu1  ;;  %v894_v1 = vld [vmem:[#allocation8 + $0x168] sm:$0xff]  ;;  %v929_v26 = vld [vmem:[#allocation8 + $0x280] sm:$0xff] }
 0x24b   :  { %v649_v30 = vadd.f32 %v4512_v2, %v630_v27  ;;  %v600_v31 = vadd.f32 %v4562_v29, %v4020_v17  ;;  %v594_v32 = vpop.f32.mrb[13].mxu1  ;;  %v5360_v2 = vpack.c.bf16 %v881_v61, %v875_v60  ;;  %v5362_v3 = vpack.c.bf16 %v894_v1, %v888_v0  ;;  %v942_v29 = vld [vmem:[#allocation8 + $0x2e8] sm:$0xff]  ;;  %v989_v60 = vld [vmem:[#allocation8 + $0x460] sm:$0xff]  ;;  %v996_v0 = vld [vmem:[#allocation8 + $0x498] sm:$0xff] }
 0x24c   :  { %v648_v35 = vadd.f32 %v629_v28, %v464_v4  ;;  %v595_v36 = vadd.f32 %v4020_v17, %v594_v32  ;;  %v887_v4 = vld [vmem:[#allocation8 + $0x130] sm:$0xff]  ;;  %v936_v28 = vld [vmem:[#allocation8 + $0x2b8] sm:$0xff] }
 0x24d   :  { %v632_v39 = vadd.f32 %v600_v31, %v364_v11  ;;  %v899_v11 = vld [vmem:[#allocation8 + $0x190] sm:$0xff]  ;;  %v5378_v31 = vpack.c.bf16 %v942_v29, %v936_v28  ;;  %v1025_v28 = vld [vmem:[#allocation8 + $0x580] sm:$0xff] }
 0x24e   :  { %6437 = vtanh.f32 %v648_v35  ;;  %v631_v40 = vadd.f32 %v4471_v5, %v595_v36  ;;  %v4565_v41 = vpop.f32.mrb[14].mxu1  ;;  %v893_v5 = vld [vmem:[#allocation8 + $0x160] sm:$0xff]  ;;  %v935_v32 = vld [vmem:[#allocation8 + $0x2b0] sm:$0xff]  ;;  %v948_v35 = vld [vmem:[#allocation8 + $0x318] sm:$0xff] }
 0x24f   :  { %v651_v43 = vadd.f32 %v4515_v6, %v632_v39  ;;  %v610_v44 = vadd.f32 %v4565_v41, %v4020_v17  ;;  %v604_v45 = vpop.f32.mrb[15].mxu1  ;;  %6439 = vtanh.f32 %v649_v30  ;;  %v5376_v30 = vpack.c.bf16 %v929_v26, %v923_v25  ;;  %v954_v36 = vld [vmem:[#allocation8 + $0x348] sm:$0xff]  ;;  %v947_v39 = vld [vmem:[#allocation8 + $0x310] sm:$0xff] }
 0x250   :  { %v6434_v50 = vpop.eup %6433  ;;  %v650_v51 = vadd.f32 %v631_v40, %v474_v8  ;;  %v605_v52 = vadd.f32 %v4020_v17, %v604_v45  ;;  %v906_v8 = vld [vmem:[#allocation8 + $0x1c8] sm:$0xff]  ;;  %v5380_v37 = vpack.c.bf16 %v941_v33, %v935_v32  ;;  %v5382_v38 = vpack.c.bf16 %v954_v36, %v948_v35  ;;  %v953_v40 = vld [vmem:[#allocation8 + $0x340] sm:$0xff]  ;;  %v1036_v32 = vld [vmem:[#allocation8 + $0x5d8] sm:$0xff] }
 0x251   :  { %v634_v55 = vadd.f32 %v610_v44, %v374_v15  ;;  %785 = vmatmul.mubr.f32.vlgmr.msra.gmra.mrb[16].mxu0 %v6434_v50  ;;  %v6436_v62 = vpop.eup %6435  ;;  %v918_v15 = vld [vmem:[#allocation8 + $0x228] sm:$0xff]  ;;  %v5384_v44 = vpack.c.bf16 %v953_v40, %v947_v39  ;;  %v1035_v35 = vld [vmem:[#allocation8 + $0x5d0] sm:$0xff]  ;;  %v1032_v36 = vld [vmem:[#allocation8 + $0x5b8] sm:$0xff] }
 0x252   :  { %v633_v56 = vadd.f32 %v4474_v9, %v605_v52  ;;  %790 = vmatprep.mubr.f32.mxu0 %v8154_v49  ;;  %5353 = vmatpush1.bf16.msra.mxu0 %v5352_v42  ;;  %6441 = vtanh.f32 %v650_v51  ;;  %v5364_v9 = vpack.c.bf16 %v893_v5, %v887_v4  ;;  %v5370_v17 = vpack.c.bf16 %v918_v15, %v912_v14  ;;  %v960_v42 = vld [vmem:[#allocation8 + $0x378] sm:$0xff]  ;;  %v978_v50 = vld [vmem:[#allocation8 + $0x408] sm:$0xff]  ;;  %v1001_v4 = vld [vmem:[#allocation8 + $0x4c0] sm:$0xff] }
 0x253   :  { %v653_v58 = vadd.f32 %v4518_v10, %v634_v55  ;;  %5355 = vmatprep.subr.bf16.mxu0 %v5354_v46  ;;  %6443 = vtanh.f32 %v651_v43  ;;  %v5366_v10 = vpack.c.bf16 %v906_v8, %v900_v7  ;;  %v966_v43 = vld [vmem:[#allocation8 + $0x3a8] sm:$0xff]  ;;  %v959_v46 = vld [vmem:[#allocation8 + $0x370] sm:$0xff]  ;;  %v5390_v52 = vpack.c.bf16 %v978_v50, %v972_v48  ;;  %v984_v55 = vld [vmem:[#allocation8 + $0x438] sm:$0xff] }
 0x254   :  { %v652_v63 = vadd.f32 %v633_v56, %v484_v12  ;;  %v905_v12 = vld [vmem:[#allocation8 + $0x1c0] sm:$0xff]  ;;  %v5386_v45 = vpack.c.bf16 %v966_v43, %v960_v42  ;;  %v5388_v51 = vpack.c.bf16 %v965_v47, %v959_v46  ;;  %v990_v56 = vld [vmem:[#allocation8 + $0x468] sm:$0xff]  ;;  %v1012_v8 = vld [vmem:[#allocation8 + $0x518] sm:$0xff]  ;;  %v8152_v46 = vmov 0.0|0.0  }
 0x255   :  { %791 = vmatmul.mubr.f32.gmra.mrb[18].mxu0 %v6436_v62  ;;  %v5368_v16 = vpack.c.bf16 %v905_v12, %v899_v11  ;;  %v993_v62 = vld [vmem:[#allocation8 + $0x480] sm:$0xff]  ;;  %v1006_v7 = vld [vmem:[#allocation8 + $0x4e8] sm:$0xff]  ;;  %v1011_v11 = vld [vmem:[#allocation8 + $0x510] sm:$0xff]  ;;  %v710_v47 = vlaneseq }
 0x256   :  { %796 = vmatprep.mubr.f32.mxu0 %v8154_v49  ;;  %5357 = vmatpush1.bf16.msra.mxu0 %v5356_v57  ;;  %6445 = vtanh.f32 %v652_v63  ;;  %v5392_v57 = vpack.c.bf16 %v977_v54, %v971_v53  ;;  %v999_v63 = vld [vmem:[#allocation8 + $0x4b0] sm:$0xff]  ;;  %v1008_v12 = vld [vmem:[#allocation8 + $0x4f8] sm:$0xff]  ;;  %v1014_v14 = vld [vmem:[#allocation8 + $0x528] sm:$0xff] }
 0x257   :  { %5359 = vmatprep.subr.bf16.mxu0 %v5358_v59  ;;  %6447 = vtanh.f32 %v653_v58  ;;  %v5394_v58 = vpack.c.bf16 %v990_v56, %v984_v55  ;;  %v983_v59 = vld [vmem:[#allocation8 + $0x430] sm:$0xff]  ;;  %v5336_v1 = vpack.c.bf16 %v999_v63, %v993_v62  ;;  %v1026_v26 = vld [vmem:[#allocation8 + $0x588] sm:$0xff]  ;;  %v1037_v40 = vld [vmem:[#allocation8 + $0x5e0] sm:$0xff]  ;;  %v7012_v48 = vshrl.u32 %v710_v47, 7 }
 0x258   :  { %v6438_v6 = vpop.eup %6437  ;;  %v5396_v61 = vpack.c.bf16 %v989_v60, %v983_v59  ;;  %v1007_v15 = vld [vmem:[#allocation8 + $0x4f0] sm:$0xff]  ;;  %v854_v43 = vld [vmem:[#allocation8 + $0x28] sm:$0xff] }
 0x259   :  { %797 = vmatmul.mubr.f32.gmra.mrb[20].mxu0 %v6438_v6  ;;  %v6440_v13 = vpop.eup %6439  ;;  %5337 = vmatpush1.bf16.msra.mxu1 %v5336_v1  ;;  %v1031_v39 = vld [vmem:[#allocation8 + $0x5b0] sm:$0xff]  ;;  %v8157_v50 = vsub.s32 0, %v7012_v48 }
 0x25a   :  { %802 = vmatprep.mubr.f32.mxu0 %v8154_v49  ;;  %5361 = vmatpush1.bf16.msra.mxu0 %v5360_v2  ;;  %v1002_v2 = vld [vmem:[#allocation8 + $0x4c8] sm:$0xff]  ;;  %v5412_v42 = vpack.c.bf16 %v1037_v40, %v1031_v39 }
 0x25b   :  { %5363 = vmatprep.subr.bf16.mxu0 %v5362_v3  ;;  %v995_v3 = vld [vmem:[#allocation8 + $0x490] sm:$0xff]  ;;  %v5398_v5 = vpack.c.bf16 %v1002_v2, %v996_v0  ;;  %v853_v2 = vld [vmem:[#allocation8 + $0x20] sm:$0xff] }
 0x25c   :  { %v6442_v20 = vpop.eup %6441  ;;  %v5400_v6 = vpack.c.bf16 %v1001_v4, %v995_v3  ;;  %v859_v4 = vld [vmem:[#allocation8 + $0x50] sm:$0xff] }
 0x25d   :  { %803 = vmatmul.mubr.f32.gmra.mrb[22].mxu0 %v6440_v13  ;;  %v6444_v27 = vpop.eup %6443 }
 0x25e   :  { %808 = vmatprep.mubr.f32.mxu0 %v8154_v49  ;;  %5365 = vmatpush1.bf16.msra.mxu0 %v5364_v9  ;;  %v5338_v9 = vpack.c.bf16 %v1012_v8, %v1006_v7  ;;  %v866_v7 = vld [vmem:[#allocation8 + $0x88] sm:$0xff]  ;;  %v872_v8 = vld [vmem:[#allocation8 + $0xb8] sm:$0xff] }
 0x25f   :  { %5367 = vmatprep.subr.bf16.mxu0 %v5366_v10  ;;  %v1005_v10 = vld [vmem:[#allocation8 + $0x4e0] sm:$0xff] }
 0x260   :  { %v6446_v34 = vpop.eup %6445  ;;  %v5340_v13 = vpack.c.bf16 %v1011_v11, %v1005_v10  ;;  %5339 = vmatprep.subr.bf16.mxu1 %v5338_v9 }
 0x261   :  { %809 = vmatmul.mubr.f32.gmra.mrb[24].mxu0 %v6442_v20  ;;  %v6448_v41 = vpop.eup %6447  ;;  %v1024_v20 = vld [vmem:[#allocation8 + $0x578] sm:$0xff] }
 0x262   :  { %814 = vmatprep.mubr.f32.mxu0 %v8154_v49  ;;  %5369 = vmatpush1.bf16.msra.mxu0 %v5368_v16  ;;  %v1013_v16 = vld [vmem:[#allocation8 + $0x520] sm:$0xff]  ;;  %v5342_v21 = vpack.c.bf16 %v1024_v20, %v1018_v19  ;;  %v1423_v20 = vld [vmem:[%s8145_s8 + $0x58] sm:$0xff] }
 0x263   :  { %5371 = vmatprep.subr.bf16.mxu0 %v5370_v17  ;;  %v5402_v17 = vpack.c.bf16 %v1014_v14, %v1008_v12  ;;  %v5404_v18 = vpack.c.bf16 %v1013_v16, %v1007_v15  ;;  %5341 = vmatpush1.bf16.msra.mxu1 %v5340_v13  ;;  %v5416_v12 = vpack.c.bf16 %v859_v4, %v853_v2  ;;  %v865_v13 = vld [vmem:[#allocation8 + $0x80] sm:$0xff] }
 0x264   :  { %5343 = vmatprep.subr.bf16.mxu1 %v5342_v21  ;;  %v1420_v19 = vld [vmem:[%s8145_s8 + $0x40] sm:$0xff] }
 0x265   :  { %815 = vmatmul.mubr.f32.gmra.mrb[26].mxu0 %v6444_v27  ;;  %v1019_v27 = vld [vmem:[#allocation8 + $0x550] sm:$0xff] }
 0x266   :  { %820 = vmatprep.mubr.f32.mxu0 %v8154_v49  ;;  %5373 = vmatpush1.bf16.msra.mxu0 %v5372_v23  ;;  %v1023_v23 = vld [vmem:[#allocation8 + $0x570] sm:$0xff] }
 0x267   :  { %5375 = vmatprep.subr.bf16.mxu0 %v5374_v24  ;;  %v1020_v24 = vld [vmem:[#allocation8 + $0x558] sm:$0xff]  ;;  %v5344_v25 = vpack.c.bf16 %v1023_v23, %v1017_v22  ;;  %v878_v22 = vld [vmem:[#allocation8 + $0xe8] sm:$0xff] }
 0x268   :  { %v5406_v29 = vpack.c.bf16 %v1026_v26, %v1020_v24  ;;  %v884_v23 = vld [vmem:[#allocation8 + $0x118] sm:$0xff] }
 0x269   :  { %821 = vmatmul.mubr.f32.gmra.mrb[28].mxu0 %v6446_v34  ;;  %5345 = vmatpush1.bf16.msra.mxu1 %v5344_v25  ;;  %v1029_v34 = vld [vmem:[#allocation8 + $0x5a0] sm:$0xff] }
 0x26a   :  { %826 = vmatprep.mubr.f32.mxu0 %v8154_v49  ;;  %5377 = vmatpush1.bf16.msra.mxu0 %v5376_v30  ;;  %v5408_v30 = vpack.c.bf16 %v1025_v28, %v1019_v27  ;;  %v877_v28 = vld [vmem:[#allocation8 + $0xe0] sm:$0xff] }
 0x26b   :  { %5379 = vmatprep.subr.bf16.mxu0 %v5378_v31  ;;  %v1030_v31 = vld [vmem:[#allocation8 + $0x5a8] sm:$0xff] }
 0x26c   :  { %v5346_v33 = vpack.c.bf16 %v1036_v32, %v1030_v31  ;;  %v5422_v32 = vpack.c.bf16 %v884_v23, %v878_v22 }
 0x26d   :  { %827 = vmatmul.mubr.f32.gmra.mrb[30].mxu0 %v6448_v41 }
 0x26e   :  { %5381 = vmatpush1.bf16.msra.mxu0 %v5380_v37  ;;  %v5348_v37 = vpack.c.bf16 %v1035_v35, %v1029_v34  ;;  %5347 = vmatprep.subr.bf16.mxu1 %v5346_v33  ;;  %v883_v33 = vld [vmem:[#allocation8 + $0x110] sm:$0xff]  ;;  %v1429_v35 = vld [vmem:[%s8145_s8 + $0x88] sm:$0xff] }
 0x26f   :  { %5383 = vmatprep.subr.bf16.mxu0 %v5382_v38  ;;  %v1038_v38 = vld [vmem:[#allocation8 + $0x5e8] sm:$0xff]  ;;  %v1426_v34 = vld [vmem:[%s8145_s8 + $0x70] sm:$0xff] }
 0x270   :  { %v5410_v41 = vpack.c.bf16 %v1038_v38, %v1032_v36  ;;  %5349 = vmatpush1.bf16.msra.mxu1 %v5348_v37  ;;  %v890_v37 = vld [vmem:[#allocation8 + $0x148] sm:$0xff]  ;;  %v896_v38 = vld [vmem:[#allocation8 + $0x178] sm:$0xff] }
 0x272   :  { %5385 = vmatpush1.bf16.msra.mxu0 %v5384_v44  ;;  %v860_v44 = vld [vmem:[#allocation8 + $0x58] sm:$0xff] }
 0x273   :  { %5387 = vmatprep.subr.bf16.mxu0 %v5386_v45  ;;  %v5414_v45 = vpack.c.bf16 %v860_v44, %v854_v43  ;;  %v889_v43 = vld [vmem:[#allocation8 + $0x140] sm:$0xff]  ;;  %v7079_v44 = vpack.c.bf16 %v1429_v35, %v1426_v34  ;;  %v931_v35 = vld [vmem:[#allocation8 + $0x290] sm:$0xff] }
 0x275   :  { %5415 = vmatprep.subr.bf16.mxu1 %v5414_v45 }
 0x276   :  { %5389 = vmatpush1.bf16.msra.mxu0 %v5388_v51  ;;  %v708_v51 = vld [vmem:[%s8148_s11] sm:$0x3] }
 0x277   :  { %5391 = vmatprep.subr.bf16.mxu0 %v5390_v52  ;;  %v8156_v52 = vsub.s32 1, %v7012_v48  ;;  %v7021_v53 = vrot.slane %v708_v51, %v8157_v50 }
 0x279   :  { %v7025_v54 = vrot.slane %v708_v51, %v8156_v52  ;;  %v5426_v51 = vpack.c.bf16 %v896_v38, %v890_v37  ;;  %v1450_v37 = vld [vmem:[%s8145_s8 + $0x130] sm:$0xff]  ;;  %v1453_v38 = vld [vmem:[%s8145_s8 + $0x148] sm:$0xff] }
 0x27a   :  { %5393 = vmatpush1.bf16.msra.mxu0 %v5392_v57 }
 0x27b   :  { %5395 = vmatprep.subr.bf16.mxu0 %v5394_v58 }
 0x27e   :  { %5397 = vmatpush1.bf16.msra.mxu0 %v5396_v61 }
 0x27f   :  { %5399 = vmatprep.subr.bf16.mxu0 %v5398_v5  ;;  %v1414_v5 = vld [vmem:[%s8145_s8 + $0x10] sm:$0xff] }
 0x282   :  { %5401 = vmatpush1.bf16.msra.mxu0 %v5400_v6  ;;  %v1417_v6 = vld [vmem:[%s8145_s8 + $0x28] sm:$0xff] }
 0x283   :  { %5403 = vmatprep.subr.bf16.mxu0 %v5402_v17  ;;  %v7040_v14 = vpack.c.bf16 %v1417_v6, %v1414_v5  ;;  %v5418_v17 = vpack.c.bf16 %v872_v8, %v866_v7  ;;  %v907_v6 = vld [vmem:[#allocation8 + $0x1d0] sm:$0xff]  ;;  %v1441_v8 = vld [vmem:[%s8145_s8 + $0xe8] sm:$0xff] }
 0x284   :  { %v1438_v7 = vld [vmem:[%s8145_s8 + $0xd0] sm:$0xff] }
 0x286   :  { %5405 = vmatpush1.bf16.msra.mxu0 %v5404_v18  ;;  %v871_v18 = vld [vmem:[#allocation8 + $0xb0] sm:$0xff] }
 0x287   :  { %5407 = vmatprep.subr.bf16.mxu0 %v5406_v29  ;;  %v5420_v27 = vpack.c.bf16 %v871_v18, %v865_v13  ;;  %v7059_v29 = vpack.c.bf16 %v1423_v20, %v1420_v19  ;;  %v913_v18 = vld [vmem:[#allocation8 + $0x200] sm:$0xff]  ;;  %v7119_v19 = vpack.c.bf16 %v1441_v8, %v1438_v7 }
 0x288   :  { %v1416_v7 = vld [vmem:[%s8145_s8 + $0x20] sm:$0xff] }
 0x28a   :  { %5409 = vmatpush1.bf16.msra.mxu0 %v5408_v30 }
 0x28b   :  { %5411 = vmatprep.subr.bf16.mxu0 %v5410_v41 }
 0x28e   :  { %5413 = vmatpush1.bf16.msra.mxu0 %v5412_v42  ;;  %v5424_v42 = vpack.c.bf16 %v883_v33, %v877_v28 }
 0x28f   :  { %5510 = vmatprep.subr.bf16.mxu0 %v8152_v46 }
 0x324   :  { %v786_v55 = vpop.f32.mrb[16].mxu0 }
 0x325   :  { %v787_v56 = vadd.f32 %v786_v55, %v7021_v53  ;;  %v788_v57 = vpop.f32.mrb[17].mxu0  ;;  %v895_v55 = vld [vmem:[#allocation8 + $0x170] sm:$0xff] }
 0x326   :  { %v789_v58 = vadd.f32 %v788_v57, %v7025_v54  ;;  %v1435_v57 = vld [vmem:[%s8145_s8 + $0xb8] sm:$0xff] }
 0x328   :  { %6449 = vtanh.f32 %v789_v58  ;;  %v792_v59 = vpop.f32.mrb[18].mxu0 }
 0x329   :  { %6451 = vtanh.f32 %v787_v56  ;;  %v793_v60 = vadd.f32 %v792_v59, %v7021_v53  ;;  %v794_v61 = vpop.f32.mrb[19].mxu0  ;;  %v1432_v56 = vld [vmem:[%s8145_s8 + $0xa0] sm:$0xff]  ;;  %v902_v59 = vld [vmem:[#allocation8 + $0x1a8] sm:$0xff] }
 0x32a   :  { %v795_v62 = vadd.f32 %v794_v61, %v7025_v54  ;;  %v7099_v2 = vpack.c.bf16 %v1435_v57, %v1432_v56  ;;  %v943_v56 = vld [vmem:[#allocation8 + $0x2f0] sm:$0xff]  ;;  %v950_v57 = vld [vmem:[#allocation8 + $0x328] sm:$0xff] }
 0x32c   :  { %6453 = vtanh.f32 %v795_v62  ;;  %v798_v63 = vpop.f32.mrb[20].mxu0 }
 0x32d   :  { %6455 = vtanh.f32 %v793_v60  ;;  %v799_v0 = vadd.f32 %v798_v63, %v7021_v53  ;;  %v800_v1 = vpop.f32.mrb[21].mxu0  ;;  %v908_v60 = vld [vmem:[#allocation8 + $0x1d8] sm:$0xff] }
 0x32e   :  { %v801_v3 = vadd.f32 %v800_v1, %v7025_v54  ;;  %v901_v1 = vld [vmem:[#allocation8 + $0x1a0] sm:$0xff]  ;;  %v5430_v5 = vpack.c.bf16 %v908_v60, %v902_v59  ;;  %v956_v60 = vld [vmem:[#allocation8 + $0x358] sm:$0xff] }
 0x330   :  { %6457 = vtanh.f32 %v801_v3  ;;  %v804_v9 = vpop.f32.mrb[22].mxu0 }
 0x331   :  { %6459 = vtanh.f32 %v799_v0  ;;  %v805_v10 = vadd.f32 %v804_v9, %v7021_v53  ;;  %v806_v11 = vpop.f32.mrb[23].mxu0  ;;  %v5428_v0 = vpack.c.bf16 %v895_v55, %v889_v43  ;;  %v7156_v43 = vpack.c.bf16 %v1453_v38, %v1450_v37  ;;  %v937_v55 = vld [vmem:[#allocation8 + $0x2c0] sm:$0xff]  ;;  %v1418_v37 = vld [vmem:[%s8145_s8 + $0x30] sm:$0xff]  ;;  %v1421_v38 = vld [vmem:[%s8145_s8 + $0x48] sm:$0xff] }
 0x332   :  { %v7042_v15 = vpop.eup %6449  ;;  %v807_v16 = vadd.f32 %v806_v11, %v7025_v54  ;;  %v920_v11 = vld [vmem:[#allocation8 + $0x238] sm:$0xff] }
 0x333   :  { %v7051_v21 = vpop.eup %6451  ;;  %1137 = vmatprep.mubr.f32.mxu1 %v7042_v15  ;;  %1250 = vmatprep.mubr.f32.mxu0 %v7042_v15 }
 0x334   :  { %6461 = vtanh.f32 %v807_v16  ;;  %v810_v24 = vpop.f32.mrb[24].mxu0  ;;  %1138 = vmatmul.mubr.f32.vlgmr.msra.gmra.mrb[16].mxu1 %v7051_v21  ;;  %1251 = vmatmul.mubr.f32.vlgmr.msra.gmra.mrb[32].mxu0 %v7051_v21 }
 0x335   :  { %6463 = vtanh.f32 %v805_v10  ;;  %v811_v25 = vadd.f32 %v810_v24, %v7021_v53  ;;  %5417 = vmatpush1.bf16.msra.mxu1 %v5416_v12  ;;  %v812_v26 = vpop.f32.mrb[25].mxu0  ;;  %5512 = vmatpush3.bf16.msra.mxu0 %v7040_v14  ;;  %v914_v10 = vld [vmem:[#allocation8 + $0x208] sm:$0xff]  ;;  %v919_v24 = vld [vmem:[#allocation8 + $0x230] sm:$0xff] }
 0x336   :  { %v7061_v30 = vpop.eup %6453  ;;  %v813_v31 = vadd.f32 %v812_v26, %v7025_v54  ;;  %5419 = vmatprep.subr.bf16.mxu1 %v5418_v17  ;;  %5513 = vmatprep.subr.bf16.mxu0 %v8152_v46  ;;  %v5432_v17 = vpack.c.bf16 %v907_v6, %v901_v1  ;;  %v5434_v23 = vpack.c.bf16 %v920_v11, %v914_v10  ;;  %v1413_v6 = vld [vmem:[%s8145_s8 + $0x8] sm:$0xff] }
 0x337   :  { %v7071_v36 = vpop.eup %6455  ;;  %1143 = vmatprep.mubr.f32.mxu1 %v7061_v30  ;;  %1256 = vmatprep.mubr.f32.mxu0 %v7061_v30  ;;  %v5436_v28 = vpack.c.bf16 %v919_v24, %v913_v18  ;;  %v962_v11 = vld [vmem:[#allocation8 + $0x388] sm:$0xff]  ;;  %v1412_v18 = vld [vmem:[%s8145_s8] sm:$0xff]  ;;  %v967_v24 = vld [vmem:[#allocation8 + $0x3b0] sm:$0xff] }
 0x338   :  { %6465 = vtanh.f32 %v813_v31  ;;  %v816_v39 = vpop.f32.mrb[26].mxu0  ;;  %1144 = vmatmul.mubr.f32.gmra.mrb[18].mxu1 %v7071_v36  ;;  %1257 = vmatmul.mubr.f32.gmra.mrb[34].mxu0 %v7071_v36  ;;  %v925_v31 = vld [vmem:[#allocation8 + $0x260] sm:$0xff] }
 0x339   :  { %6467 = vtanh.f32 %v811_v25  ;;  %v817_v40 = vadd.f32 %v816_v39, %v7021_v53  ;;  %5421 = vmatpush1.bf16.msra.mxu1 %v5420_v27  ;;  %v818_v41 = vpop.f32.mrb[27].mxu0  ;;  %5515 = vmatpush3.bf16.msra.mxu0 %v7059_v29  ;;  %v1447_v25 = vld [vmem:[%s8145_s8 + $0x118] sm:$0xff] }
 0x33a   :  { %v7081_v45 = vpop.eup %6457  ;;  %v819_v47 = vadd.f32 %v818_v41, %v7025_v54  ;;  %5423 = vmatprep.subr.bf16.mxu1 %v5422_v32  ;;  %5516 = vmatprep.subr.bf16.mxu0 %v8152_v46  ;;  %v932_v27 = vld [vmem:[#allocation8 + $0x298] sm:$0xff] }
 0x33b   :  { %v7091_v58 = vpop.eup %6459  ;;  %1149 = vmatprep.mubr.f32.mxu1 %v7081_v45  ;;  %1262 = vmatprep.mubr.f32.mxu0 %v7081_v45  ;;  %v944_v41 = vld [vmem:[#allocation8 + $0x2f8] sm:$0xff] }
 0x33c   :  { %6469 = vtanh.f32 %v819_v47  ;;  %v822_v61 = vpop.f32.mrb[28].mxu0  ;;  %1150 = vmatmul.mubr.f32.gmra.mrb[20].mxu1 %v7091_v58  ;;  %1263 = vmatmul.mubr.f32.gmra.mrb[36].mxu0 %v7091_v58 }
 0x33d   :  { %6471 = vtanh.f32 %v817_v40  ;;  %v823_v62 = vadd.f32 %v822_v61, %v7021_v53  ;;  %5425 = vmatpush1.bf16.msra.mxu1 %v5424_v42  ;;  %v824_v63 = vpop.f32.mrb[29].mxu0  ;;  %5518 = vmatpush3.bf16.msra.mxu0 %v7079_v44  ;;  %v938_v40 = vld [vmem:[#allocation8 + $0x2c8] sm:$0xff]  ;;  %v5440_v42 = vpack.c.bf16 %v931_v35, %v925_v31  ;;  %v1456_v61 = vld [vmem:[%s8145_s8 + $0x160] sm:$0xff] }
 0x33e   :  { %v7101_v3 = vpop.eup %6461  ;;  %v825_v4 = vadd.f32 %v824_v63, %v7025_v54  ;;  %5427 = vmatprep.subr.bf16.mxu1 %v5426_v51  ;;  %5519 = vmatprep.subr.bf16.mxu0 %v8152_v46  ;;  %v5442_v51 = vpack.c.bf16 %v944_v41, %v938_v40  ;;  %v5444_v63 = vpack.c.bf16 %v943_v56, %v937_v55  ;;  %v979_v41 = vld [vmem:[#allocation8 + $0x410] sm:$0xff]  ;;  %v986_v55 = vld [vmem:[#allocation8 + $0x448] sm:$0xff]  ;;  %v992_v56 = vld [vmem:[#allocation8 + $0x478] sm:$0xff] }
 0x33f   :  { %v7111_v9 = vpop.eup %6463  ;;  %1155 = vmatprep.mubr.f32.mxu1 %v7101_v3  ;;  %1268 = vmatprep.mubr.f32.mxu0 %v7101_v3 }
 0x340   :  { %6473 = vtanh.f32 %v825_v4  ;;  %v828_v12 = vpop.f32.mrb[30].mxu0  ;;  %1156 = vmatmul.mubr.f32.gmra.mrb[22].mxu1 %v7111_v9  ;;  %1269 = vmatmul.mubr.f32.gmra.mrb[38].mxu0 %v7111_v9  ;;  %v5446_v4 = vpack.c.bf16 %v956_v60, %v950_v57  ;;  %v7235_v57 = vpack.c.bf16 %v1421_v38, %v1418_v37 }
 0x341   :  { %6475 = vtanh.f32 %v823_v62  ;;  %v829_v13 = vadd.f32 %v828_v12, %v7021_v53  ;;  %5429 = vmatpush1.bf16.msra.mxu1 %v5428_v0  ;;  %v830_v16 = vpop.f32.mrb[31].mxu0  ;;  %5521 = vmatpush3.bf16.msra.mxu0 %v7099_v2  ;;  %v1444_v53 = vld [vmem:[%s8145_s8 + $0x100] sm:$0xff]  ;;  %v1459_v62 = vld [vmem:[%s8145_s8 + $0x178] sm:$0xff] }
 0x342   :  { %v7121_v20 = vpop.eup %6465  ;;  %v831_v22 = vadd.f32 %v830_v16, %v7025_v54  ;;  %5431 = vmatprep.subr.bf16.mxu1 %v5430_v5  ;;  %5522 = vmatprep.subr.bf16.mxu0 %v8152_v46  ;;  %v926_v54 = vld [vmem:[#allocation8 + $0x268] sm:$0xff]  ;;  %v7138_v32 = vpack.c.bf16 %v1447_v25, %v1444_v53  ;;  %v949_v0 = vld [vmem:[#allocation8 + $0x320] sm:$0xff]  ;;  %v955_v5 = vld [vmem:[#allocation8 + $0x350] sm:$0xff]  ;;  %v7183_v8 = vpack.c.bf16 %v1459_v62, %v1456_v61 }
 0x343   :  { %v7131_v26 = vpop.eup %6467  ;;  %1161 = vmatprep.mubr.f32.mxu1 %v7121_v20  ;;  %1274 = vmatprep.mubr.f32.mxu0 %v7121_v20  ;;  %v5438_v34 = vpack.c.bf16 %v932_v27, %v926_v54  ;;  %v968_v12 = vld [vmem:[#allocation8 + $0x3b8] sm:$0xff]  ;;  %v961_v16 = vld [vmem:[#allocation8 + $0x380] sm:$0xff]  ;;  %v974_v25 = vld [vmem:[#allocation8 + $0x3e8] sm:$0xff] }
 0x344   :  { %6477 = vtanh.f32 %v831_v22  ;;  %1162 = vmatmul.mubr.f32.gmra.mrb[24].mxu1 %v7131_v26  ;;  %1275 = vmatmul.mubr.f32.gmra.mrb[40].mxu0 %v7131_v26  ;;  %v1415_v22 = vld [vmem:[%s8145_s8 + $0x18] sm:$0xff]  ;;  %v5452_v31 = vpack.c.bf16 %v967_v24, %v961_v16  ;;  %v985_v61 = vld [vmem:[#allocation8 + $0x440] sm:$0xff]  ;;  %v1433_v24 = vld [vmem:[%s8145_s8 + $0xa8] sm:$0xff] }
 0x345   :  { %6479 = vtanh.f32 %v829_v13  ;;  %5433 = vmatpush1.bf16.msra.mxu1 %v5432_v17  ;;  %5524 = vmatpush3.bf16.msra.mxu0 %v7119_v19  ;;  %v5448_v13 = vpack.c.bf16 %v955_v5, %v949_v0  ;;  %v7192_v17 = vpack.c.bf16 %v1416_v7, %v1413_v6  ;;  %v1419_v53 = vld [vmem:[%s8145_s8 + $0x38] sm:$0xff]  ;;  %v7210_v27 = vpack.c.bf16 %v1415_v22, %v1412_v18  ;;  %v991_v5 = vld [vmem:[#allocation8 + $0x470] sm:$0xff]  ;;  %v997_v18 = vld [vmem:[#allocation8 + $0x4a0] sm:$0xff] }
 0x346   :  { %v7140_v33 = vpop.eup %6469  ;;  %5435 = vmatprep.subr.bf16.mxu1 %v5434_v23  ;;  %5525 = vmatprep.subr.bf16.mxu0 %v8152_v46  ;;  %v5450_v23 = vpack.c.bf16 %v968_v12, %v962_v11  ;;  %v980_v54 = vld [vmem:[#allocation8 + $0x418] sm:$0xff]  ;;  %v1434_v7 = vld [vmem:[%s8145_s8 + $0xb0] sm:$0xff]  ;;  %v998_v11 = vld [vmem:[#allocation8 + $0x4a8] sm:$0xff]  ;;  %v5460_v16 = vpack.c.bf16 %v991_v5, %v985_v61 }
 0x347   :  { %v7149_v39 = vpop.eup %6471  ;;  %1167 = vmatprep.mubr.f32.mxu1 %v7140_v33  ;;  %1280 = vmatprep.mubr.f32.mxu0 %v7140_v33  ;;  %v5454_v40 = vpack.c.bf16 %v980_v54, %v974_v25  ;;  %v1427_v0 = vld [vmem:[%s8145_s8 + $0x78] sm:$0xff]  ;;  %v1437_v25 = vld [vmem:[%s8145_s8 + $0xc8] sm:$0xff]  ;;  %v1440_v54 = vld [vmem:[%s8145_s8 + $0xe0] sm:$0xff] }
 0x348   :  { %1168 = vmatmul.mubr.f32.gmra.mrb[26].mxu1 %v7149_v39  ;;  %1281 = vmatmul.mubr.f32.gmra.mrb[42].mxu0 %v7149_v39  ;;  %v1431_v6 = vld [vmem:[%s8145_s8 + $0x98] sm:$0xff]  ;;  %v1446_v61 = vld [vmem:[%s8145_s8 + $0x110] sm:$0xff] }
 0x349   :  { %5437 = vmatpush1.bf16.msra.mxu1 %v5436_v28  ;;  %5527 = vmatpush3.bf16.msra.mxu0 %v7138_v32  ;;  %v7215_v28 = vld [vmem:[%s8138_s1] sm:$0xff]  ;;  %v1004_v12 = vld [vmem:[#allocation8 + $0x4d8] sm:$0xff]  ;;  %v7255_v22 = vpack.c.bf16 %v1434_v7, %v1431_v6 }
 0x34a   :  { %v7158_v47 = vpop.eup %6473  ;;  %5439 = vmatprep.subr.bf16.mxu1 %v5438_v34  ;;  %5528 = vmatprep.subr.bf16.mxu0 %v8152_v46  ;;  %v973_v34 = vld [vmem:[#allocation8 + $0x3e0] sm:$0xff] }
 0x34b   :  { %v7161_v59 = vpop.eup %6475  ;;  %1173 = vmatprep.mubr.f32.mxu1 %v7158_v47  ;;  %1286 = vmatprep.mubr.f32.mxu0 %v7158_v47  ;;  %v5456_v60 = vpack.c.bf16 %v979_v41, %v973_v34  ;;  %v1016_v34 = vld [vmem:[#allocation8 + $0x538] sm:$0xff]  ;;  %v7273_v41 = vpack.c.bf16 %v1440_v54, %v1437_v25  ;;  %v1021_v6 = vld [vmem:[#allocation8 + $0x560] sm:$0xff] }
 0x34c   :  { %1174 = vmatmul.mubr.f32.gmra.mrb[28].mxu1 %v7161_v59  ;;  %1287 = vmatmul.mubr.f32.gmra.mrb[44].mxu0 %v7161_v59 }
 0x34d   :  { %5441 = vmatpush1.bf16.msra.mxu1 %v5440_v42  ;;  %5530 = vmatpush3.bf16.msra.mxu0 %v7156_v43  ;;  %v1425_v42 = vld [vmem:[%s8145_s8 + $0x68] sm:$0xff] }
 0x34e   :  { %v7174_v1 = vpop.eup %6477  ;;  %5443 = vmatprep.subr.bf16.mxu1 %v5442_v51  ;;  %5531 = vmatprep.subr.bf16.mxu0 %v8152_v46  ;;  %v1428_v51 = vld [vmem:[%s8145_s8 + $0x80] sm:$0xff] }
 0x34f   :  { %v7185_v10 = vpop.eup %6479  ;;  %1179 = vmatprep.mubr.f32.mxu1 %v7174_v1  ;;  %1292 = vmatprep.mubr.f32.mxu0 %v7174_v1  ;;  %v7237_v62 = vpack.c.bf16 %v1428_v51, %v1425_v42  ;;  %v1436_v42 = vld [vmem:[%s8145_s8 + $0xc0] sm:$0xff]  ;;  %v1439_v51 = vld [vmem:[%s8145_s8 + $0xd8] sm:$0xff] }
 0x350   :  { %1180 = vmatmul.mubr.f32.gmra.mrb[30].mxu1 %v7185_v10  ;;  %1293 = vmatmul.mubr.f32.gmra.mrb[46].mxu0 %v7185_v10 }
 0x351   :  { %5445 = vmatpush1.bf16.msra.mxu1 %v5444_v63  ;;  %1363 = vmatprep.mubr.f32.mxu1 %v7042_v15  ;;  %v1422_v15 = vld [vmem:[%s8145_s8 + $0x50] sm:$0xff]  ;;  %v1424_v63 = vld [vmem:[%s8145_s8 + $0x60] sm:$0xff] }
 0x352   :  { %5447 = vmatprep.subr.bf16.mxu1 %v5446_v4  ;;  %5533 = vmatpush3.bf16.msra.mxu0 %v7183_v8  ;;  %v7217_v35 = vpack.c.bf16 %v1422_v15, %v1419_v53  ;;  %v5458_v4 = vpack.c.bf16 %v992_v56, %v986_v55  ;;  %v5462_v53 = vpack.c.bf16 %v1004_v12, %v998_v11  ;;  %v1003_v15 = vld [vmem:[#allocation8 + $0x4d0] sm:$0xff]  ;;  %v1445_v12 = vld [vmem:[%s8145_s8 + $0x108] sm:$0xff] }
 0x353   :  { %4598 = vmatprep.mubr.msk.f32.mxu0 %vm6682_vm0, %v8154_v49  ;;  %5535 = vmatprep.subr.bf16.mxu0 %v7192_v17  ;;  %v5464_v38 = vpack.c.bf16 %v1003_v15, %v997_v18  ;;  %v1015_v56 = vld [vmem:[#allocation8 + $0x530] sm:$0xff]  ;;  %v1040_v15 = vld [vmem:[#allocation8 + $0x5f8] sm:$0xff] }
 0x354   :  { %v1442_v11 = vld [vmem:[%s8145_s8 + $0xf0] sm:$0xff] }
 0x355   :  { %5449 = vmatpush1.bf16.msra.mxu1 %v5448_v13  ;;  %4599 = vmatmul.mubr.f32.vlgmr.msra.gmra.mrb[48].mxu0 %v7215_v28  ;;  %v7253_v13 = vpack.c.bf16 %v1427_v0, %v1424_v63  ;;  %v1022_v63 = vld [vmem:[#allocation8 + $0x568] sm:$0xff]  ;;  %v1028_v0 = vld [vmem:[#allocation8 + $0x598] sm:$0xff]  ;;  %v1027_v18 = vld [vmem:[#allocation8 + $0x590] sm:$0xff]  ;;  %v7307_v25 = vpack.c.bf16 %v1445_v12, %v1442_v11 }
 0x356   :  { %5451 = vmatprep.subr.bf16.mxu1 %v5450_v23  ;;  %5537 = vmatpush1.bf16.msra.mxu0 %v7210_v27  ;;  %v1430_v23 = vld [vmem:[%s8145_s8 + $0x90] sm:$0xff]  ;;  %v5472_v54 = vpack.c.bf16 %v1027_v18, %v1021_v6 }
 0x357   :  { %5539 = vmatprep.subr.bf16.mxu0 %v7217_v35  ;;  %1690 = vmatprep.mubr.f32.mxu0 %v8154_v49  ;;  %v7271_v37 = vpack.c.bf16 %v1433_v24, %v1430_v23  ;;  %v1449_v23 = vld [vmem:[%s8145_s8 + $0x128] sm:$0xff]  ;;  %v1452_v24 = vld [vmem:[%s8145_s8 + $0x140] sm:$0xff] }
 0x359   :  { %5453 = vmatpush1.bf16.msra.mxu1 %v5452_v31  ;;  %v1010_v31 = vld [vmem:[#allocation8 + $0x508] sm:$0xff] }
 0x35a   :  { %5455 = vmatprep.subr.bf16.mxu1 %v5454_v40  ;;  %5541 = vmatpush1.bf16.msra.mxu0 %v7235_v57  ;;  %v1009_v40 = vld [vmem:[#allocation8 + $0x500] sm:$0xff]  ;;  %v5466_v55 = vpack.c.bf16 %v1016_v34, %v1010_v31  ;;  %v7309_v34 = vpack.c.bf16 %v1452_v24, %v1449_v23 }
 0x35b   :  { %5543 = vmatprep.subr.bf16.mxu0 %v7237_v62  ;;  %v5468_v5 = vpack.c.bf16 %v1015_v56, %v1009_v40  ;;  %v1033_v31 = vld [vmem:[#allocation8 + $0x5c0] sm:$0xff]  ;;  %v1451_v40 = vld [vmem:[%s8145_s8 + $0x138] sm:$0xff]  ;;  %v1458_v56 = vld [vmem:[%s8145_s8 + $0x170] sm:$0xff] }
 0x35d   :  { %5457 = vmatpush1.bf16.msra.mxu1 %v5456_v60  ;;  %v1443_v60 = vld [vmem:[%s8145_s8 + $0xf8] sm:$0xff] }
 0x35e   :  { %5459 = vmatprep.subr.bf16.mxu1 %v5458_v4  ;;  %5545 = vmatpush1.bf16.msra.mxu0 %v7253_v13  ;;  %v7289_v4 = vpack.c.bf16 %v1439_v51, %v1436_v42  ;;  %v7291_v7 = vpack.c.bf16 %v1446_v61, %v1443_v60  ;;  %v1039_v51 = vld [vmem:[#allocation8 + $0x5f0] sm:$0xff] }
 0x35f   :  { %5547 = vmatprep.subr.bf16.mxu0 %v7255_v22  ;;  %v5476_v61 = vpack.c.bf16 %v1039_v51, %v1033_v31 }
 0x361   :  { %5461 = vmatpush1.bf16.msra.mxu1 %v5460_v16  ;;  %v5470_v16 = vpack.c.bf16 %v1028_v0, %v1022_v63  ;;  %v1454_v0 = vld [vmem:[%s8145_s8 + $0x150] sm:$0xff] }
 0x362   :  { %5463 = vmatprep.subr.bf16.mxu1 %v5462_v53  ;;  %5549 = vmatpush1.bf16.msra.mxu0 %v7271_v37  ;;  %v1034_v53 = vld [vmem:[#allocation8 + $0x5c8] sm:$0xff] }
 0x363   :  { %5551 = vmatprep.subr.bf16.mxu0 %v7273_v41  ;;  %v5474_v42 = vpack.c.bf16 %v1040_v15, %v1034_v53 }
 0x365   :  { %5465 = vmatpush1.bf16.msra.mxu1 %v5464_v38  ;;  %v1448_v38 = vld [vmem:[%s8145_s8 + $0x120] sm:$0xff] }
 0x366   :  { %5467 = vmatprep.subr.bf16.mxu1 %v5466_v55  ;;  %5553 = vmatpush1.bf16.msra.mxu0 %v7289_v4  ;;  %v1455_v55 = vld [vmem:[%s8145_s8 + $0x158] sm:$0xff]  ;;  %v7325_v60 = vpack.c.bf16 %v1451_v40, %v1448_v38 }
 0x367   :  { %5555 = vmatprep.subr.bf16.mxu0 %v7291_v7  ;;  %v7327_v63 = vpack.c.bf16 %v1458_v56, %v1455_v55 }
 0x369   :  { %5469 = vmatpush1.bf16.msra.mxu1 %v5468_v5  ;;  %v1457_v5 = vld [vmem:[%s8145_s8 + $0x168] sm:$0xff] }
 0x36a   :  { %5471 = vmatprep.subr.bf16.mxu1 %v5470_v16  ;;  %5557 = vmatpush1.bf16.msra.mxu0 %v7307_v25  ;;  %v7337_v6 = vpack.c.bf16 %v1457_v5, %v1454_v0 }
 0x36b   :  { %5559 = vmatprep.subr.bf16.mxu0 %v7309_v34 }
 0x36d   :  { %5473 = vmatpush1.bf16.msra.mxu1 %v5472_v54 }
 0x36e   :  { %5475 = vmatprep.subr.bf16.mxu1 %v5474_v42  ;;  %5561 = vmatpush1.bf16.msra.mxu0 %v7325_v60 }
 0x36f   :  { %5563 = vmatprep.subr.bf16.mxu0 %v7327_v63 }
 0x371   :  { %5477 = vmatpush1.bf16.msra.mxu1 %v5476_v61 }
 0x372   :  { %5479 = vmatprep.subr.bf16.mxu1 %v7192_v17  ;;  %5565 = vmatpush1.bf16.msra.mxu0 %v7337_v6 }
 0x373   :  { %5566 = vmatprep.subr.bf16.mxu0 %v8152_v46 }
 0x374   :  { %1364 = vmatmul.mubr.f32.vlgmr.msra.gmra.mrb[32].mxu1 %v7051_v21  ;;  %v1053_v21 = vsub.s32 2, %v7012_v48 }
 0x375   :  { %1369 = vmatprep.mubr.f32.mxu1 %v7061_v30  ;;  %5481 = vmatpush1.bf16.msra.mxu1 %v7210_v27  ;;  %v7396_v30 = vld [vmem:[%s8149_s12] sm:$0x3f] }
 0x376   :  { %5483 = vmatprep.subr.bf16.mxu1 %v7217_v35 }
 0x378   :  { %1370 = vmatmul.mubr.f32.gmra.mrb[34].mxu1 %v7071_v36 }
 0x379   :  { %1375 = vmatprep.mubr.f32.mxu1 %v7081_v45  ;;  %5485 = vmatpush1.bf16.msra.mxu1 %v7235_v57  ;;  %v1057_v45 = vsub.s32 3, %v7012_v48 }
 0x37a   :  { %5487 = vmatprep.subr.bf16.mxu1 %v7237_v62 }
 0x37c   :  { %1376 = vmatmul.mubr.f32.gmra.mrb[36].mxu1 %v7091_v58 }
 0x37d   :  { %1381 = vmatprep.mubr.f32.mxu1 %v7101_v3  ;;  %5489 = vmatpush1.bf16.msra.mxu1 %v7253_v13  ;;  %v7404_v3 = vrot.slane %v7396_v30, %v1053_v21 }
 0x37e   :  { %5491 = vmatprep.subr.bf16.mxu1 %v7255_v22 }
 0x380   :  { %1382 = vmatmul.mubr.f32.gmra.mrb[38].mxu1 %v7111_v9  ;;  %v7407_v9 = vrot.slane %v7396_v30, %v1057_v45 }
 0x381   :  { %1387 = vmatprep.mubr.f32.mxu1 %v7121_v20  ;;  %5493 = vmatpush1.bf16.msra.mxu1 %v7271_v37 }
 0x382   :  { %5495 = vmatprep.subr.bf16.mxu1 %v7273_v41 }
 0x384   :  { %1388 = vmatmul.mubr.f32.gmra.mrb[40].mxu1 %v7131_v26 }
 0x385   :  { %1393 = vmatprep.mubr.f32.mxu1 %v7140_v33  ;;  %5497 = vmatpush1.bf16.msra.mxu1 %v7289_v4 }
 0x386   :  { %5499 = vmatprep.subr.bf16.mxu1 %v7291_v7 }
 0x388   :  { %1394 = vmatmul.mubr.f32.gmra.mrb[42].mxu1 %v7149_v39 }
 0x389   :  { %1399 = vmatprep.mubr.f32.mxu1 %v7158_v47  ;;  %5501 = vmatpush1.bf16.msra.mxu1 %v7307_v25 }
 0x38a   :  { %5503 = vmatprep.subr.bf16.mxu1 %v7309_v34 }
 0x38c   :  { %1400 = vmatmul.mubr.f32.gmra.mrb[44].mxu1 %v7161_v59 }
 0x38d   :  { %1405 = vmatprep.mubr.f32.mxu1 %v7174_v1  ;;  %5505 = vmatpush1.bf16.msra.mxu1 %v7325_v60 }
 0x38e   :  { %5507 = vmatprep.subr.bf16.mxu1 %v7327_v63 }
 0x390   :  { %1406 = vmatmul.mubr.f32.gmra.mrb[46].mxu1 %v7185_v10 }
 0x391   :  { %5509 = vmatpush1.bf16.msra.mxu1 %v7337_v6  ;;  %1526 = vmatprep.mubr.f32.mxu1 %v8154_v49 }
 0x392   :  { %5591 = vmatprep.subr.bf16.mxu1 %v7192_v17 }
 0x394   :  { %1527 = vmatmul.mubr.f32.vlgmr.msra.gmra.mrb[16].mxu1 %v7215_v28 }
 0x395   :  { %5593 = vmatpush1.bf16.msra.mxu1 %v7210_v27  ;;  %1850 = vmatprep.mubr.f32.mxu1 %v8154_v49 }
 0x396   :  { %5595 = vmatprep.subr.bf16.mxu1 %v7217_v35 }
 0x399   :  { %5597 = vmatpush1.bf16.msra.mxu1 %v7235_v57 }
 0x39a   :  { %5599 = vmatprep.subr.bf16.mxu1 %v7237_v62 }
 0x39d   :  { %5601 = vmatpush1.bf16.msra.mxu1 %v7253_v13 }
 0x39e   :  { %5603 = vmatprep.subr.bf16.mxu1 %v7255_v22 }
 0x3a1   :  { %5605 = vmatpush1.bf16.msra.mxu1 %v7271_v37 }
 0x3a2   :  { %5607 = vmatprep.subr.bf16.mxu1 %v7273_v41 }
 0x3a5   :  { %5609 = vmatpush1.bf16.msra.mxu1 %v7289_v4 }
 0x3a6   :  { %5611 = vmatprep.subr.bf16.mxu1 %v7291_v7 }
 0x3a9   :  { %5613 = vmatpush1.bf16.msra.mxu1 %v7307_v25 }
 0x3aa   :  { %5615 = vmatprep.subr.bf16.mxu1 %v7309_v34 }
 0x3ad   :  { %5617 = vmatpush1.bf16.msra.mxu1 %v7325_v60 }
 0x3ae   :  { %5619 = vmatprep.subr.bf16.mxu1 %v7327_v63 }
 0x3b1   :  { %5621 = vmatpush1.bf16.msra.mxu1 %v7337_v6 }
 0x3b2   :  { %5647 = vmatprep.subr.bf16.mxu1 %v7192_v17 }
 0x407   :  { %v7398_v36 = vpop.f32.mrb[32].mxu0 }
 0x408   :  { %v7401_v58 = vpop.f32.mrb[33].mxu0 }
 0x40b   :  { %v1258_v20 = vpop.f32.mrb[34].mxu0 }
 0x40c   :  { %v7410_v26 = vadd.f32 %v1258_v20, %v7404_v3  ;;  %v1260_v33 = vpop.f32.mrb[35].mxu0 }
 0x40d   :  { %v7413_v39 = vadd.f32 %v1260_v33, %v7407_v9  ;;  %v1061_v33 = vsub.s32 4, %v7012_v48 }
 0x40f   :  { %v1264_v47 = vpop.f32.mrb[36].mxu0 }
 0x410   :  { %v7416_v59 = vadd.f32 %v1264_v47, %v7404_v3  ;;  %v1266_v1 = vpop.f32.mrb[37].mxu0 }
 0x411   :  { %v7419_v10 = vadd.f32 %v1266_v1, %v7407_v9  ;;  %v1065_v1 = vsub.s32 5, %v7012_v48 }
 0x413   :  { %v1270_v11 = vpop.f32.mrb[38].mxu0 }
 0x414   :  { %v7422_v12 = vadd.f32 %v1270_v11, %v7404_v3  ;;  %v1272_v16 = vpop.f32.mrb[39].mxu0 }
 0x415   :  { %v7425_v18 = vadd.f32 %v1272_v16, %v7407_v9  ;;  %v7458_v16 = vrot.slane %v7396_v30, %v1061_v33 }
 0x417   :  { %v1276_v23 = vpop.f32.mrb[40].mxu0 }
 0x418   :  { %v7428_v24 = vadd.f32 %v1276_v23, %v7404_v3  ;;  %v1278_v53 = vpop.f32.mrb[41].mxu0  ;;  %v7461_v23 = vrot.slane %v7396_v30, %v1065_v1 }
 0x419   :  { %v7431_v15 = vadd.f32 %v1278_v53, %v7407_v9 }
 0x41a   :  { %8158 = vst [vmem:[#allocation13_spill] sm:$0xff] %v7428_v24 }
 0x41b   :  { %8159 = vst [vmem:[#allocation14_spill] sm:$0xff] %v7431_v15  ;;  %v1282_v54 = vpop.f32.mrb[42].mxu0 }
 0x41c   :  { %v7434_v31 = vadd.f32 %v1282_v54, %v7404_v3  ;;  %v1284_v38 = vpop.f32.mrb[43].mxu0 }
 0x41d   :  { %v7437_v40 = vadd.f32 %v1284_v38, %v7407_v9 }
 0x41e   :  { %8160 = vst [vmem:[#allocation15_spill] sm:$0xff] %v7434_v31 }
 0x41f   :  { %8161 = vst [vmem:[#allocation16_spill] sm:$0xff] %v7437_v40  ;;  %v1288_v42 = vpop.f32.mrb[44].mxu0 }
 0x420   :  { %v7440_v51 = vadd.f32 %v1288_v42, %v7404_v3  ;;  %v1290_v55 = vpop.f32.mrb[45].mxu0 }
 0x421   :  { %v7443_v56 = vadd.f32 %v1290_v55, %v7407_v9 }
 0x422   :  { %8162 = vst [vmem:[#allocation17_spill] sm:$0xff] %v7440_v51 }
 0x423   :  { %8163 = vst [vmem:[#allocation18_spill] sm:$0xff] %v7443_v56  ;;  %v1294_v61 = vpop.f32.mrb[46].mxu0 }
 0x424   :  { %v7446_v0 = vadd.f32 %v1294_v61, %v7404_v3  ;;  %v1296_v5 = vpop.f32.mrb[47].mxu0 }
 0x425   :  { %v7449_v21 = vadd.f32 %v1296_v5, %v7407_v9 }
 0x426   :  { %8164 = vst [vmem:[#allocation19_spill] sm:$0xff] %v7446_v0 }
 0x427   :  { %8165 = vst [vmem:[#allocation20_spill] sm:$0xff] %v7449_v21 }
 0x428   :  { %v1599_v45 = vpop.f32.mrb[48].mxu0 }
 0x429   :  { %v4600_v20 = vpop.f32.mrb[49].mxu0 }
 0x447   :  { %v7452_v47 = vpop.f32.mrb[32].mxu1 }
 0x448   :  { %v7455_v11 = vpop.f32.mrb[33].mxu1 }
 0x44b   :  { %v1371_v53 = vpop.f32.mrb[34].mxu1 }
 0x44c   :  { %v7464_v54 = vadd.f32 %v1371_v53, %v7458_v16  ;;  %v1373_v38 = vpop.f32.mrb[35].mxu1 }
 0x44d   :  { %v7467_v42 = vadd.f32 %v1373_v38, %v7461_v23 }
 0x44f   :  { %v1377_v55 = vpop.f32.mrb[36].mxu1 }
 0x450   :  { %v7470_v61 = vadd.f32 %v1377_v55, %v7458_v16  ;;  %v1379_v5 = vpop.f32.mrb[37].mxu1 }
 0x451   :  { %v7473_v20 = vadd.f32 %v1379_v5, %v7461_v23 }
 0x453   :  { %v1383_v33 = vpop.f32.mrb[38].mxu1 }
 0x454   :  { %v7476_v1 = vadd.f32 %v1383_v33, %v7458_v16  ;;  %v1385_v46 = vpop.f32.mrb[39].mxu1 }
 0x455   :  { %v7479_v53 = vadd.f32 %v1385_v46, %v7461_v23 }
 0x457   :  { %v1389_v49 = vpop.f32.mrb[40].mxu1 }
 0x458   :  { %v7482_v38 = vadd.f32 %v1389_v49, %v7458_v16  ;;  %v1391_v52 = vpop.f32.mrb[41].mxu1 }
 0x459   :  { %v7485_v55 = vadd.f32 %v1391_v52, %v7461_v23 }
 0x45a   :  { %8166 = vst [vmem:[#allocation21_spill] sm:$0xff] %v7482_v38 }
 0x45b   :  { %8167 = vst [vmem:[#allocation22_spill] sm:$0xff] %v7485_v55  ;;  %v1395_v50 = vpop.f32.mrb[42].mxu1 }
 0x45c   :  { %v7488_v5 = vadd.f32 %v1395_v50, %v7458_v16  ;;  %v1397_v21 = vpop.f32.mrb[43].mxu1  ;;  %v8173_v50 = vsub.s32 0, %v7012_v48 }
 0x45d   :  { %v7491_v33 = vadd.f32 %v1397_v21, %v7461_v23 }
 0x45e   :  { %8168 = vst [vmem:[#allocation23_spill] sm:$0xff] %v7488_v5  ;;  %v7505_v5 = vrot.slane %v7396_v30, %v8173_v50  ;;  %v7520_v50 = vld [vmem:[%s8150_s13] ss:$0 sm:$0xff] }
 0x45f   :  { %8169 = vst [vmem:[#allocation24_spill] sm:$0xff] %v7491_v33  ;;  %v1401_v0 = vpop.f32.mrb[44].mxu1 }
 0x460   :  { %v7494_v46 = vadd.f32 %v1401_v0, %v7458_v16  ;;  %v1403_v56 = vpop.f32.mrb[45].mxu1 }
 0x461   :  { %v7497_v49 = vadd.f32 %v1403_v56, %v7461_v23  ;;  %v8175_v56 = vsub.s32 1, %v7012_v48  ;;  %v1253_v48 = vadd.f32 %v7398_v36, %v7404_v3  ;;  %v8176_v36 = vmov 0.0  }
 0x462   :  { %8170 = vst [vmem:[#allocation25_spill] sm:$0xff] %v7494_v46  ;;  %v8177_v3 = vmov 0.0|0.0  }
 0x463   :  { %8171 = vst [vmem:[#allocation26_spill] sm:$0xff] %v7497_v49  ;;  %v1407_v51 = vpop.f32.mrb[46].mxu1 }
 0x464   :  { %v7500_v52 = vadd.f32 %v1407_v51, %v7458_v16  ;;  %v1409_v40 = vpop.f32.mrb[47].mxu1  ;;  %v7514_v51 = vrot.slane %v7396_v30, %v8175_v56 }
 0x465   :  { %v7508_v21 = vadd.f32 %v1409_v40, %v7461_v23 }
 0x466   :  { %8172 = vst [vmem:[#allocation27_spill] sm:$0xff] %v7500_v52 }
 0x467   :  { %8174 = vst [vmem:[#allocation28_spill] sm:$0xff] %v7508_v21  ;;  %v1528_v33 = vpop.f32.mrb[16].mxu1 }
 0x468   :  { %v6374_v0 = vadd.f32 %v1528_v33, %v7505_v5  ;;  %v1530_v46 = vpop.f32.mrb[17].mxu1  ;;  %v1619_v33 = vadd.f32 %v7520_v50, %v1599_v45 }
 0x469   :  { %v6375_v52 = vadd.f32 %v1530_v46, %v7514_v51 }
 0x46a   :  { %v1604_v31 = vmul.f32 0.5, %v6374_v0 }
 0x46b   :  { %v1609_v40 = vmul.f32 0.5, %v6375_v52 }
 0x46c   :  { %6481 = vtanh.f32 %v1604_v31 }
 0x46d   :  { %6483 = vtanh.f32 %v1609_v40 }
 0x476   :  { %v6482_v21 = vpop.eup %6481 }
 0x477   :  { %v1606_v49 = vmul.f32 0.5, %v6482_v21  ;;  %v6484_v56 = vpop.eup %6483 }
 0x478   :  { %v1611_v46 = vmul.f32 0.5, %v6484_v56 }
 0x479   :  { %v1607_v0 = vadd.f32 0.5, %v1606_v49 }
 0x47a   :  { %v1612_v38 = vadd.f32 0.5, %v1611_v46 }
 0x47b   :  { %v1620_v31 = vmul.f32 %v1619_v33, %v1607_v0 }
 0x47d   :  { %v1621_v30 = vadd.f32 %v1620_v31, %v1253_v48 }
 0x47f   :  { %6485 = vtanh.f32 %v1621_v30 }
 0x489   :  { %v6486_v55 = vpop.eup %6485 }
 0x48a   :  { %v1623_v15 = vsub.f32 %v7215_v28, %v6486_v55  ;;  %v1255_v28 = vadd.f32 %v7401_v58, %v7407_v9  ;;  %v1368_v58 = vadd.f32 %v7455_v11, %v7461_v23 }
 0x48c   :  { %v1624_v24 = vmul.f32 %v1623_v15, %v1612_v38 }
 0x48e   :  { %v7526_v52 = vadd.f32 %v6486_v55, %v1624_v24  ;;  %v1366_v24 = vadd.f32 %v7452_v47, %v7458_v16 }
 0x490   :  { %1691 = vmatmul.mubr.f32.vlgmr.msra.gmra.mrb[50].mxu0 %v7526_v52  ;;  %1784 = vst [vmem:[%s8151_s14] sm:$0xff] %v7526_v52 }
 0x491   :  { %5568 = vmatpush3.bf16.msra.mxu0 %v7040_v14  ;;  %4633 = vmatprep.mubr.msk.f32.mxu0 %vm6682_vm0, %v8176_v36 }
 0x492   :  { %5569 = vmatprep.subr.bf16.mxu0 %v8177_v3 }
 0x495   :  { %5571 = vmatpush3.bf16.msra.mxu0 %v7059_v29 }
 0x496   :  { %5572 = vmatprep.subr.bf16.mxu0 %v8177_v3 }
 0x499   :  { %5574 = vmatpush3.bf16.msra.mxu0 %v7079_v44 }
 0x49a   :  { %5575 = vmatprep.subr.bf16.mxu0 %v8177_v3 }
 0x49d   :  { %5577 = vmatpush3.bf16.msra.mxu0 %v7099_v2 }
 0x49e   :  { %5578 = vmatprep.subr.bf16.mxu0 %v8177_v3 }
 0x4a1   :  { %5580 = vmatpush3.bf16.msra.mxu0 %v7119_v19 }
 0x4a2   :  { %5581 = vmatprep.subr.bf16.mxu0 %v8177_v3 }
 0x4a5   :  { %5583 = vmatpush3.bf16.msra.mxu0 %v7138_v32 }
 0x4a6   :  { %5584 = vmatprep.subr.bf16.mxu0 %v8177_v3 }
 0x4a9   :  { %5586 = vmatpush3.bf16.msra.mxu0 %v7156_v43 }
 0x4aa   :  { %5587 = vmatprep.subr.bf16.mxu0 %v8177_v3 }
 0x4ad   :  { %5589 = vmatpush3.bf16.msra.mxu0 %v7183_v8 }
 0x4ae   :  { %5622 = vmatprep.subr.bf16.mxu0 %v8177_v3 }
 0x4b0   :  { %4634 = vmatmul.mubr.f32.vlgmr.msra.gmra.mrb[52].mxu0 %v7526_v52 }
 0x4b1   :  { %5624 = vmatpush3.bf16.msra.mxu0 %v7040_v14  ;;  %4668 = vmatprep.mubr.msk.f32.mxu0 %vm6682_vm0, %v8176_v36 }
 0x4b2   :  { %5625 = vmatprep.subr.bf16.mxu0 %v8177_v3 }
 0x4b5   :  { %5627 = vmatpush3.bf16.msra.mxu0 %v7059_v29 }
 0x4b6   :  { %5628 = vmatprep.subr.bf16.mxu0 %v8177_v3 }
 0x4b9   :  { %5630 = vmatpush3.bf16.msra.mxu0 %v7079_v44 }
 0x4ba   :  { %5631 = vmatprep.subr.bf16.mxu0 %v8177_v3 }
 0x4bd   :  { %5633 = vmatpush3.bf16.msra.mxu0 %v7099_v2 }
 0x4be   :  { %5634 = vmatprep.subr.bf16.mxu0 %v8177_v3 }
 0x4c1   :  { %5636 = vmatpush3.bf16.msra.mxu0 %v7119_v19 }
 0x4c2   :  { %5637 = vmatprep.subr.bf16.mxu0 %v8177_v3 }
 0x4c5   :  { %5639 = vmatpush3.bf16.msra.mxu0 %v7138_v32 }
 0x4c6   :  { %5640 = vmatprep.subr.bf16.mxu0 %v8177_v3 }
 0x4c9   :  { %5642 = vmatpush3.bf16.msra.mxu0 %v7156_v43 }
 0x4ca   :  { %5643 = vmatprep.subr.bf16.mxu0 %v8177_v3 }
 0x4cd   :  { %5645 = vmatpush3.bf16.msra.mxu0 %v7183_v8 }
 0x4ce   :  { %5678 = vmatprep.subr.bf16.mxu0 %v8177_v3 }
 0x563   :  { %v1692_v15 = vpop.f32.mrb[50].mxu0 }
 0x564   :  { %v1767_v45 = vadd.f32 %v1692_v15, %v1255_v28  ;;  %v1694_v38 = vpop.f32.mrb[51].mxu0 }
 0x565   :  { %v1772_v55 = vadd.f32 %v1694_v38, %v1366_v24 }
 0x566   :  { %v1768_v49 = vmul.f32 0.5, %v1767_v45 }
 0x567   :  { %v1773_v33 = vmul.f32 0.5, %v1772_v55 }
 0x568   :  { %6487 = vtanh.f32 %v1768_v49 }
 0x569   :  { %6489 = vtanh.f32 %v1773_v33 }
 0x572   :  { %v6488_v21 = vpop.eup %6487 }
 0x573   :  { %v1770_v40 = vmul.f32 0.5, %v6488_v21  ;;  %v6490_v16 = vpop.eup %6489 }
 0x574   :  { %v1775_v56 = vmul.f32 0.5, %v6490_v16 }
 0x575   :  { %v1771_v48 = vadd.f32 0.5, %v1770_v40 }
 0x576   :  { %v1776_v28 = vadd.f32 0.5, %v1775_v56 }
 0x583   :  { %v1763_v0 = vpop.f32.mrb[52].mxu0 }
 0x584   :  { %v1777_v31 = vadd.f32 %v7520_v50, %v1763_v0  ;;  %v4635_v30 = vpop.f32.mrb[53].mxu0 }
 0x586   :  { %v1778_v9 = vmul.f32 %v1777_v31, %v1771_v48 }
 0x588   :  { %v1779_v47 = vadd.f32 %v1778_v9, %v1368_v58 }
 0x58a   :  { %6491 = vtanh.f32 %v1779_v47 }
 0x594   :  { %v6492_v46 = vpop.eup %6491 }
 0x595   :  { %v1781_v24 = vsub.f32 %v7526_v52, %v6492_v46 }
 0x597   :  { %v1782_v15 = vmul.f32 %v1781_v24, %v1776_v28 }
 0x599   :  { %v1783_v45 = vadd.f32 %v6492_v46, %v1782_v15 }
 0x59b   :  { %1785 = vst [vmem:[%s8151_s14 + $0x8] sm:$0xff] %v1783_v45  ;;  %1851 = vmatmul.mubr.f32.vlgmr.msra.gmra.mrb[18].mxu1 %v1783_v45  ;;  %4669 = vmatmul.mubr.f32.vlgmr.msra.gmra.mrb[54].mxu0 %v1783_v45 }
 0x59c   :  { %5649 = vmatpush1.bf16.msra.mxu1 %v7210_v27  ;;  %5680 = vmatpush3.bf16.msra.mxu0 %v7040_v14 }
 0x59d   :  { %5651 = vmatprep.subr.bf16.mxu1 %v7217_v35  ;;  %5681 = vmatprep.subr.bf16.mxu0 %v8177_v3 }
 0x59e   :  { %2008 = vmatprep.mubr.f32.mxu1 %v8176_v36  ;;  %4703 = vmatprep.mubr.msk.f32.mxu0 %vm6682_vm0, %v8176_v36 }
 0x5a0   :  { %5653 = vmatpush1.bf16.msra.mxu1 %v7235_v57  ;;  %5683 = vmatpush3.bf16.msra.mxu0 %v7059_v29 }
 0x5a1   :  { %5655 = vmatprep.subr.bf16.mxu1 %v7237_v62  ;;  %5684 = vmatprep.subr.bf16.mxu0 %v8177_v3 }
 0x5a4   :  { %5657 = vmatpush1.bf16.msra.mxu1 %v7253_v13  ;;  %5686 = vmatpush3.bf16.msra.mxu0 %v7079_v44 }
 0x5a5   :  { %5659 = vmatprep.subr.bf16.mxu1 %v7255_v22  ;;  %5687 = vmatprep.subr.bf16.mxu0 %v8177_v3 }
 0x5a8   :  { %5661 = vmatpush1.bf16.msra.mxu1 %v7271_v37  ;;  %5689 = vmatpush3.bf16.msra.mxu0 %v7099_v2 }
 0x5a9   :  { %5663 = vmatprep.subr.bf16.mxu1 %v7273_v41  ;;  %5690 = vmatprep.subr.bf16.mxu0 %v8177_v3 }
 0x5ac   :  { %5665 = vmatpush1.bf16.msra.mxu1 %v7289_v4  ;;  %5692 = vmatpush3.bf16.msra.mxu0 %v7119_v19 }
 0x5ad   :  { %5667 = vmatprep.subr.bf16.mxu1 %v7291_v7  ;;  %5693 = vmatprep.subr.bf16.mxu0 %v8177_v3 }
 0x5b0   :  { %5669 = vmatpush1.bf16.msra.mxu1 %v7307_v25  ;;  %5695 = vmatpush3.bf16.msra.mxu0 %v7138_v32 }
 0x5b1   :  { %5671 = vmatprep.subr.bf16.mxu1 %v7309_v34  ;;  %5696 = vmatprep.subr.bf16.mxu0 %v8177_v3 }
 0x5b4   :  { %5673 = vmatpush1.bf16.msra.mxu1 %v7325_v60  ;;  %5698 = vmatpush3.bf16.msra.mxu0 %v7156_v43 }
 0x5b5   :  { %5675 = vmatprep.subr.bf16.mxu1 %v7327_v63  ;;  %5699 = vmatprep.subr.bf16.mxu0 %v8177_v3 }
 0x5b8   :  { %5677 = vmatpush1.bf16.msra.mxu1 %v7337_v6  ;;  %5701 = vmatpush3.bf16.msra.mxu0 %v7183_v8 }
 0x5b9   :  { %5703 = vmatprep.subr.bf16.mxu1 %v7192_v17  ;;  %5734 = vmatprep.subr.bf16.mxu0 %v8177_v3 }
 0x66e   :  { %v1852_v11 = vpop.f32.mrb[18].mxu1  ;;  %v1923_v23 = vpop.f32.mrb[54].mxu0 }
 0x66f   :  { %v6376_v52 = vadd.f32 %v1852_v11, %v7505_v5  ;;  %v1854_v38 = vpop.f32.mrb[19].mxu1  ;;  %v4670_v55 = vpop.f32.mrb[55].mxu0  ;;  %v1937_v31 = vadd.f32 %v7520_v50, %v1923_v23 }
 0x670   :  { %v6377_v21 = vadd.f32 %v1854_v38, %v7514_v51 }
 0x671   :  { %v1928_v49 = vmul.f32 0.5, %v6376_v52 }
 0x672   :  { %v1933_v40 = vmul.f32 0.5, %v6377_v21 }
 0x673   :  { %6493 = vtanh.f32 %v1928_v49 }
 0x674   :  { %6495 = vtanh.f32 %v1933_v40 }
 0x67d   :  { %v6494_v33 = vpop.eup %6493 }
 0x67e   :  { %v1930_v0 = vmul.f32 0.5, %v6494_v33  ;;  %v6496_v9 = vpop.eup %6495 }
 0x67f   :  { %v1935_v47 = vmul.f32 0.5, %v6496_v9 }
 0x680   :  { %v1931_v48 = vadd.f32 0.5, %v1930_v0 }
 0x681   :  { %v1936_v56 = vadd.f32 0.5, %v1935_v47 }
 0x682   :  { %v1938_v30 = vmul.f32 %v1937_v31, %v1931_v48 }
 0x684   :  { %v1939_v58 = vadd.f32 %v1938_v30, %v7410_v26 }
 0x686   :  { %6497 = vtanh.f32 %v1939_v58 }
 0x690   :  { %v6498_v16 = vpop.eup %6497 }
 0x691   :  { %v1941_v46 = vsub.f32 %v1783_v45, %v6498_v16 }
 0x693   :  { %v1942_v28 = vmul.f32 %v1941_v46, %v1936_v56 }
 0x695   :  { %v1943_v24 = vadd.f32 %v6498_v16, %v1942_v28 }
 0x697   :  { %2009 = vmatmul.mubr.f32.vlgmr.msra.gmra.mrb[48].mxu1 %v1943_v24  ;;  %2102 = vst [vmem:[%s8151_s14 + $0x10] sm:$0xff] %v1943_v24  ;;  %4704 = vmatmul.mubr.f32.vlgmr.msra.gmra.mrb[56].mxu0 %v1943_v24 }
 0x698   :  { %5705 = vmatpush1.bf16.msra.mxu1 %v7210_v27  ;;  %5736 = vmatpush3.bf16.msra.mxu0 %v7040_v14 }
 0x699   :  { %5707 = vmatprep.subr.bf16.mxu1 %v7217_v35  ;;  %5737 = vmatprep.subr.bf16.mxu0 %v8177_v3 }
 0x69a   :  { %2168 = vmatprep.mubr.f32.mxu1 %v8176_v36  ;;  %4738 = vmatprep.mubr.msk.f32.mxu0 %vm6682_vm0, %v8176_v36 }
 0x69c   :  { %5709 = vmatpush1.bf16.msra.mxu1 %v7235_v57  ;;  %5739 = vmatpush3.bf16.msra.mxu0 %v7059_v29 }
 0x69d   :  { %5711 = vmatprep.subr.bf16.mxu1 %v7237_v62  ;;  %5740 = vmatprep.subr.bf16.mxu0 %v8177_v3 }
 0x6a0   :  { %5713 = vmatpush1.bf16.msra.mxu1 %v7253_v13  ;;  %5742 = vmatpush3.bf16.msra.mxu0 %v7079_v44 }
 0x6a1   :  { %5715 = vmatprep.subr.bf16.mxu1 %v7255_v22  ;;  %5743 = vmatprep.subr.bf16.mxu0 %v8177_v3 }
 0x6a4   :  { %5717 = vmatpush1.bf16.msra.mxu1 %v7271_v37  ;;  %5745 = vmatpush3.bf16.msra.mxu0 %v7099_v2 }
 0x6a5   :  { %5719 = vmatprep.subr.bf16.mxu1 %v7273_v41  ;;  %5746 = vmatprep.subr.bf16.mxu0 %v8177_v3 }
 0x6a8   :  { %5721 = vmatpush1.bf16.msra.mxu1 %v7289_v4  ;;  %5748 = vmatpush3.bf16.msra.mxu0 %v7119_v19 }
 0x6a9   :  { %5723 = vmatprep.subr.bf16.mxu1 %v7291_v7  ;;  %5749 = vmatprep.subr.bf16.mxu0 %v8177_v3 }
 0x6ac   :  { %5725 = vmatpush1.bf16.msra.mxu1 %v7307_v25  ;;  %5751 = vmatpush3.bf16.msra.mxu0 %v7138_v32 }
 0x6ad   :  { %5727 = vmatprep.subr.bf16.mxu1 %v7309_v34  ;;  %5752 = vmatprep.subr.bf16.mxu0 %v8177_v3 }
 0x6b0   :  { %5729 = vmatpush1.bf16.msra.mxu1 %v7325_v60  ;;  %5754 = vmatpush3.bf16.msra.mxu0 %v7156_v43 }
 0x6b1   :  { %5731 = vmatprep.subr.bf16.mxu1 %v7327_v63  ;;  %5755 = vmatprep.subr.bf16.mxu0 %v8177_v3 }
 0x6b4   :  { %5733 = vmatpush1.bf16.msra.mxu1 %v7337_v6  ;;  %5757 = vmatpush3.bf16.msra.mxu0 %v7183_v8 }
 0x6b5   :  { %5759 = vmatprep.subr.bf16.mxu1 %v7192_v17  ;;  %5790 = vmatprep.subr.bf16.mxu0 %v8177_v3 }
 0x76a   :  { %v2010_v26 = vpop.f32.mrb[48].mxu1  ;;  %v2081_v15 = vpop.f32.mrb[56].mxu0 }
 0x76b   :  { %v2085_v45 = vadd.f32 %v2010_v26, %v7413_v39  ;;  %v2012_v11 = vpop.f32.mrb[49].mxu1  ;;  %v4705_v23 = vpop.f32.mrb[57].mxu0  ;;  %v2095_v33 = vadd.f32 %v7520_v50, %v2081_v15 }
 0x76c   :  { %v2090_v52 = vadd.f32 %v2012_v11, %v7464_v54 }
 0x76d   :  { %v2086_v38 = vmul.f32 0.5, %v2085_v45 }
 0x76e   :  { %v2091_v55 = vmul.f32 0.5, %v2090_v52 }
 0x76f   :  { %6499 = vtanh.f32 %v2086_v38 }
 0x770   :  { %6501 = vtanh.f32 %v2091_v55 }
 0x779   :  { %v6500_v49 = vpop.eup %6499 }
 0x77a   :  { %v2088_v21 = vmul.f32 0.5, %v6500_v49  ;;  %v6502_v31 = vpop.eup %6501 }
 0x77b   :  { %v2093_v30 = vmul.f32 0.5, %v6502_v31 }
 0x77c   :  { %v2089_v40 = vadd.f32 0.5, %v2088_v21 }
 0x77d   :  { %v2094_v58 = vadd.f32 0.5, %v2093_v30 }
 0x77e   :  { %v2096_v0 = vmul.f32 %v2095_v33, %v2089_v40 }
 0x780   :  { %v2097_v48 = vadd.f32 %v2096_v0, %v7467_v42 }
 0x782   :  { %6503 = vtanh.f32 %v2097_v48 }
 0x78c   :  { %v6504_v39 = vpop.eup %6503 }
 0x78d   :  { %v2099_v9 = vsub.f32 %v1943_v24, %v6504_v39 }
 0x78f   :  { %v2100_v47 = vmul.f32 %v2099_v9, %v2094_v58 }
 0x791   :  { %v2101_v54 = vadd.f32 %v6504_v39, %v2100_v47 }
 0x793   :  { %2103 = vst [vmem:[%s8151_s14 + $0x18] sm:$0xff] %v2101_v54  ;;  %2169 = vmatmul.mubr.f32.vlgmr.msra.gmra.mrb[20].mxu1 %v2101_v54  ;;  %4739 = vmatmul.mubr.f32.vlgmr.msra.gmra.mrb[58].mxu0 %v2101_v54 }
 0x794   :  { %5761 = vmatpush1.bf16.msra.mxu1 %v7210_v27  ;;  %5792 = vmatpush3.bf16.msra.mxu0 %v7040_v14 }
 0x795   :  { %5763 = vmatprep.subr.bf16.mxu1 %v7217_v35  ;;  %5793 = vmatprep.subr.bf16.mxu0 %v8177_v3 }
 0x796   :  { %2326 = vmatprep.mubr.f32.mxu1 %v8176_v36  ;;  %4773 = vmatprep.mubr.msk.f32.mxu0 %vm6682_vm0, %v8176_v36 }
 0x798   :  { %5765 = vmatpush1.bf16.msra.mxu1 %v7235_v57  ;;  %5795 = vmatpush3.bf16.msra.mxu0 %v7059_v29 }
 0x799   :  { %5767 = vmatprep.subr.bf16.mxu1 %v7237_v62  ;;  %5796 = vmatprep.subr.bf16.mxu0 %v8177_v3 }
 0x79c   :  { %5769 = vmatpush1.bf16.msra.mxu1 %v7253_v13  ;;  %5798 = vmatpush3.bf16.msra.mxu0 %v7079_v44 }
 0x79d   :  { %5771 = vmatprep.subr.bf16.mxu1 %v7255_v22  ;;  %5799 = vmatprep.subr.bf16.mxu0 %v8177_v3 }
 0x7a0   :  { %5773 = vmatpush1.bf16.msra.mxu1 %v7271_v37  ;;  %5801 = vmatpush3.bf16.msra.mxu0 %v7099_v2 }
 0x7a1   :  { %5775 = vmatprep.subr.bf16.mxu1 %v7273_v41  ;;  %5802 = vmatprep.subr.bf16.mxu0 %v8177_v3 }
 0x7a4   :  { %5777 = vmatpush1.bf16.msra.mxu1 %v7289_v4  ;;  %5804 = vmatpush3.bf16.msra.mxu0 %v7119_v19 }
 0x7a5   :  { %5779 = vmatprep.subr.bf16.mxu1 %v7291_v7  ;;  %5805 = vmatprep.subr.bf16.mxu0 %v8177_v3 }
 0x7a8   :  { %5781 = vmatpush1.bf16.msra.mxu1 %v7307_v25  ;;  %5807 = vmatpush3.bf16.msra.mxu0 %v7138_v32 }
 0x7a9   :  { %5783 = vmatprep.subr.bf16.mxu1 %v7309_v34  ;;  %5808 = vmatprep.subr.bf16.mxu0 %v8177_v3 }
 0x7ac   :  { %5785 = vmatpush1.bf16.msra.mxu1 %v7325_v60  ;;  %5810 = vmatpush3.bf16.msra.mxu0 %v7156_v43 }
 0x7ad   :  { %5787 = vmatprep.subr.bf16.mxu1 %v7327_v63  ;;  %5811 = vmatprep.subr.bf16.mxu0 %v8177_v3 }
 0x7b0   :  { %5789 = vmatpush1.bf16.msra.mxu1 %v7337_v6  ;;  %5813 = vmatpush3.bf16.msra.mxu0 %v7183_v8 }
 0x7b1   :  { %5815 = vmatprep.subr.bf16.mxu1 %v7192_v17  ;;  %5846 = vmatprep.subr.bf16.mxu0 %v8177_v3 }
 0x866   :  { %v2170_v42 = vpop.f32.mrb[20].mxu1  ;;  %v2241_v16 = vpop.f32.mrb[58].mxu0 }
 0x867   :  { %v6378_v56 = vadd.f32 %v2170_v42, %v7505_v5  ;;  %v2172_v46 = vpop.f32.mrb[21].mxu1  ;;  %v4740_v28 = vpop.f32.mrb[59].mxu0  ;;  %v2255_v52 = vadd.f32 %v7520_v50, %v2241_v16 }
 0x868   :  { %v6379_v26 = vadd.f32 %v2172_v46, %v7514_v51 }
 0x869   :  { %v2246_v24 = vmul.f32 0.5, %v6378_v56 }
 0x86a   :  { %v2251_v15 = vmul.f32 0.5, %v6379_v26 }
 0x86b   :  { %6505 = vtanh.f32 %v2246_v24 }
 0x86c   :  { %6507 = vtanh.f32 %v2251_v15 }
 0x875   :  { %v6506_v45 = vpop.eup %6505 }
 0x876   :  { %v2248_v11 = vmul.f32 0.5, %v6506_v45  ;;  %v6508_v49 = vpop.eup %6507 }
 0x877   :  { %v2253_v21 = vmul.f32 0.5, %v6508_v49 }
 0x878   :  { %v2249_v23 = vadd.f32 0.5, %v2248_v11 }
 0x879   :  { %v2254_v33 = vadd.f32 0.5, %v2253_v21 }
 0x87a   :  { %v2256_v38 = vmul.f32 %v2255_v52, %v2249_v23 }
 0x87c   :  { %v2257_v55 = vadd.f32 %v2256_v38, %v7416_v59 }
 0x87e   :  { %6509 = vtanh.f32 %v2257_v55 }
 0x888   :  { %v6510_v40 = vpop.eup %6509 }
 0x889   :  { %v2259_v0 = vsub.f32 %v2101_v54, %v6510_v40 }
 0x88b   :  { %v2260_v48 = vmul.f32 %v2259_v0, %v2254_v33 }
 0x88d   :  { %v2261_v31 = vadd.f32 %v6510_v40, %v2260_v48 }
 0x88f   :  { %2327 = vmatmul.mubr.f32.vlgmr.msra.gmra.mrb[50].mxu1 %v2261_v31  ;;  %2420 = vst [vmem:[%s8151_s14 + $0x20] sm:$0xff] %v2261_v31  ;;  %4774 = vmatmul.mubr.f32.vlgmr.msra.gmra.mrb[60].mxu0 %v2261_v31 }
 0x890   :  { %5817 = vmatpush1.bf16.msra.mxu1 %v7210_v27  ;;  %5848 = vmatpush3.bf16.msra.mxu0 %v7040_v14 }
 0x891   :  { %5819 = vmatprep.subr.bf16.mxu1 %v7217_v35  ;;  %5849 = vmatprep.subr.bf16.mxu0 %v8177_v3 }
 0x892   :  { %2486 = vmatprep.mubr.f32.mxu1 %v8176_v36  ;;  %4808 = vmatprep.mubr.msk.f32.mxu0 %vm6682_vm0, %v8176_v36 }
 0x894   :  { %5821 = vmatpush1.bf16.msra.mxu1 %v7235_v57  ;;  %5851 = vmatpush3.bf16.msra.mxu0 %v7059_v29 }
 0x895   :  { %5823 = vmatprep.subr.bf16.mxu1 %v7237_v62  ;;  %5852 = vmatprep.subr.bf16.mxu0 %v8177_v3 }
 0x898   :  { %5825 = vmatpush1.bf16.msra.mxu1 %v7253_v13  ;;  %5854 = vmatpush3.bf16.msra.mxu0 %v7079_v44 }
 0x899   :  { %5827 = vmatprep.subr.bf16.mxu1 %v7255_v22  ;;  %5855 = vmatprep.subr.bf16.mxu0 %v8177_v3 }
 0x89c   :  { %5829 = vmatpush1.bf16.msra.mxu1 %v7271_v37  ;;  %5857 = vmatpush3.bf16.msra.mxu0 %v7099_v2 }
 0x89d   :  { %5831 = vmatprep.subr.bf16.mxu1 %v7273_v41  ;;  %5858 = vmatprep.subr.bf16.mxu0 %v8177_v3 }
 0x8a0   :  { %5833 = vmatpush1.bf16.msra.mxu1 %v7289_v4  ;;  %5860 = vmatpush3.bf16.msra.mxu0 %v7119_v19 }
 0x8a1   :  { %5835 = vmatprep.subr.bf16.mxu1 %v7291_v7  ;;  %5861 = vmatprep.subr.bf16.mxu0 %v8177_v3 }
 0x8a4   :  { %5837 = vmatpush1.bf16.msra.mxu1 %v7307_v25  ;;  %5863 = vmatpush3.bf16.msra.mxu0 %v7138_v32 }
 0x8a5   :  { %5839 = vmatprep.subr.bf16.mxu1 %v7309_v34  ;;  %5864 = vmatprep.subr.bf16.mxu0 %v8177_v3 }
 0x8a8   :  { %5841 = vmatpush1.bf16.msra.mxu1 %v7325_v60  ;;  %5866 = vmatpush3.bf16.msra.mxu0 %v7156_v43 }
 0x8a9   :  { %5843 = vmatprep.subr.bf16.mxu1 %v7327_v63  ;;  %5867 = vmatprep.subr.bf16.mxu0 %v8177_v3 }
 0x8ac   :  { %5845 = vmatpush1.bf16.msra.mxu1 %v7337_v6  ;;  %5869 = vmatpush3.bf16.msra.mxu0 %v7183_v8 }
 0x8ad   :  { %5871 = vmatprep.subr.bf16.mxu1 %v7192_v17  ;;  %5902 = vmatprep.subr.bf16.mxu0 %v8177_v3 }
 0x962   :  { %v2328_v59 = vpop.f32.mrb[50].mxu1  ;;  %v2399_v30 = vpop.f32.mrb[60].mxu0 }
 0x963   :  { %v2403_v39 = vadd.f32 %v2328_v59, %v7419_v10  ;;  %v2330_v58 = vpop.f32.mrb[51].mxu1  ;;  %v4775_v9 = vpop.f32.mrb[61].mxu0  ;;  %v2413_v28 = vadd.f32 %v7520_v50, %v2399_v30 }
 0x964   :  { %v2408_v47 = vadd.f32 %v2330_v58, %v7470_v61 }
 0x965   :  { %v2404_v54 = vmul.f32 0.5, %v2403_v39 }
 0x966   :  { %v2409_v42 = vmul.f32 0.5, %v2408_v47 }
 0x967   :  { %6511 = vtanh.f32 %v2404_v54 }
 0x968   :  { %6513 = vtanh.f32 %v2409_v42 }
 0x971   :  { %v6512_v16 = vpop.eup %6511 }
 0x972   :  { %v2406_v56 = vmul.f32 0.5, %v6512_v16  ;;  %v6514_v15 = vpop.eup %6513 }
 0x973   :  { %v2411_v45 = vmul.f32 0.5, %v6514_v15 }
 0x974   :  { %v2407_v46 = vadd.f32 0.5, %v2406_v56 }
 0x975   :  { %v2412_v11 = vadd.f32 0.5, %v2411_v45 }
 0x976   :  { %v2414_v24 = vmul.f32 %v2413_v28, %v2407_v46 }
 0x978   :  { %v2415_v26 = vadd.f32 %v2414_v24, %v7473_v20 }
 0x97a   :  { %6515 = vtanh.f32 %v2415_v26 }
 0x984   :  { %v6516_v10 = vpop.eup %6515 }
 0x985   :  { %v2417_v23 = vsub.f32 %v2261_v31, %v6516_v10 }
 0x987   :  { %v2418_v52 = vmul.f32 %v2417_v23, %v2412_v11 }
 0x989   :  { %v2419_v61 = vadd.f32 %v6516_v10, %v2418_v52 }
 0x98b   :  { %2421 = vst [vmem:[%s8151_s14 + $0x28] sm:$0xff] %v2419_v61  ;;  %2487 = vmatmul.mubr.f32.vlgmr.msra.gmra.mrb[22].mxu1 %v2419_v61  ;;  %4809 = vmatmul.mubr.f32.vlgmr.msra.gmra.mrb[62].mxu0 %v2419_v61 }
 0x98c   :  { %5873 = vmatpush1.bf16.msra.mxu1 %v7210_v27  ;;  %5904 = vmatpush3.bf16.msra.mxu0 %v7040_v14 }
 0x98d   :  { %5875 = vmatprep.subr.bf16.mxu1 %v7217_v35  ;;  %5905 = vmatprep.subr.bf16.mxu0 %v8177_v3 }
 0x98e   :  { %2644 = vmatprep.mubr.f32.mxu1 %v8176_v36  ;;  %4843 = vmatprep.mubr.msk.f32.mxu0 %vm6682_vm0, %v8176_v36 }
 0x990   :  { %5877 = vmatpush1.bf16.msra.mxu1 %v7235_v57  ;;  %5907 = vmatpush3.bf16.msra.mxu0 %v7059_v29 }
 0x991   :  { %5879 = vmatprep.subr.bf16.mxu1 %v7237_v62  ;;  %5908 = vmatprep.subr.bf16.mxu0 %v8177_v3 }
 0x994   :  { %5881 = vmatpush1.bf16.msra.mxu1 %v7253_v13  ;;  %5910 = vmatpush3.bf16.msra.mxu0 %v7079_v44 }
 0x995   :  { %5883 = vmatprep.subr.bf16.mxu1 %v7255_v22  ;;  %5911 = vmatprep.subr.bf16.mxu0 %v8177_v3 }
 0x998   :  { %5885 = vmatpush1.bf16.msra.mxu1 %v7271_v37  ;;  %5913 = vmatpush3.bf16.msra.mxu0 %v7099_v2 }
 0x999   :  { %5887 = vmatprep.subr.bf16.mxu1 %v7273_v41  ;;  %5914 = vmatprep.subr.bf16.mxu0 %v8177_v3 }
 0x99c   :  { %5889 = vmatpush1.bf16.msra.mxu1 %v7289_v4  ;;  %5916 = vmatpush3.bf16.msra.mxu0 %v7119_v19 }
 0x99d   :  { %5891 = vmatprep.subr.bf16.mxu1 %v7291_v7  ;;  %5917 = vmatprep.subr.bf16.mxu0 %v8177_v3 }
 0x9a0   :  { %5893 = vmatpush1.bf16.msra.mxu1 %v7307_v25  ;;  %5919 = vmatpush3.bf16.msra.mxu0 %v7138_v32 }
 0x9a1   :  { %5895 = vmatprep.subr.bf16.mxu1 %v7309_v34  ;;  %5920 = vmatprep.subr.bf16.mxu0 %v8177_v3 }
 0x9a4   :  { %5897 = vmatpush1.bf16.msra.mxu1 %v7325_v60  ;;  %5922 = vmatpush3.bf16.msra.mxu0 %v7156_v43 }
 0x9a5   :  { %5899 = vmatprep.subr.bf16.mxu1 %v7327_v63  ;;  %5923 = vmatprep.subr.bf16.mxu0 %v8177_v3 }
 0x9a8   :  { %5901 = vmatpush1.bf16.msra.mxu1 %v7337_v6  ;;  %5925 = vmatpush3.bf16.msra.mxu0 %v7183_v8 }
 0x9a9   :  { %5927 = vmatprep.subr.bf16.mxu1 %v7192_v17  ;;  %5958 = vmatprep.subr.bf16.mxu0 %v8177_v3 }
 0xa5e   :  { %v2488_v20 = vpop.f32.mrb[22].mxu1  ;;  %v2559_v38 = vpop.f32.mrb[62].mxu0 }
 0xa5f   :  { %v6380_v55 = vadd.f32 %v2488_v20, %v7505_v5  ;;  %v2490_v49 = vpop.f32.mrb[23].mxu1  ;;  %v4810_v21 = vpop.f32.mrb[63].mxu0  ;;  %v2573_v30 = vadd.f32 %v7520_v50, %v2559_v38 }
 0xa60   :  { %v6381_v33 = vadd.f32 %v2490_v49, %v7514_v51 }
 0xa61   :  { %v2564_v40 = vmul.f32 0.5, %v6380_v55 }
 0xa62   :  { %v2569_v0 = vmul.f32 0.5, %v6381_v33 }
 0xa63   :  { %6517 = vtanh.f32 %v2564_v40 }
 0xa64   :  { %6519 = vtanh.f32 %v2569_v0 }
 0xa6d   :  { %v6518_v48 = vpop.eup %6517 }
 0xa6e   :  { %v2566_v31 = vmul.f32 0.5, %v6518_v48  ;;  %v6520_v9 = vpop.eup %6519 }
 0xa6f   :  { %v2571_v47 = vmul.f32 0.5, %v6520_v9 }
 0xa70   :  { %v2567_v59 = vadd.f32 0.5, %v2566_v31 }
 0xa71   :  { %v2572_v42 = vadd.f32 0.5, %v2571_v47 }
 0xa72   :  { %v2574_v39 = vmul.f32 %v2573_v30, %v2567_v59 }
 0xa74   :  { %v2575_v58 = vadd.f32 %v2574_v39, %v7422_v12 }
 0xa76   :  { %6521 = vtanh.f32 %v2575_v58 }
 0xa80   :  { %v6522_v54 = vpop.eup %6521 }
 0xa81   :  { %v2577_v16 = vsub.f32 %v2419_v61, %v6522_v54 }
 0xa83   :  { %v2578_v56 = vmul.f32 %v2577_v16, %v2572_v42 }
 0xa85   :  { %v2579_v46 = vadd.f32 %v6522_v54, %v2578_v56 }
 0xa87   :  { %2645 = vmatmul.mubr.f32.vlgmr.msra.gmra.mrb[52].mxu1 %v2579_v46  ;;  %2738 = vst [vmem:[%s8151_s14 + $0x30] sm:$0xff] %v2579_v46  ;;  %4844 = vmatmul.mubr.f32.vlgmr.msra.gmra.mrb[64].mxu0 %v2579_v46 }
 0xa88   :  { %5929 = vmatpush1.bf16.msra.mxu1 %v7210_v27  ;;  %5960 = vmatpush3.bf16.msra.mxu0 %v7040_v14 }
 0xa89   :  { %5931 = vmatprep.subr.bf16.mxu1 %v7217_v35  ;;  %5961 = vmatprep.subr.bf16.mxu0 %v8177_v3 }
 0xa8a   :  { %2804 = vmatprep.mubr.f32.mxu1 %v8176_v36  ;;  %4878 = vmatprep.mubr.msk.f32.mxu0 %vm6682_vm0, %v8176_v36 }
 0xa8c   :  { %5933 = vmatpush1.bf16.msra.mxu1 %v7235_v57  ;;  %5963 = vmatpush3.bf16.msra.mxu0 %v7059_v29 }
 0xa8d   :  { %5935 = vmatprep.subr.bf16.mxu1 %v7237_v62  ;;  %5964 = vmatprep.subr.bf16.mxu0 %v8177_v3 }
 0xa90   :  { %5937 = vmatpush1.bf16.msra.mxu1 %v7253_v13  ;;  %5966 = vmatpush3.bf16.msra.mxu0 %v7079_v44 }
 0xa91   :  { %5939 = vmatprep.subr.bf16.mxu1 %v7255_v22  ;;  %5967 = vmatprep.subr.bf16.mxu0 %v8177_v3 }
 0xa94   :  { %5941 = vmatpush1.bf16.msra.mxu1 %v7271_v37  ;;  %5969 = vmatpush3.bf16.msra.mxu0 %v7099_v2 }
 0xa95   :  { %5943 = vmatprep.subr.bf16.mxu1 %v7273_v41  ;;  %5970 = vmatprep.subr.bf16.mxu0 %v8177_v3 }
 0xa98   :  { %5945 = vmatpush1.bf16.msra.mxu1 %v7289_v4  ;;  %5972 = vmatpush3.bf16.msra.mxu0 %v7119_v19 }
 0xa99   :  { %5947 = vmatprep.subr.bf16.mxu1 %v7291_v7  ;;  %5973 = vmatprep.subr.bf16.mxu0 %v8177_v3 }
 0xa9c   :  { %5949 = vmatpush1.bf16.msra.mxu1 %v7307_v25  ;;  %5975 = vmatpush3.bf16.msra.mxu0 %v7138_v32 }
 0xa9d   :  { %5951 = vmatprep.subr.bf16.mxu1 %v7309_v34  ;;  %5976 = vmatprep.subr.bf16.mxu0 %v8177_v3 }
 0xaa0   :  { %5953 = vmatpush1.bf16.msra.mxu1 %v7325_v60  ;;  %5978 = vmatpush3.bf16.msra.mxu0 %v7156_v43 }
 0xaa1   :  { %5955 = vmatprep.subr.bf16.mxu1 %v7327_v63  ;;  %5979 = vmatprep.subr.bf16.mxu0 %v8177_v3 }
 0xaa4   :  { %5957 = vmatpush1.bf16.msra.mxu1 %v7337_v6  ;;  %5981 = vmatpush3.bf16.msra.mxu0 %v7183_v8 }
 0xaa5   :  { %5983 = vmatprep.subr.bf16.mxu1 %v7192_v17  ;;  %6014 = vmatprep.subr.bf16.mxu0 %v8177_v3 }
 0xb5a   :  { %v2646_v12 = vpop.f32.mrb[52].mxu1  ;;  %v2717_v28 = vpop.f32.mrb[64].mxu0 }
 0xb5b   :  { %v2721_v24 = vadd.f32 %v2646_v12, %v7425_v18  ;;  %v2648_v26 = vpop.f32.mrb[53].mxu1  ;;  %v4845_v15 = vpop.f32.mrb[65].mxu0  ;;  %v2731_v20 = vadd.f32 %v7520_v50, %v2717_v28 }
 0xb5c   :  { %v2726_v45 = vadd.f32 %v2648_v26, %v7476_v1 }
 0xb5d   :  { %v2722_v10 = vmul.f32 0.5, %v2721_v24 }
 0xb5e   :  { %v2727_v11 = vmul.f32 0.5, %v2726_v45 }
 0xb5f   :  { %6523 = vtanh.f32 %v2722_v10 }
 0xb60   :  { %6525 = vtanh.f32 %v2727_v11 }
 0xb69   :  { %v6524_v23 = vpop.eup %6523 }
 0xb6a   :  { %v2724_v52 = vmul.f32 0.5, %v6524_v23  ;;  %v6526_v49 = vpop.eup %6525 }
 0xb6b   :  { %v2729_v21 = vmul.f32 0.5, %v6526_v49 }
 0xb6c   :  { %v2725_v61 = vadd.f32 0.5, %v2724_v52  ;;  %v8179_v52 = vld [vmem:[#allocation14_spill] sm:$0xff] }
 0xb6d   :  { %v2730_v40 = vadd.f32 0.5, %v2729_v21 }
 0xb6e   :  { %v2732_v38 = vmul.f32 %v2731_v20, %v2725_v61 }
 0xb70   :  { %v2733_v55 = vadd.f32 %v2732_v38, %v7479_v53 }
 0xb72   :  { %6527 = vtanh.f32 %v2733_v55  ;;  %v8180_v55 = vld [vmem:[#allocation21_spill] sm:$0xff] }
 0xb7c   :  { %v6528_v18 = vpop.eup %6527 }
 0xb7d   :  { %v2735_v33 = vsub.f32 %v2579_v46, %v6528_v18  ;;  %v8178_v46 = vld [vmem:[#allocation13_spill] sm:$0xff] }
 0xb7f   :  { %v2736_v0 = vmul.f32 %v2735_v33, %v2730_v40 }
 0xb81   :  { %v2737_v1 = vadd.f32 %v6528_v18, %v2736_v0 }
 0xb83   :  { %2739 = vst [vmem:[%s8151_s14 + $0x38] sm:$0xff] %v2737_v1  ;;  %2805 = vmatmul.mubr.f32.vlgmr.msra.gmra.mrb[24].mxu1 %v2737_v1  ;;  %4879 = vmatmul.mubr.f32.vlgmr.msra.gmra.mrb[66].mxu0 %v2737_v1 }
 0xb84   :  { %5985 = vmatpush1.bf16.msra.mxu1 %v7210_v27  ;;  %6016 = vmatpush3.bf16.msra.mxu0 %v7040_v14 }
 0xb85   :  { %5987 = vmatprep.subr.bf16.mxu1 %v7217_v35  ;;  %6017 = vmatprep.subr.bf16.mxu0 %v8177_v3 }
 0xb86   :  { %2962 = vmatprep.mubr.f32.mxu1 %v8176_v36  ;;  %4913 = vmatprep.mubr.msk.f32.mxu0 %vm6682_vm0, %v8176_v36 }
 0xb88   :  { %5989 = vmatpush1.bf16.msra.mxu1 %v7235_v57  ;;  %6019 = vmatpush3.bf16.msra.mxu0 %v7059_v29 }
 0xb89   :  { %5991 = vmatprep.subr.bf16.mxu1 %v7237_v62  ;;  %6020 = vmatprep.subr.bf16.mxu0 %v8177_v3 }
 0xb8c   :  { %5993 = vmatpush1.bf16.msra.mxu1 %v7253_v13  ;;  %6022 = vmatpush3.bf16.msra.mxu0 %v7079_v44 }
 0xb8d   :  { %5995 = vmatprep.subr.bf16.mxu1 %v7255_v22  ;;  %6023 = vmatprep.subr.bf16.mxu0 %v8177_v3 }
 0xb90   :  { %5997 = vmatpush1.bf16.msra.mxu1 %v7271_v37  ;;  %6025 = vmatpush3.bf16.msra.mxu0 %v7099_v2 }
 0xb91   :  { %5999 = vmatprep.subr.bf16.mxu1 %v7273_v41  ;;  %6026 = vmatprep.subr.bf16.mxu0 %v8177_v3 }
 0xb94   :  { %6001 = vmatpush1.bf16.msra.mxu1 %v7289_v4  ;;  %6028 = vmatpush3.bf16.msra.mxu0 %v7119_v19 }
 0xb95   :  { %6003 = vmatprep.subr.bf16.mxu1 %v7291_v7  ;;  %6029 = vmatprep.subr.bf16.mxu0 %v8177_v3 }
 0xb98   :  { %6005 = vmatpush1.bf16.msra.mxu1 %v7307_v25  ;;  %6031 = vmatpush3.bf16.msra.mxu0 %v7138_v32 }
 0xb99   :  { %6007 = vmatprep.subr.bf16.mxu1 %v7309_v34  ;;  %6032 = vmatprep.subr.bf16.mxu0 %v8177_v3 }
 0xb9c   :  { %6009 = vmatpush1.bf16.msra.mxu1 %v7325_v60  ;;  %6034 = vmatpush3.bf16.msra.mxu0 %v7156_v43 }
 0xb9d   :  { %6011 = vmatprep.subr.bf16.mxu1 %v7327_v63  ;;  %6035 = vmatprep.subr.bf16.mxu0 %v8177_v3 }
 0xba0   :  { %6013 = vmatpush1.bf16.msra.mxu1 %v7337_v6  ;;  %6037 = vmatpush3.bf16.msra.mxu0 %v7183_v8 }
 0xba1   :  { %6039 = vmatprep.subr.bf16.mxu1 %v7192_v17  ;;  %6070 = vmatprep.subr.bf16.mxu0 %v8177_v3 }
 0xc56   :  { %v2806_v53 = vpop.f32.mrb[24].mxu1  ;;  %v2877_v48 = vpop.f32.mrb[66].mxu0 }
 0xc57   :  { %v6382_v31 = vadd.f32 %v2806_v53, %v7505_v5  ;;  %v2808_v59 = vpop.f32.mrb[25].mxu1  ;;  %v4880_v30 = vpop.f32.mrb[67].mxu0  ;;  %v2891_v16 = vadd.f32 %v7520_v50, %v2877_v48 }
 0xc58   :  { %v6383_v58 = vadd.f32 %v2808_v59, %v7514_v51 }
 0xc59   :  { %v2882_v39 = vmul.f32 0.5, %v6382_v31  ;;  %v8181_v31 = vld [vmem:[#allocation22_spill] sm:$0xff] }
 0xc5a   :  { %v2887_v9 = vmul.f32 0.5, %v6383_v58 }
 0xc5b   :  { %6529 = vtanh.f32 %v2882_v39 }
 0xc5c   :  { %6531 = vtanh.f32 %v2887_v9 }
 0xc65   :  { %v6530_v47 = vpop.eup %6529 }
 0xc66   :  { %v2884_v54 = vmul.f32 0.5, %v6530_v47  ;;  %v6532_v28 = vpop.eup %6531 }
 0xc67   :  { %v2889_v24 = vmul.f32 0.5, %v6532_v28 }
 0xc68   :  { %v2885_v42 = vadd.f32 0.5, %v2884_v54 }
 0xc69   :  { %v2890_v15 = vadd.f32 0.5, %v2889_v24 }
 0xc6a   :  { %v2892_v56 = vmul.f32 %v2891_v16, %v2885_v42 }
 0xc6c   :  { %v2893_v12 = vadd.f32 %v2892_v56, %v8178_v46 }
 0xc6e   :  { %6533 = vtanh.f32 %v2893_v12 }
 0xc78   :  { %v6534_v26 = vpop.eup %6533 }
 0xc79   :  { %v2895_v45 = vsub.f32 %v2737_v1, %v6534_v26  ;;  %v7915_v1 = vld [vmem:[%s8150_s13] ss:$0 sm:$0xff] }
 0xc7b   :  { %v2896_v10 = vmul.f32 %v2895_v45, %v2890_v15 }
 0xc7d   :  { %v2897_v11 = vadd.f32 %v6534_v26, %v2896_v10 }
 0xc7f   :  { %2963 = vmatmul.mubr.f32.vlgmr.msra.gmra.mrb[54].mxu1 %v2897_v11  ;;  %3056 = vst [vmem:[%s8151_s14 + $0x40] sm:$0xff] %v2897_v11  ;;  %4914 = vmatmul.mubr.f32.vlgmr.msra.gmra.mrb[68].mxu0 %v2897_v11 }
 0xc80   :  { %6041 = vmatpush1.bf16.msra.mxu1 %v7210_v27  ;;  %6072 = vmatpush3.bf16.msra.mxu0 %v7040_v14 }
 0xc81   :  { %6043 = vmatprep.subr.bf16.mxu1 %v7217_v35  ;;  %6073 = vmatprep.subr.bf16.mxu0 %v8177_v3 }
 0xc82   :  { %3122 = vmatprep.mubr.f32.mxu1 %v8176_v36  ;;  %4948 = vmatprep.mubr.msk.f32.mxu0 %vm6682_vm0, %v8176_v36 }
 0xc84   :  { %6045 = vmatpush1.bf16.msra.mxu1 %v7235_v57  ;;  %6075 = vmatpush3.bf16.msra.mxu0 %v7059_v29 }
 0xc85   :  { %6047 = vmatprep.subr.bf16.mxu1 %v7237_v62  ;;  %6076 = vmatprep.subr.bf16.mxu0 %v8177_v3 }
 0xc88   :  { %6049 = vmatpush1.bf16.msra.mxu1 %v7253_v13  ;;  %6078 = vmatpush3.bf16.msra.mxu0 %v7079_v44 }
 0xc89   :  { %6051 = vmatprep.subr.bf16.mxu1 %v7255_v22  ;;  %6079 = vmatprep.subr.bf16.mxu0 %v8177_v3 }
 0xc8c   :  { %6053 = vmatpush1.bf16.msra.mxu1 %v7271_v37  ;;  %6081 = vmatpush3.bf16.msra.mxu0 %v7099_v2 }
 0xc8d   :  { %6055 = vmatprep.subr.bf16.mxu1 %v7273_v41  ;;  %6082 = vmatprep.subr.bf16.mxu0 %v8177_v3 }
 0xc90   :  { %6057 = vmatpush1.bf16.msra.mxu1 %v7289_v4  ;;  %6084 = vmatpush3.bf16.msra.mxu0 %v7119_v19 }
 0xc91   :  { %6059 = vmatprep.subr.bf16.mxu1 %v7291_v7  ;;  %6085 = vmatprep.subr.bf16.mxu0 %v8177_v3 }
 0xc94   :  { %6061 = vmatpush1.bf16.msra.mxu1 %v7307_v25  ;;  %6087 = vmatpush3.bf16.msra.mxu0 %v7138_v32 }
 0xc95   :  { %6063 = vmatprep.subr.bf16.mxu1 %v7309_v34  ;;  %6088 = vmatprep.subr.bf16.mxu0 %v8177_v3 }
 0xc98   :  { %6065 = vmatpush1.bf16.msra.mxu1 %v7325_v60  ;;  %6090 = vmatpush3.bf16.msra.mxu0 %v7156_v43 }
 0xc99   :  { %6067 = vmatprep.subr.bf16.mxu1 %v7327_v63  ;;  %6091 = vmatprep.subr.bf16.mxu0 %v8177_v3 }
 0xc9c   :  { %6069 = vmatpush1.bf16.msra.mxu1 %v7337_v6  ;;  %6093 = vmatpush3.bf16.msra.mxu0 %v7183_v8 }
 0xc9d   :  { %6095 = vmatprep.subr.bf16.mxu1 %v7192_v17  ;;  %6126 = vmatprep.subr.bf16.mxu0 %v8177_v3 }
 0xd52   :  { %v2964_v50 = vpop.f32.mrb[54].mxu1  ;;  %v3035_v23 = vpop.f32.mrb[68].mxu0 }
 0xd53   :  { %v3039_v61 = vadd.f32 %v2964_v50, %v8179_v52  ;;  %v2966_v20 = vpop.f32.mrb[55].mxu1  ;;  %v4915_v38 = vpop.f32.mrb[69].mxu0  ;;  %v3049_v53 = vadd.f32 %v7915_v1, %v3035_v23  ;;  %v8182_v52 = vld [vmem:[#allocation15_spill] sm:$0xff] }
 0xd54   :  { %v3044_v49 = vadd.f32 %v2966_v20, %v8180_v55 }
 0xd55   :  { %v3040_v21 = vmul.f32 0.5, %v3039_v61 }
 0xd56   :  { %v3045_v18 = vmul.f32 0.5, %v3044_v49 }
 0xd57   :  { %6535 = vtanh.f32 %v3040_v21 }
 0xd58   :  { %6537 = vtanh.f32 %v3045_v18 }
 0xd61   :  { %v6536_v40 = vpop.eup %6535 }
 0xd62   :  { %v3042_v33 = vmul.f32 0.5, %v6536_v40  ;;  %v6538_v30 = vpop.eup %6537 }
 0xd63   :  { %v3047_v39 = vmul.f32 0.5, %v6538_v30  ;;  %v8184_v30 = vld [vmem:[#allocation23_spill] sm:$0xff] }
 0xd64   :  { %v3043_v0 = vadd.f32 0.5, %v3042_v33 }
 0xd65   :  { %v3048_v9 = vadd.f32 0.5, %v3047_v39 }
 0xd66   :  { %v3050_v48 = vmul.f32 %v3049_v53, %v3043_v0  ;;  %v8183_v53 = vld [vmem:[#allocation16_spill] sm:$0xff] }
 0xd68   :  { %v3051_v59 = vadd.f32 %v3050_v48, %v8181_v31 }
 0xd6a   :  { %6539 = vtanh.f32 %v3051_v59 }
 0xd74   :  { %v6540_v58 = vpop.eup %6539 }
 0xd75   :  { %v3053_v47 = vsub.f32 %v2897_v11, %v6540_v58 }
 0xd77   :  { %v3054_v54 = vmul.f32 %v3053_v47, %v3048_v9 }
 0xd79   :  { %v3055_v42 = vadd.f32 %v6540_v58, %v3054_v54 }
 0xd7b   :  { %3057 = vst [vmem:[%s8151_s14 + $0x48] sm:$0xff] %v3055_v42  ;;  %3123 = vmatmul.mubr.f32.vlgmr.msra.gmra.mrb[26].mxu1 %v3055_v42  ;;  %4949 = vmatmul.mubr.f32.vlgmr.msra.gmra.mrb[70].mxu0 %v3055_v42 }
 0xd7c   :  { %6097 = vmatpush1.bf16.msra.mxu1 %v7210_v27  ;;  %6128 = vmatpush3.bf16.msra.mxu0 %v7040_v14 }
 0xd7d   :  { %6099 = vmatprep.subr.bf16.mxu1 %v7217_v35  ;;  %6129 = vmatprep.subr.bf16.mxu0 %v8177_v3 }
 0xd7e   :  { %3280 = vmatprep.mubr.f32.mxu1 %v8176_v36  ;;  %4983 = vmatprep.mubr.msk.f32.mxu0 %vm6682_vm0, %v8176_v36 }
 0xd80   :  { %6101 = vmatpush1.bf16.msra.mxu1 %v7235_v57  ;;  %6131 = vmatpush3.bf16.msra.mxu0 %v7059_v29 }
 0xd81   :  { %6103 = vmatprep.subr.bf16.mxu1 %v7237_v62  ;;  %6132 = vmatprep.subr.bf16.mxu0 %v8177_v3 }
 0xd84   :  { %6105 = vmatpush1.bf16.msra.mxu1 %v7253_v13  ;;  %6134 = vmatpush3.bf16.msra.mxu0 %v7079_v44 }
 0xd85   :  { %6107 = vmatprep.subr.bf16.mxu1 %v7255_v22  ;;  %6135 = vmatprep.subr.bf16.mxu0 %v8177_v3 }
 0xd88   :  { %6109 = vmatpush1.bf16.msra.mxu1 %v7271_v37  ;;  %6137 = vmatpush3.bf16.msra.mxu0 %v7099_v2 }
 0xd89   :  { %6111 = vmatprep.subr.bf16.mxu1 %v7273_v41  ;;  %6138 = vmatprep.subr.bf16.mxu0 %v8177_v3 }
 0xd8c   :  { %6113 = vmatpush1.bf16.msra.mxu1 %v7289_v4  ;;  %6140 = vmatpush3.bf16.msra.mxu0 %v7119_v19 }
 0xd8d   :  { %6115 = vmatprep.subr.bf16.mxu1 %v7291_v7  ;;  %6141 = vmatprep.subr.bf16.mxu0 %v8177_v3 }
 0xd90   :  { %6117 = vmatpush1.bf16.msra.mxu1 %v7307_v25  ;;  %6143 = vmatpush3.bf16.msra.mxu0 %v7138_v32 }
 0xd91   :  { %6119 = vmatprep.subr.bf16.mxu1 %v7309_v34  ;;  %6144 = vmatprep.subr.bf16.mxu0 %v8177_v3 }
 0xd94   :  { %6121 = vmatpush1.bf16.msra.mxu1 %v7325_v60  ;;  %6146 = vmatpush3.bf16.msra.mxu0 %v7156_v43 }
 0xd95   :  { %6123 = vmatprep.subr.bf16.mxu1 %v7327_v63  ;;  %6147 = vmatprep.subr.bf16.mxu0 %v8177_v3 }
 0xd98   :  { %6125 = vmatpush1.bf16.msra.mxu1 %v7337_v6  ;;  %6149 = vmatpush3.bf16.msra.mxu0 %v7183_v8 }
 0xd99   :  { %6151 = vmatprep.subr.bf16.mxu1 %v7192_v17  ;;  %6182 = vmatprep.subr.bf16.mxu0 %v8177_v3 }
 0xe4e   :  { %v3124_v16 = vpop.f32.mrb[26].mxu1  ;;  %v3195_v56 = vpop.f32.mrb[70].mxu0 }
 0xe4f   :  { %v6384_v46 = vadd.f32 %v3124_v16, %v7505_v5  ;;  %v3126_v12 = vpop.f32.mrb[27].mxu1  ;;  %v4950_v28 = vpop.f32.mrb[71].mxu0  ;;  %v3209_v50 = vadd.f32 %v7915_v1, %v3195_v56 }
 0xe50   :  { %v6385_v26 = vadd.f32 %v3126_v12, %v7514_v51 }
 0xe51   :  { %v3200_v24 = vmul.f32 0.5, %v6384_v46  ;;  %v8185_v46 = vld [vmem:[#allocation24_spill] sm:$0xff] }
 0xe52   :  { %v3205_v15 = vmul.f32 0.5, %v6385_v26 }
 0xe53   :  { %6541 = vtanh.f32 %v3200_v24 }
 0xe54   :  { %6543 = vtanh.f32 %v3205_v15 }
 0xe5d   :  { %v6542_v45 = vpop.eup %6541 }
 0xe5e   :  { %v3202_v10 = vmul.f32 0.5, %v6542_v45  ;;  %v6544_v20 = vpop.eup %6543 }
 0xe5f   :  { %v3207_v38 = vmul.f32 0.5, %v6544_v20 }
 0xe60   :  { %v3203_v11 = vadd.f32 0.5, %v3202_v10 }
 0xe61   :  { %v3208_v49 = vadd.f32 0.5, %v3207_v38 }
 0xe62   :  { %v3210_v23 = vmul.f32 %v3209_v50, %v3203_v11 }
 0xe64   :  { %v3211_v61 = vadd.f32 %v3210_v23, %v8182_v52 }
 0xe66   :  { %6545 = vtanh.f32 %v3211_v61 }
 0xe70   :  { %v6546_v55 = vpop.eup %6545 }
 0xe71   :  { %v3213_v21 = vsub.f32 %v3055_v42, %v6546_v55 }
 0xe73   :  { %v3214_v18 = vmul.f32 %v3213_v21, %v3208_v49 }
 0xe75   :  { %v3215_v40 = vadd.f32 %v6546_v55, %v3214_v18 }
 0xe77   :  { %3281 = vmatmul.mubr.f32.vlgmr.msra.gmra.mrb[56].mxu1 %v3215_v40  ;;  %3374 = vst [vmem:[%s8151_s14 + $0x50] sm:$0xff] %v3215_v40  ;;  %4984 = vmatmul.mubr.f32.vlgmr.msra.gmra.mrb[72].mxu0 %v3215_v40 }
 0xe78   :  { %6153 = vmatpush1.bf16.msra.mxu1 %v7210_v27  ;;  %6184 = vmatpush3.bf16.msra.mxu0 %v7040_v14 }
 0xe79   :  { %6155 = vmatprep.subr.bf16.mxu1 %v7217_v35  ;;  %6185 = vmatprep.subr.bf16.mxu0 %v8177_v3 }
 0xe7a   :  { %3440 = vmatprep.mubr.f32.mxu1 %v8176_v36  ;;  %5018 = vmatprep.mubr.msk.f32.mxu0 %vm6682_vm0, %v8176_v36 }
 0xe7c   :  { %6157 = vmatpush1.bf16.msra.mxu1 %v7235_v57  ;;  %6187 = vmatpush3.bf16.msra.mxu0 %v7059_v29 }
 0xe7d   :  { %6159 = vmatprep.subr.bf16.mxu1 %v7237_v62  ;;  %6188 = vmatprep.subr.bf16.mxu0 %v8177_v3 }
 0xe80   :  { %6161 = vmatpush1.bf16.msra.mxu1 %v7253_v13  ;;  %6190 = vmatpush3.bf16.msra.mxu0 %v7079_v44 }
 0xe81   :  { %6163 = vmatprep.subr.bf16.mxu1 %v7255_v22  ;;  %6191 = vmatprep.subr.bf16.mxu0 %v8177_v3 }
 0xe84   :  { %6165 = vmatpush1.bf16.msra.mxu1 %v7271_v37  ;;  %6193 = vmatpush3.bf16.msra.mxu0 %v7099_v2 }
 0xe85   :  { %6167 = vmatprep.subr.bf16.mxu1 %v7273_v41  ;;  %6194 = vmatprep.subr.bf16.mxu0 %v8177_v3 }
 0xe88   :  { %6169 = vmatpush1.bf16.msra.mxu1 %v7289_v4  ;;  %6196 = vmatpush3.bf16.msra.mxu0 %v7119_v19 }
 0xe89   :  { %6171 = vmatprep.subr.bf16.mxu1 %v7291_v7  ;;  %6197 = vmatprep.subr.bf16.mxu0 %v8177_v3 }
 0xe8c   :  { %6173 = vmatpush1.bf16.msra.mxu1 %v7307_v25  ;;  %6199 = vmatpush3.bf16.msra.mxu0 %v7138_v32 }
 0xe8d   :  { %6175 = vmatprep.subr.bf16.mxu1 %v7309_v34  ;;  %6200 = vmatprep.subr.bf16.mxu0 %v8177_v3 }
 0xe90   :  { %6177 = vmatpush1.bf16.msra.mxu1 %v7325_v60  ;;  %6202 = vmatpush3.bf16.msra.mxu0 %v7156_v43 }
 0xe91   :  { %6179 = vmatprep.subr.bf16.mxu1 %v7327_v63  ;;  %6203 = vmatprep.subr.bf16.mxu0 %v8177_v3 }
 0xe94   :  { %6181 = vmatpush1.bf16.msra.mxu1 %v7337_v6  ;;  %6205 = vmatpush3.bf16.msra.mxu0 %v7183_v8 }
 0xe95   :  { %6207 = vmatprep.subr.bf16.mxu1 %v7192_v17  ;;  %6238 = vmatprep.subr.bf16.mxu0 %v8177_v3 }
 0xf4a   :  { %v3282_v33 = vpop.f32.mrb[56].mxu1  ;;  %v3353_v0 = vpop.f32.mrb[72].mxu0 }
 0xf4b   :  { %v3357_v48 = vadd.f32 %v3282_v33, %v8183_v53  ;;  %v3284_v31 = vpop.f32.mrb[57].mxu1  ;;  %v4985_v59 = vpop.f32.mrb[73].mxu0  ;;  %v3367_v16 = vadd.f32 %v7915_v1, %v3353_v0  ;;  %v8186_v53 = vld [vmem:[#allocation17_spill] sm:$0xff] }
 0xf4c   :  { %v3362_v39 = vadd.f32 %v3284_v31, %v8184_v30 }
 0xf4d   :  { %v3358_v58 = vmul.f32 0.5, %v3357_v48 }
 0xf4e   :  { %v3363_v9 = vmul.f32 0.5, %v3362_v39 }
 0xf4f   :  { %6547 = vtanh.f32 %v3358_v58 }
 0xf50   :  { %6549 = vtanh.f32 %v3363_v9 }
 0xf59   :  { %v6548_v47 = vpop.eup %6547 }
 0xf5a   :  { %v3360_v54 = vmul.f32 0.5, %v6548_v47  ;;  %v6550_v28 = vpop.eup %6549 }
 0xf5b   :  { %v3365_v24 = vmul.f32 0.5, %v6550_v28  ;;  %v8188_v28 = vld [vmem:[#allocation25_spill] sm:$0xff] }
 0xf5c   :  { %v3361_v42 = vadd.f32 0.5, %v3360_v54 }
 0xf5d   :  { %v3366_v15 = vadd.f32 0.5, %v3365_v24 }
 0xf5e   :  { %v3368_v56 = vmul.f32 %v3367_v16, %v3361_v42  ;;  %v8187_v16 = vld [vmem:[#allocation18_spill] sm:$0xff] }
 0xf60   :  { %v3369_v12 = vadd.f32 %v3368_v56, %v8185_v46 }
 0xf62   :  { %6551 = vtanh.f32 %v3369_v12 }
 0xf6c   :  { %v6552_v26 = vpop.eup %6551 }
 0xf6d   :  { %v3371_v45 = vsub.f32 %v3215_v40, %v6552_v26 }
 0xf6f   :  { %v3372_v10 = vmul.f32 %v3371_v45, %v3366_v15 }
 0xf71   :  { %v3373_v11 = vadd.f32 %v6552_v26, %v3372_v10 }
 0xf73   :  { %3375 = vst [vmem:[%s8151_s14 + $0x58] sm:$0xff] %v3373_v11  ;;  %3441 = vmatmul.mubr.f32.vlgmr.msra.gmra.mrb[28].mxu1 %v3373_v11  ;;  %5019 = vmatmul.mubr.f32.vlgmr.msra.gmra.mrb[74].mxu0 %v3373_v11 }
 0xf74   :  { %6209 = vmatpush1.bf16.msra.mxu1 %v7210_v27  ;;  %6240 = vmatpush3.bf16.msra.mxu0 %v7040_v14 }
 0xf75   :  { %6211 = vmatprep.subr.bf16.mxu1 %v7217_v35  ;;  %6241 = vmatprep.subr.bf16.mxu0 %v8177_v3 }
 0xf76   :  { %3598 = vmatprep.mubr.f32.mxu1 %v8176_v36  ;;  %5053 = vmatprep.mubr.msk.f32.mxu0 %vm6682_vm0, %v8176_v36 }
 0xf78   :  { %6213 = vmatpush1.bf16.msra.mxu1 %v7235_v57  ;;  %6243 = vmatpush3.bf16.msra.mxu0 %v7059_v29 }
 0xf79   :  { %6215 = vmatprep.subr.bf16.mxu1 %v7237_v62  ;;  %6244 = vmatprep.subr.bf16.mxu0 %v8177_v3 }
 0xf7c   :  { %6217 = vmatpush1.bf16.msra.mxu1 %v7253_v13  ;;  %6246 = vmatpush3.bf16.msra.mxu0 %v7079_v44 }
 0xf7d   :  { %6219 = vmatprep.subr.bf16.mxu1 %v7255_v22  ;;  %6247 = vmatprep.subr.bf16.mxu0 %v8177_v3 }
 0xf80   :  { %6221 = vmatpush1.bf16.msra.mxu1 %v7271_v37  ;;  %6249 = vmatpush3.bf16.msra.mxu0 %v7099_v2 }
 0xf81   :  { %6223 = vmatprep.subr.bf16.mxu1 %v7273_v41  ;;  %6250 = vmatprep.subr.bf16.mxu0 %v8177_v3 }
 0xf84   :  { %6225 = vmatpush1.bf16.msra.mxu1 %v7289_v4  ;;  %6252 = vmatpush3.bf16.msra.mxu0 %v7119_v19 }
 0xf85   :  { %6227 = vmatprep.subr.bf16.mxu1 %v7291_v7  ;;  %6253 = vmatprep.subr.bf16.mxu0 %v8177_v3 }
 0xf88   :  { %6229 = vmatpush1.bf16.msra.mxu1 %v7307_v25  ;;  %6255 = vmatpush3.bf16.msra.mxu0 %v7138_v32 }
 0xf89   :  { %6231 = vmatprep.subr.bf16.mxu1 %v7309_v34  ;;  %6256 = vmatprep.subr.bf16.mxu0 %v8177_v3 }
 0xf8c   :  { %6233 = vmatpush1.bf16.msra.mxu1 %v7325_v60  ;;  %6258 = vmatpush3.bf16.msra.mxu0 %v7156_v43 }
 0xf8d   :  { %6235 = vmatprep.subr.bf16.mxu1 %v7327_v63  ;;  %6259 = vmatprep.subr.bf16.mxu0 %v8177_v3 }
 0xf90   :  { %6237 = vmatpush1.bf16.msra.mxu1 %v7337_v6  ;;  %6261 = vmatpush3.bf16.msra.mxu0 %v7183_v8 }
 0xf91   :  { %6263 = vmatprep.subr.bf16.mxu1 %v7192_v17  ;;  %6294 = vmatprep.subr.bf16.mxu0 %v8177_v3 }
0x1046   :  { %v3442_v50 = vpop.f32.mrb[28].mxu1  ;;  %v3513_v23 = vpop.f32.mrb[74].mxu0 }
0x1047   :  { %v6386_v52 = vadd.f32 %v3442_v50, %v7505_v5  ;;  %v3444_v61 = vpop.f32.mrb[29].mxu1  ;;  %v5020_v20 = vpop.f32.mrb[75].mxu0  ;;  %v3527_v33 = vadd.f32 %v7915_v1, %v3513_v23  ;;  %v8189_v23 = vld [vmem:[#allocation26_spill] sm:$0xff] }
0x1048   :  { %v6387_v55 = vadd.f32 %v3444_v61, %v7514_v51 }
0x1049   :  { %v3518_v38 = vmul.f32 0.5, %v6386_v52 }
0x104a   :  { %v3523_v49 = vmul.f32 0.5, %v6387_v55 }
0x104b   :  { %6553 = vtanh.f32 %v3518_v38 }
0x104c   :  { %6555 = vtanh.f32 %v3523_v49 }
0x1055   :  { %v6554_v21 = vpop.eup %6553 }
0x1056   :  { %v3520_v18 = vmul.f32 0.5, %v6554_v21  ;;  %v6556_v31 = vpop.eup %6555 }
0x1057   :  { %v3525_v59 = vmul.f32 0.5, %v6556_v31 }
0x1058   :  { %v3521_v40 = vadd.f32 0.5, %v3520_v18 }
0x1059   :  { %v3526_v39 = vadd.f32 0.5, %v3525_v59 }
0x105a   :  { %v3528_v0 = vmul.f32 %v3527_v33, %v3521_v40  ;;  %v8192_v33 = vld [vmem:[#allocation27_spill] sm:$0xff] }
0x105c   :  { %v3529_v48 = vadd.f32 %v3528_v0, %v8186_v53 }
0x105e   :  { %6557 = vtanh.f32 %v3529_v48 }
0x1068   :  { %v6558_v30 = vpop.eup %6557 }
0x1069   :  { %v3531_v58 = vsub.f32 %v3373_v11, %v6558_v30 }
0x106b   :  { %v3532_v9 = vmul.f32 %v3531_v58, %v3526_v39 }
0x106d   :  { %v3533_v47 = vadd.f32 %v6558_v30, %v3532_v9  ;;  %v8193_v9 = vld [vmem:[#allocation28_spill] sm:$0xff] }
0x106f   :  { %3599 = vmatmul.mubr.f32.vlgmr.msra.gmra.mrb[58].mxu1 %v3533_v47  ;;  %3692 = vst [vmem:[%s8151_s14 + $0x60] sm:$0xff] %v3533_v47  ;;  %5054 = vmatmul.mubr.f32.vlgmr.msra.gmra.mrb[76].mxu0 %v3533_v47 }
0x1070   :  { %6265 = vmatpush1.bf16.msra.mxu1 %v7210_v27  ;;  %6296 = vmatpush3.bf16.msra.mxu0 %v7040_v14 }
0x1071   :  { %6267 = vmatprep.subr.bf16.mxu1 %v7217_v35  ;;  %6297 = vmatprep.subr.bf16.mxu0 %v8177_v3 }
0x1072   :  { %3758 = vmatprep.mubr.f32.mxu1 %v8176_v36  ;;  %5088 = vmatprep.mubr.msk.f32.mxu0 %vm6682_vm0, %v8176_v36 }
0x1074   :  { %6269 = vmatpush1.bf16.msra.mxu1 %v7235_v57  ;;  %6299 = vmatpush3.bf16.msra.mxu0 %v7059_v29 }
0x1075   :  { %6271 = vmatprep.subr.bf16.mxu1 %v7237_v62  ;;  %6300 = vmatprep.subr.bf16.mxu0 %v8177_v3 }
0x1078   :  { %6273 = vmatpush1.bf16.msra.mxu1 %v7253_v13  ;;  %6302 = vmatpush3.bf16.msra.mxu0 %v7079_v44 }
0x1079   :  { %6275 = vmatprep.subr.bf16.mxu1 %v7255_v22  ;;  %6303 = vmatprep.subr.bf16.mxu0 %v8177_v3 }
0x107c   :  { %6277 = vmatpush1.bf16.msra.mxu1 %v7271_v37  ;;  %6305 = vmatpush3.bf16.msra.mxu0 %v7099_v2 }
0x107d   :  { %6279 = vmatprep.subr.bf16.mxu1 %v7273_v41  ;;  %6306 = vmatprep.subr.bf16.mxu0 %v8177_v3 }
0x1080   :  { %6281 = vmatpush1.bf16.msra.mxu1 %v7289_v4  ;;  %6308 = vmatpush3.bf16.msra.mxu0 %v7119_v19 }
0x1081   :  { %6283 = vmatprep.subr.bf16.mxu1 %v7291_v7  ;;  %6309 = vmatprep.subr.bf16.mxu0 %v8177_v3 }
0x1084   :  { %6285 = vmatpush1.bf16.msra.mxu1 %v7307_v25  ;;  %6311 = vmatpush3.bf16.msra.mxu0 %v7138_v32 }
0x1085   :  { %6287 = vmatprep.subr.bf16.mxu1 %v7309_v34  ;;  %6312 = vmatprep.subr.bf16.mxu0 %v8177_v3 }
0x1088   :  { %6289 = vmatpush1.bf16.msra.mxu1 %v7325_v60  ;;  %6314 = vmatpush3.bf16.msra.mxu0 %v7156_v43 }
0x1089   :  { %6291 = vmatprep.subr.bf16.mxu1 %v7327_v63  ;;  %6315 = vmatprep.subr.bf16.mxu0 %v8177_v3 }
0x108c   :  { %6293 = vmatpush1.bf16.msra.mxu1 %v7337_v6  ;;  %6317 = vmatpush3.bf16.msra.mxu0 %v7183_v8 }
0x108d   :  { %6319 = vmatprep.subr.bf16.mxu1 %v7192_v17  ;;  %6350 = vmatprep.subr.bf16.mxu0 %v8177_v3 }
0x1142   :  { %v3600_v54 = vpop.f32.mrb[58].mxu1  ;;  %v3671_v42 = vpop.f32.mrb[76].mxu0 }
0x1143   :  { %v3675_v56 = vadd.f32 %v3600_v54, %v8187_v16  ;;  %v3602_v46 = vpop.f32.mrb[59].mxu1  ;;  %v5055_v12 = vpop.f32.mrb[77].mxu0  ;;  %v3685_v50 = vadd.f32 %v7915_v1, %v3671_v42 }
0x1144   :  { %v3680_v24 = vadd.f32 %v3602_v46, %v8188_v28 }
0x1145   :  { %v3676_v26 = vmul.f32 0.5, %v3675_v56 }
0x1146   :  { %v3681_v15 = vmul.f32 0.5, %v3680_v24 }
0x1147   :  { %6559 = vtanh.f32 %v3676_v26 }
0x1148   :  { %6561 = vtanh.f32 %v3681_v15 }
0x1151   :  { %v6560_v45 = vpop.eup %6559 }
0x1152   :  { %v3678_v10 = vmul.f32 0.5, %v6560_v45  ;;  %v6562_v61 = vpop.eup %6561 }
0x1153   :  { %v3683_v20 = vmul.f32 0.5, %v6562_v61 }
0x1154   :  { %v3679_v11 = vadd.f32 0.5, %v3678_v10 }
0x1155   :  { %v3684_v55 = vadd.f32 0.5, %v3683_v20 }
0x1156   :  { %v3686_v17 = vmul.f32 %v3685_v50, %v3679_v11 }
0x1158   :  { %v3687_v52 = vadd.f32 %v3686_v17, %v8189_v23 }
0x115a   :  { %6563 = vtanh.f32 %v3687_v52 }
0x1164   :  { %v6564_v38 = vpop.eup %6563 }
0x1165   :  { %v3689_v49 = vsub.f32 %v3533_v47, %v6564_v38 }
0x1167   :  { %v3690_v21 = vmul.f32 %v3689_v49, %v3684_v55 }
0x1169   :  { %v3691_v18 = vadd.f32 %v6564_v38, %v3690_v21 }
0x116b   :  { %3693 = vst [vmem:[%s8151_s14 + $0x68] sm:$0xff] %v3691_v18  ;;  %3759 = vmatmul.mubr.f32.vlgmr.msra.gmra.mrb[30].mxu1 %v3691_v18  ;;  %5089 = vmatmul.mubr.f32.vlgmr.msra.gmra.mrb[78].mxu0 %v3691_v18 }
0x116c   :  { %6321 = vmatpush1.bf16.msra.mxu1 %v7210_v27  ;;  %6352 = vmatpush3.bf16.msra.mxu0 %v7040_v14 }
0x116d   :  { %6323 = vmatprep.subr.bf16.mxu1 %v7217_v35  ;;  %6353 = vmatprep.subr.bf16.mxu0 %v8177_v3 }
0x116e   :  { %3916 = vmatprep.mubr.f32.mxu1 %v8176_v36  ;;  %5123 = vmatprep.mubr.msk.f32.mxu0 %vm6682_vm0, %v8176_v36 }
0x1170   :  { %6325 = vmatpush1.bf16.msra.mxu1 %v7235_v57  ;;  %6355 = vmatpush3.bf16.msra.mxu0 %v7059_v29 }
0x1171   :  { %6327 = vmatprep.subr.bf16.mxu1 %v7237_v62  ;;  %6356 = vmatprep.subr.bf16.mxu0 %v8177_v3 }
0x1174   :  { %6329 = vmatpush1.bf16.msra.mxu1 %v7253_v13  ;;  %6358 = vmatpush3.bf16.msra.mxu0 %v7079_v44 }
0x1175   :  { %6331 = vmatprep.subr.bf16.mxu1 %v7255_v22  ;;  %6359 = vmatprep.subr.bf16.mxu0 %v8177_v3 }
0x1178   :  { %6333 = vmatpush1.bf16.msra.mxu1 %v7271_v37  ;;  %6361 = vmatpush3.bf16.msra.mxu0 %v7099_v2  ;;  %v8190_v37 = vld [vmem:[#allocation19_spill] sm:$0xff] }
0x1179   :  { %6335 = vmatprep.subr.bf16.mxu1 %v7273_v41  ;;  %6362 = vmatprep.subr.bf16.mxu0 %v8177_v3 }
0x117c   :  { %6337 = vmatpush1.bf16.msra.mxu1 %v7289_v4  ;;  %6364 = vmatpush3.bf16.msra.mxu0 %v7119_v19 }
0x117d   :  { %6339 = vmatprep.subr.bf16.mxu1 %v7291_v7  ;;  %6365 = vmatprep.subr.bf16.mxu0 %v8177_v3 }
0x1180   :  { %6341 = vmatpush1.bf16.msra.mxu1 %v7307_v25  ;;  %6367 = vmatpush3.bf16.msra.mxu0 %v7138_v32 }
0x1181   :  { %6343 = vmatprep.subr.bf16.mxu1 %v7309_v34  ;;  %6368 = vmatprep.subr.bf16.mxu0 %v8177_v3 }
0x1184   :  { %6345 = vmatpush1.bf16.msra.mxu1 %v7325_v60  ;;  %6370 = vmatpush3.bf16.msra.mxu0 %v7156_v43 }
0x1185   :  { %6347 = vmatprep.subr.bf16.mxu1 %v7327_v63  ;;  %6371 = vmatprep.subr.bf16.mxu0 %v8177_v3 }
0x1188   :  { %6349 = vmatpush1.bf16.msra.mxu1 %v7337_v6  ;;  %6373 = vmatpush3.bf16.msra.mxu0 %v7183_v8 }
0x123e   :  { %v3760_v14 = vpop.f32.mrb[30].mxu1  ;;  %v3831_v29 = vpop.f32.mrb[78].mxu0 }
0x123f   :  { %v6388_v44 = vadd.f32 %v3760_v14, %v7505_v5  ;;  %v3762_v2 = vpop.f32.mrb[31].mxu1  ;;  %v5090_v19 = vpop.f32.mrb[79].mxu0  ;;  %v3845_v13 = vadd.f32 %v7915_v1, %v3831_v29 }
0x1240   :  { %v6389_v27 = vadd.f32 %v3762_v2, %v7514_v51  ;;  %v8191_v51 = vld [vmem:[#allocation20_spill] sm:$0xff] }
0x1241   :  { %v3836_v32 = vmul.f32 0.5, %v6388_v44 }
0x1242   :  { %v3841_v35 = vmul.f32 0.5, %v6389_v27 }
0x1243   :  { %6565 = vtanh.f32 %v3836_v32 }
0x1244   :  { %6567 = vtanh.f32 %v3841_v35 }
0x124d   :  { %v6566_v43 = vpop.eup %6565 }
0x124e   :  { %v3838_v57 = vmul.f32 0.5, %v6566_v43  ;;  %v6568_v41 = vpop.eup %6567 }
0x124f   :  { %v3843_v4 = vmul.f32 0.5, %v6568_v41 }
0x1250   :  { %v3839_v62 = vadd.f32 0.5, %v3838_v57 }
0x1251   :  { %v3844_v25 = vadd.f32 0.5, %v3843_v4 }
0x1252   :  { %v3846_v22 = vmul.f32 %v3845_v13, %v3839_v62 }
0x1254   :  { %v3847_v8 = vadd.f32 %v3846_v22, %v8190_v37 }
0x1256   :  { %6569 = vtanh.f32 %v3847_v8 }
0x1260   :  { %v6570_v7 = vpop.eup %6569 }
0x1261   :  { %v3849_v34 = vsub.f32 %v3691_v18, %v6570_v7 }
0x1263   :  { %v3850_v60 = vmul.f32 %v3849_v34, %v3844_v25 }
0x1265   :  { %v3851_v63 = vadd.f32 %v6570_v7, %v3850_v60 }
0x1267   :  { %3917 = vmatmul.mubr.f32.vlgmr.msra.gmra.mrb[60].mxu1 %v3851_v63  ;;  %4010 = vst [vmem:[%s8151_s14 + $0x70] sm:$0xff] %v3851_v63  ;;  %5124 = vmatmul.mubr.f32.vlgmr.msra.gmra.mrb[80].mxu0 %v3851_v63 }
0x133a   :  { %v3918_v6 = vpop.f32.mrb[60].mxu1  ;;  %v3989_v5 = vpop.f32.mrb[80].mxu0 }
0x133b   :  { %v3993_v36 = vadd.f32 %v3918_v6, %v8191_v51  ;;  %v3920_v3 = vpop.f32.mrb[61].mxu1  ;;  %v5125_v40 = vpop.f32.mrb[81].mxu0  ;;  %v4003_v39 = vadd.f32 %v7915_v1, %v3989_v5 }
0x133c   :  { %v3998_v0 = vadd.f32 %v3920_v3, %v8192_v33 }
0x133d   :  { %v3994_v53 = vmul.f32 0.5, %v3993_v36 }
0x133e   :  { %v3999_v48 = vmul.f32 0.5, %v3998_v0 }
0x133f   :  { %6571 = vtanh.f32 %v3994_v53 }
0x1340   :  { %6573 = vtanh.f32 %v3999_v48 }
0x1349   :  { %v6572_v31 = vpop.eup %6571 }
0x134a   :  { %v3996_v59 = vmul.f32 0.5, %v6572_v31  ;;  %v6574_v54 = vpop.eup %6573 }
0x134b   :  { %v4001_v42 = vmul.f32 0.5, %v6574_v54 }
0x134c   :  { %v3997_v30 = vadd.f32 0.5, %v3996_v59 }
0x134d   :  { %v4002_v56 = vadd.f32 0.5, %v4001_v42 }
0x134e   :  { %v4004_v58 = vmul.f32 %v4003_v39, %v3997_v30 }
0x1350   :  { %v4005_v47 = vadd.f32 %v4004_v58, %v8193_v9 }
0x1352   :  { %6575 = vtanh.f32 %v4005_v47 }
0x135c   :  { %v6576_v16 = vpop.eup %6575 }
0x135d   :  { %v4007_v46 = vsub.f32 %v3851_v63, %v6576_v16 }
0x135f   :  { %v4008_v12 = vmul.f32 %v4007_v46, %v4002_v56 }
0x1361   :  { %v4009_v28 = vadd.f32 %v6576_v16, %v4008_v12 }
0x1363   :  { %4011 = vst [vmem:[%s8151_s14 + $0x78] sm:$0xff] %v4009_v28 }
0x1364   :  { %4016 = vsyncpa [#allocation4], 1 }
0x1365   :  { %4017 = vsyncpa [#allocation6], 1 }
0x1366   :  { %4018 = vsyncpa [#allocation9], 1 }

</bundles_post_ra>
